<compile_context>
chip_gen: v6e
topology: v6e:2x2x1
jax: 0.10.0
libtpu: 0.0.40
codegen_flags: <defaults>
</compile_context>

<pallas_src>
import functools

import jax
import jax.numpy as jnp
from jax import lax
from jax.experimental import pallas as pl
from jax.experimental.pallas import tpu as pltpu

BN_EPS = 9.999999747378752e-06


# ----------------------------- fused bottleneck kernel --------------------- #

def _bottleneck_kernel(x_hbm, *refs, proj, th, w, cin):
    """One bottleneck block on a (th x w) spatial row-tile of one image.

    x_hbm : (N, H + 2*th, w, cin) bf16 activation in HBM (H-padded layout).
    refs  : [w1, b1]? w2a, b2a, w2b, b2b, w2c, b2c, o_ref, xbuf, tbuf, sem
    """
    if proj:
        (w1_ref, b1_ref, w2a_ref, b2a_ref, w2b_ref, b2b_ref,
         w2c_ref, b2c_ref, o_ref, xbuf, tbuf, sem) = refs
    else:
        w1_ref = b1_ref = None
        (w2a_ref, b2a_ref, w2b_ref, b2b_ref,
         w2c_ref, b2c_ref, o_ref, xbuf, tbuf, sem) = refs

    n = pl.program_id(0)
    i = pl.program_id(1)
    nh = pl.num_programs(1)

    # DMA the (th + 2)-row halo window (real rows i*th-1 .. i*th+th; always in
    # bounds thanks to the H-padded layout) into VMEM.
    # TODO(synk): double-buffer this halo DMA across grid steps to overlap it
    # with the matmuls (weights and the output block are already pipelined).
    cp = pltpu.make_async_copy(
        x_hbm.at[n, pl.ds(th * (i + 1) - 1, th + 2)], xbuf, sem)
    cp.start()
    cp.wait()

    xh = xbuf[...].reshape((th + 2) * w, cin)                    # bf16

    # --- branch2a: 1x1 conv (BN scale folded into weights) + bias + ReLU ----
    t = jnp.dot(xh, w2a_ref[...], preferred_element_type=jnp.float32)
    t = jnp.maximum(t + b2a_ref[...], 0.0).astype(jnp.bfloat16)

    # Zero-padded (in W) tap buffer for the 3x3 conv.  Halo rows outside the
    # image are zeroed afterwards to reproduce F.pad's zero padding.
    tbuf[...] = jnp.zeros_like(tbuf)
    tbuf[:, 1:w + 1, :] = t.reshape(th + 2, w, 128)

    @pl.when(i == 0)
    def _():
        tbuf[0] = jnp.zeros((w + 2, 128), jnp.bfloat16)

    @pl.when(i == nh - 1)
    def _():
        tbuf[th + 1] = jnp.zeros((w + 2, 128), jnp.bfloat16)

    # --- branch2b: 3x3 conv as a single K = 9*128 MXU matmul ----------------
    taps = jnp.concatenate(
        [tbuf[dh:dh + th, dw:dw + w, :] for dh in range(3) for dw in range(3)],
        axis=-1)                                                 # (th, w, 1152)
    u = jnp.dot(taps.reshape(th * w, 9 * 128), w2b_ref[...],
                preferred_element_type=jnp.float32)
    u = jnp.maximum(u + b2b_ref[...], 0.0).astype(jnp.bfloat16)

    # --- branch2c: 1x1 conv back to 512 + bias ------------------------------
    y = jnp.dot(u, w2c_ref[...], preferred_element_type=jnp.float32)
    y = y + b2c_ref[...]

    # --- shortcut (projection for block 3a, identity otherwise) -------------
    xc = xbuf[1:th + 1].reshape(th * w, cin)                     # central rows
    if proj:
        r = jnp.dot(xc, w1_ref[...], preferred_element_type=jnp.float32)
        r = r + b1_ref[...]
    else:
        r = xc.astype(jnp.float32)

    out = jnp.maximum(y + r, 0.0).astype(o_ref.dtype)
    o_ref[...] = out.reshape(1, th, w, 512)


# ----------------------------- kernel wrapper ------------------------------ #

def fused_bottleneck(x_pad, bp, *, th, proj, padded_out):
    N, Hp, W, Cin = x_pad.shape
    H = Hp - 2 * th
    assert H > 0 and H % th == 0, (Hp, th)
    nh = H // th
    cout = bp['w2c'].shape[1]

    if padded_out:
        out_h = Hp
        out_map = lambda n, i: (n, i + 1, 0, 0)
    else:
        out_h = H
        out_map = lambda n, i: (n, i, 0, 0)

    wmap = lambda n, i: (0, 0)
    names = (['w1', 'b1'] if proj else []) + ['w2a', 'b2a', 'w2b', 'b2b',
                                              'w2c', 'b2c']
    w_args = [bp[k] for k in names]
    w_specs = [pl.BlockSpec(a.shape, wmap) for a in w_args]

    kernel = functools.partial(_bottleneck_kernel, proj=proj, th=th, w=W,
                               cin=Cin)

    return pl.pallas_call(
        kernel,
        grid=(N, nh),
        out_shape=jax.ShapeDtypeStruct((N, out_h, W, cout), jnp.bfloat16),
        in_specs=[pl.BlockSpec(memory_space=pl.ANY)] + w_specs,
        out_specs=pl.BlockSpec((1, th, W, cout), out_map),
        scratch_shapes=[
            pltpu.VMEM((th + 2, W, Cin), jnp.bfloat16),       # x halo window
            pltpu.VMEM((th + 2, W + 2, 128), jnp.bfloat16),   # padded branch2a
            pltpu.SemaphoreType.DMA,
        ],
        compiler_params=pltpu.CompilerParams(
            dimension_semantics=("parallel", "parallel")),
    )(x_pad, *w_args)


def _pick_tile_h(h, w, budget_bytes=8 << 20):
    """Largest divisor of h whose per-tile working set fits a VMEM budget."""
    best = 1
    for th in range(1, h + 1):
        if h % th:
            continue
        est = ((th + 2) * w * 512 * 2            # bf16 x halo window
               + (th + 2) * (w + 2) * 128 * 2    # bf16 branch2a buffer
               + th * w * 1152 * 2               # bf16 concatenated taps
               + 2 * th * w * 512 * (4 + 2))     # f32 epilogue + dbl-buf out
        if est <= budget_bytes:
            best = th
    return best


# ----------------------------- parameters ---------------------------------- #

def _bn_fold(key, c):
    k1, k2, k3, k4 = jax.random.split(key, 4)
    gamma = 1.0 + 0.1 * jax.random.normal(k1, (c,), jnp.float32)
    beta = 0.1 * jax.random.normal(k2, (c,), jnp.float32)
    mean = 0.1 * jax.random.normal(k3, (c,), jnp.float32)
    var = jax.random.uniform(k4, (c,), jnp.float32, 0.5, 1.5)
    scale = gamma * lax.rsqrt(var + BN_EPS)
    bias = beta - mean * scale
    return {'scale': scale.reshape(1, c), 'bias': bias.reshape(1, c)}


def _conv_w(key, kh, kw, cin, cout):
    # HWIO layout
    return 0.05 * jax.random.normal(key, (kh, kw, cin, cout), jnp.float32)


def init_params(key):
    specs = {
        'res3a_branch1': (1, 256, 512),
        'res3a_branch2a': (1, 256, 128),
        'res3a_branch2b': (3, 128, 128),
        'res3a_branch2c': (1, 128, 512),
    }
    for blk in 'bcd':
        specs[f'res3{blk}_branch2a'] = (1, 512, 128)
        specs[f'res3{blk}_branch2b'] = (3, 128, 128)
        specs[f'res3{blk}_branch2c'] = (1, 128, 512)

    params = {}
    names = sorted(specs)
    keys = jax.random.split(key, 2 * len(names))
    for idx, name in enumerate(names):
        k, cin, cout = specs[name]
        params[name] = _conv_w(keys[2 * idx], k, k, cin, cout)
        params['bn' + name[3:]] = _bn_fold(keys[2 * idx + 1], cout)
    return params


def prep_kernel_params(p):
    """Fold BN scale into bf16 conv weights; keep per-channel f32 biases."""
    def fold(name):
        w = p[name]                                   # HWIO
        bn = p['bn' + name[3:]]
        kh, kw, cin, cout = w.shape
        wf = (w.reshape(kh * kw * cin, cout) * bn['scale']).astype(jnp.bfloat16)
        return wf, bn['bias'].astype(jnp.float32)

    blocks = []
    ba = {}
    ba['w1'], ba['b1'] = fold('res3a_branch1')
    ba['w2a'], ba['b2a'] = fold('res3a_branch2a')
    ba['w2b'], ba['b2b'] = fold('res3a_branch2b')
    ba['w2c'], ba['b2c'] = fold('res3a_branch2c')
    blocks.append(ba)
    for blk in 'bcd':
        b = {}
        b['w2a'], b['b2a'] = fold(f'res3{blk}_branch2a')
        b['w2b'], b['b2b'] = fold(f'res3{blk}_branch2b')
        b['w2c'], b['b2c'] = fold(f'res3{blk}_branch2c')
        blocks.append(b)
    return blocks


# ----------------------------- forward (Pallas) ----------------------------- #

def layer3_forward_pallas(x_nchw, kblocks, *, tile_h=None):
    x = jnp.transpose(x_nchw, (0, 2, 3, 1)).astype(jnp.bfloat16)   # NHWC bf16
    xs = x[:, ::2, ::2, :]                       # stride-2 for the 1x1 convs
    H2, W2 = xs.shape[1], xs.shape[2]
    th = tile_h if tile_h is not None else _pick_tile_h(H2, W2)
    assert H2 % th == 0, (H2, th)

    # H-pad so every halo DMA window is in bounds; the pad rows themselves are
    # never used (boundary-tile halo rows are zeroed in-kernel).
    v = jnp.pad(xs, ((0, 0), (th, th), (0, 0), (0, 0)))

    for bi, bp in enumerate(kblocks):
        last = (bi == len(kblocks) - 1)
        v = fused_bottleneck(v, bp, th=th, proj=('w1' in bp),
                             padded_out=not last)

    # v: (N, H2, W2, 512) bf16 -> NCHW f32
    return jnp.transpose(v, (0, 3, 1, 2)).astype(jnp.float32)


# -------------------- pure-JAX references (for checking) -------------------- #

def _conv_ref(x, w_hwio, stride):
    pad = 'VALID' if w_hwio.shape[0] == 1 else [(1, 1), (1, 1)]
    return lax.conv_general_dilated(
        x, w_hwio, window_strides=(stride, stride), padding=pad,
        dimension_numbers=('NCHW', 'HWIO', 'NCHW'),
        precision=lax.Precision.HIGHEST)


def _bn_ref(x, bn):
    return x * bn['scale'].reshape(1, -1, 1, 1) + bn['bias'].reshape(1, -1, 1, 1)


def layer3_forward_ref(x, p):
    """Full-f32 reference matching the PyTorch module semantics."""
    def cbr(name, x, stride=1, relu=True):
        y = _bn_ref(_conv_ref(x, p[name], stride), p['bn' + name[3:]])
        return jnp.maximum(y, 0.0) if relu else y

    sc = cbr('res3a_branch1', x, stride=2, relu=False)
    t = cbr('res3a_branch2a', x, stride=2)
    t = cbr('res3a_branch2b', t)
    t = cbr('res3a_branch2c', t, relu=False)
    out = jnp.maximum(sc + t, 0.0)
    for blk in 'bcd':
        t = cbr(f'res3{blk}_branch2a', out)
        t = cbr(f'res3{blk}_branch2b', t)
        t = cbr(f'res3{blk}_branch2c', t, relu=False)
        out = jnp.maximum(out + t, 0.0)
    return out


def layer3_forward_bf16_ref(x_nchw, kblocks):
    """Reference with the same bf16 matmul inputs / f32 accumulation as the
    Pallas kernels (isolates kernel-structure bugs from bf16 rounding)."""
    x = jnp.transpose(x_nchw, (0, 2, 3, 1)).astype(jnp.bfloat16)
    v = x[:, ::2, ::2, :]

    def conv1x1(a, w, b):
        n, h, ww, c = a.shape
        y = jnp.dot(a.reshape(-1, c), w, preferred_element_type=jnp.float32)
        return y.reshape(n, h, ww, -1) + b.reshape(1, 1, 1, -1)

    def conv3x3(a, w9, b):
        c = a.shape[-1]
        w = w9.reshape(3, 3, c, -1)
        y = lax.conv_general_dilated(
            a, w, (1, 1), [(1, 1), (1, 1)],
            dimension_numbers=('NHWC', 'HWIO', 'NHWC'),
            preferred_element_type=jnp.float32)
        return y + b.reshape(1, 1, 1, -1)

    for bp in kblocks:
        t = jnp.maximum(conv1x1(v, bp['w2a'], bp['b2a']), 0.0).astype(jnp.bfloat16)
        u = jnp.maximum(conv3x3(t, bp['w2b'], bp['b2b']), 0.0).astype(jnp.bfloat16)
        y = conv1x1(u, bp['w2c'], bp['b2c'])
        if 'w1' in bp:
            r = conv1x1(v, bp['w1'], bp['b1'])
        else:
            r = v.astype(jnp.float32)
        v = jnp.maximum(y + r, 0.0).astype(jnp.bfloat16)
    return jnp.transpose(v.astype(jnp.float32), (0, 3, 1, 2))


# ----------------------------- main ----------------------------------------- #

if __name__ == "__main__":
    key = jax.random.PRNGKey(0)
    kx, kp = jax.random.split(key)
    # module fixes in_channels=256; small spatial 16x16, batch 2
    x = jax.random.normal(kx, (2, 256, 16, 16), jnp.float32)
    params = init_params(kp)
    kblocks = prep_kernel_params(params)

    # tile_h=4 -> grid (2 images, 2 row-tiles): exercises the halo exchange.
    fwd = jax.jit(functools.partial(layer3_forward_pallas, tile_h=4))
    out = jax.block_until_ready(fwd(x, kblocks))
    assert out.shape == (2, 512, 8, 8), out.shape

    # (1) tight check vs. a reference using the same bf16 matmul inputs.
    ref_b = layer3_forward_bf16_ref(x, kblocks)
    err_b = float(jnp.max(jnp.abs(out - ref_b)))
    assert jnp.allclose(out, ref_b, atol=1e-2, rtol=1e-2), \
        f"bf16-ref max abs err = {err_b}"

    # (2) looser check vs. the full-f32 PyTorch-semantics reference; slack is
    #     the expected bf16-operand rounding across 13 convs + residual chain.
    ref_f = layer3_forward_ref(x, params)
    err_f = float(jnp.max(jnp.abs(out - ref_f)))
    assert jnp.allclose(out, ref_f, atol=1e-1, rtol=1e-1), \
        f"f32-ref max abs err = {err_f}"

    print("KERNEL_OK")
</pallas_src>

<mosaic_0001>
module attributes {stable_mosaic.version = 11 : i64} {
  func.func @_bottleneck_kernel(%arg0: i32, %arg1: i32, %arg2: memref<2x16x8x256xbf16, #tpu.memory_space<any>>, %arg3: memref<256x512xbf16, #tpu.memory_space<vmem>>, %arg4: memref<1x512xf32, #tpu.memory_space<vmem>>, %arg5: memref<256x128xbf16, #tpu.memory_space<vmem>>, %arg6: memref<1x128xf32, #tpu.memory_space<vmem>>, %arg7: memref<1152x128xbf16, #tpu.memory_space<vmem>>, %arg8: memref<1x128xf32, #tpu.memory_space<vmem>>, %arg9: memref<128x512xbf16, #tpu.memory_space<vmem>>, %arg10: memref<1x512xf32, #tpu.memory_space<vmem>>, %arg11: memref<1x4x8x512xbf16, #tpu.memory_space<vmem>>, %arg12: memref<6x8x256xbf16, #tpu.memory_space<vmem>>, %arg13: memref<6x10x128xbf16, #tpu.memory_space<vmem>>, %arg14: memref<!tpu.dma_semaphore, #tpu.memory_space<semaphore_mem>>) attributes {dimension_semantics = [#tpu.dimension_semantics<parallel>, #tpu.dimension_semantics<parallel>], iteration_bounds = array<i64: 2, 2>, scalar_prefetch = 0 : i64, scratch_operands = 3 : i64, tpu.core_type = #tpu.core_type<tc>, window_params = [{}, {pipeline_mode = #tpu.pipeline_mode<synchronous>, transform_indices = @transform_1, window_bounds = array<i64: 256, 512>}, {pipeline_mode = #tpu.pipeline_mode<synchronous>, transform_indices = @transform_2, window_bounds = array<i64: 1, 512>}, {pipeline_mode = #tpu.pipeline_mode<synchronous>, transform_indices = @transform_3, window_bounds = array<i64: 256, 128>}, {pipeline_mode = #tpu.pipeline_mode<synchronous>, transform_indices = @transform_4, window_bounds = array<i64: 1, 128>}, {pipeline_mode = #tpu.pipeline_mode<synchronous>, transform_indices = @transform_5, window_bounds = array<i64: 1152, 128>}, {pipeline_mode = #tpu.pipeline_mode<synchronous>, transform_indices = @transform_6, window_bounds = array<i64: 1, 128>}, {pipeline_mode = #tpu.pipeline_mode<synchronous>, transform_indices = @transform_7, window_bounds = array<i64: 128, 512>}, {pipeline_mode = #tpu.pipeline_mode<synchronous>, transform_indices = @transform_8, window_bounds = array<i64: 1, 512>}, {transform_indices = @transform_9, window_bounds = array<i64: 1, 4, 8, 512>}]} {
    %c1_i32 = arith.constant 1 : i32
    %0 = arith.addi %arg1, %c1_i32 : i32
    %c4_i32 = arith.constant 4 : i32
    %1 = arith.muli %c4_i32, %0 : i32
    %c1_i32_0 = arith.constant 1 : i32
    %2 = arith.subi %1, %c1_i32_0 : i32
    %c0_i32 = arith.constant 0 : i32
    %c0_i32_1 = arith.constant 0 : i32
    %3 = tpu.memref_slice %arg2[%arg0, %2, %c0_i32, %c0_i32_1] : memref<2x16x8x256xbf16, #tpu.memory_space<any>> -> memref<1x6x8x256xbf16, #tpu.memory_space<any>>
    %4 = tpu.memref_squeeze %3 : memref<1x6x8x256xbf16, #tpu.memory_space<any>> -> memref<6x8x256xbf16, #tpu.memory_space<any>>
    tpu.enqueue_dma source(%4 : memref<6x8x256xbf16, #tpu.memory_space<any>>) target(%arg12 : memref<6x8x256xbf16, #tpu.memory_space<vmem>>) target_semaphore(%arg14 : memref<!tpu.dma_semaphore, #tpu.memory_space<semaphore_mem>>)
    %c0_i32_2 = arith.constant 0 : i32
    %c0_i32_3 = arith.constant 0 : i32
    %5 = tpu.memref_slice %arg2[%arg0, %2, %c0_i32_2, %c0_i32_3] : memref<2x16x8x256xbf16, #tpu.memory_space<any>> -> memref<1x6x8x256xbf16, #tpu.memory_space<any>>
    %6 = tpu.memref_squeeze %5 : memref<1x6x8x256xbf16, #tpu.memory_space<any>> -> memref<6x8x256xbf16, #tpu.memory_space<any>>
    tpu.wait_dma2 semaphore(%arg14 : memref<!tpu.dma_semaphore, #tpu.memory_space<semaphore_mem>>) src(%6 : memref<6x8x256xbf16, #tpu.memory_space<any>>) dst(%arg12 : memref<6x8x256xbf16, #tpu.memory_space<vmem>>)
    %c0 = arith.constant 0 : index
    %c0_4 = arith.constant 0 : index
    %c0_5 = arith.constant 0 : index
    %7 = vector.load %arg12[%c0, %c0_4, %c0_5] : memref<6x8x256xbf16, #tpu.memory_space<vmem>>, vector<6x8x256xbf16>
    %8 = vector.shape_cast %7 : vector<6x8x256xbf16> to vector<48x256xbf16>
    %c0_6 = arith.constant 0 : index
    %c0_7 = arith.constant 0 : index
    %9 = vector.load %arg5[%c0_6, %c0_7] : memref<256x128xbf16, #tpu.memory_space<vmem>>, vector<256x128xbf16>
    %cst = arith.constant dense<0.000000e+00> : vector<48x128xf32>
    %10 = tpu.matmul %8, %9, %cst {dimension_numbers = #tpu.dot_dimension_numbers<[1], [0], [0], [1], [0, 0, 1, 1], [], []>} : vector<48x256xbf16>, vector<256x128xbf16>, vector<48x128xf32> -> vector<48x128xf32>
    %c0_8 = arith.constant 0 : index
    %c0_9 = arith.constant 0 : index
    %11 = vector.load %arg6[%c0_8, %c0_9] : memref<1x128xf32, #tpu.memory_space<vmem>>, vector<1x128xf32>
    %12 = vector.broadcast %11 : vector<1x128xf32> to vector<48x128xf32>
    %13 = arith.addf %10, %12 : vector<48x128xf32>
    %cst_10 = arith.constant 0.000000e+00 : f32
    %14 = vector.broadcast %cst_10 : f32 to vector<48x128xf32>
    %15 = arith.maximumf %13, %14 : vector<48x128xf32>
    %16 = arith.truncf %15 : vector<48x128xf32> to vector<48x128xbf16>
    %cst_11 = arith.constant 0.000000e+00 : bf16
    %17 = vector.broadcast %cst_11 : bf16 to vector<6x10x128xbf16>
    %c0_12 = arith.constant 0 : index
    %c0_13 = arith.constant 0 : index
    %c0_14 = arith.constant 0 : index
    %18 = vector.load %arg13[%c0_12, %c0_13, %c0_14] : memref<6x10x128xbf16, #tpu.memory_space<vmem>>, vector<6x10x128xbf16>
    tpu.vector_store %arg13[%c0_12, %c0_13, %c0_14], %17 {strides = array<i32>} : memref<6x10x128xbf16, #tpu.memory_space<vmem>>, vector<6x10x128xbf16>,
    %19 = vector.shape_cast %16 : vector<48x128xbf16> to vector<6x8x128xbf16>
    %c0_15 = arith.constant 0 : index
    %c1 = arith.constant 1 : index
    %c0_16 = arith.constant 0 : index
    %20 = vector.load %arg13[%c0_15, %c1, %c0_16] : memref<6x10x128xbf16, #tpu.memory_space<vmem>>, vector<6x8x128xbf16>
    tpu.vector_store %arg13[%c0_15, %c1, %c0_16], %19 {strides = array<i32>} : memref<6x10x128xbf16, #tpu.memory_space<vmem>>, vector<6x8x128xbf16>,
    %c0_i32_17 = arith.constant 0 : i32
    %21 = arith.cmpi eq, %arg1, %c0_i32_17 : i32
    %22 = arith.extui %21 : i1 to i32
    %c0_i32_18 = arith.constant 0 : i32
    %23 = arith.cmpi ne, %22, %c0_i32_18 : i32
    scf.if %23 {
      %cst_71 = arith.constant 0.000000e+00 : bf16
      %64 = vector.broadcast %cst_71 : bf16 to vector<10x128xbf16>
      %c0_72 = arith.constant 0 : index
      %c0_73 = arith.constant 0 : index
      %c0_74 = arith.constant 0 : index
      %65 = vector.load %arg13[%c0_72, %c0_73, %c0_74] : memref<6x10x128xbf16, #tpu.memory_space<vmem>>, vector<1x10x128xbf16>
      %66 = vector.shape_cast %65 : vector<1x10x128xbf16> to vector<10x128xbf16>
      %67 = vector.shape_cast %64 : vector<10x128xbf16> to vector<1x10x128xbf16>
      tpu.vector_store %arg13[%c0_72, %c0_73, %c0_74], %67 {strides = array<i32>} : memref<6x10x128xbf16, #tpu.memory_space<vmem>>, vector<1x10x128xbf16>,
    } else {
    }
    %c1_i32_19 = arith.constant 1 : i32
    %24 = arith.cmpi eq, %arg1, %c1_i32_19 : i32
    %25 = arith.extui %24 : i1 to i32
    %c0_i32_20 = arith.constant 0 : i32
    %26 = arith.cmpi ne, %25, %c0_i32_20 : i32
    scf.if %26 {
      %cst_71 = arith.constant 0.000000e+00 : bf16
      %64 = vector.broadcast %cst_71 : bf16 to vector<10x128xbf16>
      %c5 = arith.constant 5 : index
      %c0_72 = arith.constant 0 : index
      %c0_73 = arith.constant 0 : index
      %65 = vector.load %arg13[%c5, %c0_72, %c0_73] : memref<6x10x128xbf16, #tpu.memory_space<vmem>>, vector<1x10x128xbf16>
      %66 = vector.shape_cast %65 : vector<1x10x128xbf16> to vector<10x128xbf16>
      %67 = vector.shape_cast %64 : vector<10x128xbf16> to vector<1x10x128xbf16>
      tpu.vector_store %arg13[%c5, %c0_72, %c0_73], %67 {strides = array<i32>} : memref<6x10x128xbf16, #tpu.memory_space<vmem>>, vector<1x10x128xbf16>,
    } else {
    }
    %c0_21 = arith.constant 0 : index
    %c0_22 = arith.constant 0 : index
    %c0_23 = arith.constant 0 : index
    %27 = vector.load %arg13[%c0_21, %c0_22, %c0_23] : memref<6x10x128xbf16, #tpu.memory_space<vmem>>, vector<4x8x128xbf16>
    %c0_24 = arith.constant 0 : index
    %c1_25 = arith.constant 1 : index
    %c0_26 = arith.constant 0 : index
    %28 = vector.load %arg13[%c0_24, %c1_25, %c0_26] : memref<6x10x128xbf16, #tpu.memory_space<vmem>>, vector<4x8x128xbf16>
    %c0_27 = arith.constant 0 : index
    %c2 = arith.constant 2 : index
    %c0_28 = arith.constant 0 : index
    %29 = vector.load %arg13[%c0_27, %c2, %c0_28] : memref<6x10x128xbf16, #tpu.memory_space<vmem>>, vector<4x8x128xbf16>
    %c1_29 = arith.constant 1 : index
    %c0_30 = arith.constant 0 : index
    %c0_31 = arith.constant 0 : index
    %30 = vector.load %arg13[%c1_29, %c0_30, %c0_31] : memref<6x10x128xbf16, #tpu.memory_space<vmem>>, vector<4x8x128xbf16>
    %c1_32 = arith.constant 1 : index
    %c1_33 = arith.constant 1 : index
    %c0_34 = arith.constant 0 : index
    %31 = vector.load %arg13[%c1_32, %c1_33, %c0_34] : memref<6x10x128xbf16, #tpu.memory_space<vmem>>, vector<4x8x128xbf16>
    %c1_35 = arith.constant 1 : index
    %c2_36 = arith.constant 2 : index
    %c0_37 = arith.constant 0 : index
    %32 = vector.load %arg13[%c1_35, %c2_36, %c0_37] : memref<6x10x128xbf16, #tpu.memory_space<vmem>>, vector<4x8x128xbf16>
    %c2_38 = arith.constant 2 : index
    %c0_39 = arith.constant 0 : index
    %c0_40 = arith.constant 0 : index
    %33 = vector.load %arg13[%c2_38, %c0_39, %c0_40] : memref<6x10x128xbf16, #tpu.memory_space<vmem>>, vector<4x8x128xbf16>
    %c2_41 = arith.constant 2 : index
    %c1_42 = arith.constant 1 : index
    %c0_43 = arith.constant 0 : index
    %34 = vector.load %arg13[%c2_41, %c1_42, %c0_43] : memref<6x10x128xbf16, #tpu.memory_space<vmem>>, vector<4x8x128xbf16>
    %c2_44 = arith.constant 2 : index
    %c2_45 = arith.constant 2 : index
    %c0_46 = arith.constant 0 : index
    %35 = vector.load %arg13[%c2_44, %c2_45, %c0_46] : memref<6x10x128xbf16, #tpu.memory_space<vmem>>, vector<4x8x128xbf16>
    %36 = tpu.concatenate %27, %28, %29, %30, %31, %32, %33, %34, %35 in 2 : vector<4x8x128xbf16>, vector<4x8x128xbf16>, vector<4x8x128xbf16>, vector<4x8x128xbf16>, vector<4x8x128xbf16>, vector<4x8x128xbf16>, vector<4x8x128xbf16>, vector<4x8x128xbf16>, vector<4x8x128xbf16> -> vector<4x8x1152xbf16>
    %37 = vector.shape_cast %36 : vector<4x8x1152xbf16> to vector<32x1152xbf16>
    %c0_47 = arith.constant 0 : index
    %c0_48 = arith.constant 0 : index
    %38 = vector.load %arg7[%c0_47, %c0_48] : memref<1152x128xbf16, #tpu.memory_space<vmem>>, vector<1152x128xbf16>
    %cst_49 = arith.constant dense<0.000000e+00> : vector<32x128xf32>
    %39 = tpu.matmul %37, %38, %cst_49 {dimension_numbers = #tpu.dot_dimension_numbers<[1], [0], [0], [1], [0, 0, 1, 1], [], []>} : vector<32x1152xbf16>, vector<1152x128xbf16>, vector<32x128xf32> -> vector<32x128xf32>
    %c0_50 = arith.constant 0 : index
    %c0_51 = arith.constant 0 : index
    %40 = vector.load %arg8[%c0_50, %c0_51] : memref<1x128xf32, #tpu.memory_space<vmem>>, vector<1x128xf32>
    %41 = vector.broadcast %40 : vector<1x128xf32> to vector<32x128xf32>
    %42 = arith.addf %39, %41 : vector<32x128xf32>
    %cst_52 = arith.constant 0.000000e+00 : f32
    %43 = vector.broadcast %cst_52 : f32 to vector<32x128xf32>
    %44 = arith.maximumf %42, %43 : vector<32x128xf32>
    %45 = arith.truncf %44 : vector<32x128xf32> to vector<32x128xbf16>
    %c0_53 = arith.constant 0 : index
    %c0_54 = arith.constant 0 : index
    %46 = vector.load %arg9[%c0_53, %c0_54] : memref<128x512xbf16, #tpu.memory_space<vmem>>, vector<128x512xbf16>
    %cst_55 = arith.constant dense<0.000000e+00> : vector<32x512xf32>
    %47 = tpu.matmul %45, %46, %cst_55 {dimension_numbers = #tpu.dot_dimension_numbers<[1], [0], [0], [1], [0, 0, 1, 1], [], []>} : vector<32x128xbf16>, vector<128x512xbf16>, vector<32x512xf32> -> vector<32x512xf32>
    %c0_56 = arith.constant 0 : index
    %c0_57 = arith.constant 0 : index
    %48 = vector.load %arg10[%c0_56, %c0_57] : memref<1x512xf32, #tpu.memory_space<vmem>>, vector<1x512xf32>
    %49 = vector.broadcast %48 : vector<1x512xf32> to vector<32x512xf32>
    %50 = arith.addf %47, %49 : vector<32x512xf32>
    %c1_58 = arith.constant 1 : index
    %c0_59 = arith.constant 0 : index
    %c0_60 = arith.constant 0 : index
    %51 = vector.load %arg12[%c1_58, %c0_59, %c0_60] : memref<6x8x256xbf16, #tpu.memory_space<vmem>>, vector<4x8x256xbf16>
    %52 = vector.shape_cast %51 : vector<4x8x256xbf16> to vector<32x256xbf16>
    %c0_61 = arith.constant 0 : index
    %c0_62 = arith.constant 0 : index
    %53 = vector.load %arg3[%c0_61, %c0_62] : memref<256x512xbf16, #tpu.memory_space<vmem>>, vector<256x512xbf16>
    %cst_63 = arith.constant dense<0.000000e+00> : vector<32x512xf32>
    %54 = tpu.matmul %52, %53, %cst_63 {dimension_numbers = #tpu.dot_dimension_numbers<[1], [0], [0], [1], [0, 0, 1, 1], [], []>} : vector<32x256xbf16>, vector<256x512xbf16>, vector<32x512xf32> -> vector<32x512xf32>
    %c0_64 = arith.constant 0 : index
    %c0_65 = arith.constant 0 : index
    %55 = vector.load %arg4[%c0_64, %c0_65] : memref<1x512xf32, #tpu.memory_space<vmem>>, vector<1x512xf32>
    %56 = vector.broadcast %55 : vector<1x512xf32> to vector<32x512xf32>
    %57 = arith.addf %54, %56 : vector<32x512xf32>
    %58 = arith.addf %50, %57 : vector<32x512xf32>
    %cst_66 = arith.constant 0.000000e+00 : f32
    %59 = vector.broadcast %cst_66 : f32 to vector<32x512xf32>
    %60 = arith.maximumf %58, %59 : vector<32x512xf32>
    %61 = arith.truncf %60 : vector<32x512xf32> to vector<32x512xbf16>
    %62 = vector.shape_cast %61 : vector<32x512xbf16> to vector<1x4x8x512xbf16>
    %c0_67 = arith.constant 0 : index
    %c0_68 = arith.constant 0 : index
    %c0_69 = arith.constant 0 : index
    %c0_70 = arith.constant 0 : index
    %63 = vector.load %arg11[%c0_67, %c0_68, %c0_69, %c0_70] : memref<1x4x8x512xbf16, #tpu.memory_space<vmem>>, vector<1x4x8x512xbf16>
    tpu.vector_store %arg11[%c0_67, %c0_68, %c0_69, %c0_70], %62 {strides = array<i32>} : memref<1x4x8x512xbf16, #tpu.memory_space<vmem>>, vector<1x4x8x512xbf16>,
    return
  }
  func.func @transform_1(%arg0: i32, %arg1: i32) -> (i32, i32) {
    %c0_i32 = arith.constant 0 : i32
    %c0_i32_0 = arith.constant 0 : i32
    %c0_i32_1 = arith.constant 0 : i32
    return %c0_i32, %c0_i32_0 : i32, i32
  }
  func.func @transform_2(%arg0: i32, %arg1: i32) -> (i32, i32) {
    %c0_i32 = arith.constant 0 : i32
    %c0_i32_0 = arith.constant 0 : i32
    %c0_i32_1 = arith.constant 0 : i32
    return %c0_i32, %c0_i32_0 : i32, i32
  }
  func.func @transform_3(%arg0: i32, %arg1: i32) -> (i32, i32) {
    %c0_i32 = arith.constant 0 : i32
    %c0_i32_0 = arith.constant 0 : i32
    %c0_i32_1 = arith.constant 0 : i32
    return %c0_i32, %c0_i32_0 : i32, i32
  }
  func.func @transform_4(%arg0: i32, %arg1: i32) -> (i32, i32) {
    %c0_i32 = arith.constant 0 : i32
    %c0_i32_0 = arith.constant 0 : i32
    %c0_i32_1 = arith.constant 0 : i32
    return %c0_i32, %c0_i32_0 : i32, i32
  }
  func.func @transform_5(%arg0: i32, %arg1: i32) -> (i32, i32) {
    %c0_i32 = arith.constant 0 : i32
    %c0_i32_0 = arith.constant 0 : i32
    %c0_i32_1 = arith.constant 0 : i32
    return %c0_i32, %c0_i32_0 : i32, i32
  }
  func.func @transform_6(%arg0: i32, %arg1: i32) -> (i32, i32) {
    %c0_i32 = arith.constant 0 : i32
    %c0_i32_0 = arith.constant 0 : i32
    %c0_i32_1 = arith.constant 0 : i32
    return %c0_i32, %c0_i32_0 : i32, i32
  }
  func.func @transform_7(%arg0: i32, %arg1: i32) -> (i32, i32) {
    %c0_i32 = arith.constant 0 : i32
    %c0_i32_0 = arith.constant 0 : i32
    %c0_i32_1 = arith.constant 0 : i32
    return %c0_i32, %c0_i32_0 : i32, i32
  }
  func.func @transform_8(%arg0: i32, %arg1: i32) -> (i32, i32) {
    %c0_i32 = arith.constant 0 : i32
    %c0_i32_0 = arith.constant 0 : i32
    %c0_i32_1 = arith.constant 0 : i32
    return %c0_i32, %c0_i32_0 : i32, i32
  }
  func.func @transform_9(%arg0: i32, %arg1: i32) -> (i32, i32, i32, i32) {
    %c1_i32 = arith.constant 1 : i32
    %0 = arith.addi %arg1, %c1_i32 : i32
    %c0_i32 = arith.constant 0 : i32
    %c0_i32_0 = arith.constant 0 : i32
    %c0_i32_1 = arith.constant 0 : i32
    return %arg0, %0, %c0_i32, %c0_i32_0 : i32, i32, i32, i32
  }
}

module attributes {stable_mosaic.version = 11 : i64} {
  func.func @_bottleneck_kernel(%arg0: i32, %arg1: i32, %arg2: memref<2x16x8x512xbf16, #tpu.memory_space<any>>, %arg3: memref<512x128xbf16, #tpu.memory_space<vmem>>, %arg4: memref<1x128xf32, #tpu.memory_space<vmem>>, %arg5: memref<1152x128xbf16, #tpu.memory_space<vmem>>, %arg6: memref<1x128xf32, #tpu.memory_space<vmem>>, %arg7: memref<128x512xbf16, #tpu.memory_space<vmem>>, %arg8: memref<1x512xf32, #tpu.memory_space<vmem>>, %arg9: memref<1x4x8x512xbf16, #tpu.memory_space<vmem>>, %arg10: memref<6x8x512xbf16, #tpu.memory_space<vmem>>, %arg11: memref<6x10x128xbf16, #tpu.memory_space<vmem>>, %arg12: memref<!tpu.dma_semaphore, #tpu.memory_space<semaphore_mem>>) attributes {dimension_semantics = [#tpu.dimension_semantics<parallel>, #tpu.dimension_semantics<parallel>], iteration_bounds = array<i64: 2, 2>, scalar_prefetch = 0 : i64, scratch_operands = 3 : i64, tpu.core_type = #tpu.core_type<tc>, window_params = [{}, {pipeline_mode = #tpu.pipeline_mode<synchronous>, transform_indices = @transform_1, window_bounds = array<i64: 512, 128>}, {pipeline_mode = #tpu.pipeline_mode<synchronous>, transform_indices = @transform_2, window_bounds = array<i64: 1, 128>}, {pipeline_mode = #tpu.pipeline_mode<synchronous>, transform_indices = @transform_3, window_bounds = array<i64: 1152, 128>}, {pipeline_mode = #tpu.pipeline_mode<synchronous>, transform_indices = @transform_4, window_bounds = array<i64: 1, 128>}, {pipeline_mode = #tpu.pipeline_mode<synchronous>, transform_indices = @transform_5, window_bounds = array<i64: 128, 512>}, {pipeline_mode = #tpu.pipeline_mode<synchronous>, transform_indices = @transform_6, window_bounds = array<i64: 1, 512>}, {transform_indices = @transform_7, window_bounds = array<i64: 1, 4, 8, 512>}]} {
    %c1_i32 = arith.constant 1 : i32
    %0 = arith.addi %arg1, %c1_i32 : i32
    %c4_i32 = arith.constant 4 : i32
    %1 = arith.muli %c4_i32, %0 : i32
    %c1_i32_0 = arith.constant 1 : i32
    %2 = arith.subi %1, %c1_i32_0 : i32
    %c0_i32 = arith.constant 0 : i32
    %c0_i32_1 = arith.constant 0 : i32
    %3 = tpu.memref_slice %arg2[%arg0, %2, %c0_i32, %c0_i32_1] : memref<2x16x8x512xbf16, #tpu.memory_space<any>> -> memref<1x6x8x512xbf16, #tpu.memory_space<any>>
    %4 = tpu.memref_squeeze %3 : memref<1x6x8x512xbf16, #tpu.memory_space<any>> -> memref<6x8x512xbf16, #tpu.memory_space<any>>
    tpu.enqueue_dma source(%4 : memref<6x8x512xbf16, #tpu.memory_space<any>>) target(%arg10 : memref<6x8x512xbf16, #tpu.memory_space<vmem>>) target_semaphore(%arg12 : memref<!tpu.dma_semaphore, #tpu.memory_space<semaphore_mem>>)
    %c0_i32_2 = arith.constant 0 : i32
    %c0_i32_3 = arith.constant 0 : i32
    %5 = tpu.memref_slice %arg2[%arg0, %2, %c0_i32_2, %c0_i32_3] : memref<2x16x8x512xbf16, #tpu.memory_space<any>> -> memref<1x6x8x512xbf16, #tpu.memory_space<any>>
    %6 = tpu.memref_squeeze %5 : memref<1x6x8x512xbf16, #tpu.memory_space<any>> -> memref<6x8x512xbf16, #tpu.memory_space<any>>
    tpu.wait_dma2 semaphore(%arg12 : memref<!tpu.dma_semaphore, #tpu.memory_space<semaphore_mem>>) src(%6 : memref<6x8x512xbf16, #tpu.memory_space<any>>) dst(%arg10 : memref<6x8x512xbf16, #tpu.memory_space<vmem>>)
    %c0 = arith.constant 0 : index
    %c0_4 = arith.constant 0 : index
    %c0_5 = arith.constant 0 : index
    %7 = vector.load %arg10[%c0, %c0_4, %c0_5] : memref<6x8x512xbf16, #tpu.memory_space<vmem>>, vector<6x8x512xbf16>
    %8 = vector.shape_cast %7 : vector<6x8x512xbf16> to vector<48x512xbf16>
    %c0_6 = arith.constant 0 : index
    %c0_7 = arith.constant 0 : index
    %9 = vector.load %arg3[%c0_6, %c0_7] : memref<512x128xbf16, #tpu.memory_space<vmem>>, vector<512x128xbf16>
    %cst = arith.constant dense<0.000000e+00> : vector<48x128xf32>
    %10 = tpu.matmul %8, %9, %cst {dimension_numbers = #tpu.dot_dimension_numbers<[1], [0], [0], [1], [0, 0, 1, 1], [], []>} : vector<48x512xbf16>, vector<512x128xbf16>, vector<48x128xf32> -> vector<48x128xf32>
    %c0_8 = arith.constant 0 : index
    %c0_9 = arith.constant 0 : index
    %11 = vector.load %arg4[%c0_8, %c0_9] : memref<1x128xf32, #tpu.memory_space<vmem>>, vector<1x128xf32>
    %12 = vector.broadcast %11 : vector<1x128xf32> to vector<48x128xf32>
    %13 = arith.addf %10, %12 : vector<48x128xf32>
    %cst_10 = arith.constant 0.000000e+00 : f32
    %14 = vector.broadcast %cst_10 : f32 to vector<48x128xf32>
    %15 = arith.maximumf %13, %14 : vector<48x128xf32>
    %16 = arith.truncf %15 : vector<48x128xf32> to vector<48x128xbf16>
    %cst_11 = arith.constant 0.000000e+00 : bf16
    %17 = vector.broadcast %cst_11 : bf16 to vector<6x10x128xbf16>
    %c0_12 = arith.constant 0 : index
    %c0_13 = arith.constant 0 : index
    %c0_14 = arith.constant 0 : index
    %18 = vector.load %arg11[%c0_12, %c0_13, %c0_14] : memref<6x10x128xbf16, #tpu.memory_space<vmem>>, vector<6x10x128xbf16>
    tpu.vector_store %arg11[%c0_12, %c0_13, %c0_14], %17 {strides = array<i32>} : memref<6x10x128xbf16, #tpu.memory_space<vmem>>, vector<6x10x128xbf16>,
    %19 = vector.shape_cast %16 : vector<48x128xbf16> to vector<6x8x128xbf16>
    %c0_15 = arith.constant 0 : index
    %c1 = arith.constant 1 : index
    %c0_16 = arith.constant 0 : index
    %20 = vector.load %arg11[%c0_15, %c1, %c0_16] : memref<6x10x128xbf16, #tpu.memory_space<vmem>>, vector<6x8x128xbf16>
    tpu.vector_store %arg11[%c0_15, %c1, %c0_16], %19 {strides = array<i32>} : memref<6x10x128xbf16, #tpu.memory_space<vmem>>, vector<6x8x128xbf16>,
    %c0_i32_17 = arith.constant 0 : i32
    %21 = arith.cmpi eq, %arg1, %c0_i32_17 : i32
    %22 = arith.extui %21 : i1 to i32
    %c0_i32_18 = arith.constant 0 : i32
    %23 = arith.cmpi ne, %22, %c0_i32_18 : i32
    scf.if %23 {
      %cst_66 = arith.constant 0.000000e+00 : bf16
      %60 = vector.broadcast %cst_66 : bf16 to vector<10x128xbf16>
      %c0_67 = arith.constant 0 : index
      %c0_68 = arith.constant 0 : index
      %c0_69 = arith.constant 0 : index
      %61 = vector.load %arg11[%c0_67, %c0_68, %c0_69] : memref<6x10x128xbf16, #tpu.memory_space<vmem>>, vector<1x10x128xbf16>
      %62 = vector.shape_cast %61 : vector<1x10x128xbf16> to vector<10x128xbf16>
      %63 = vector.shape_cast %60 : vector<10x128xbf16> to vector<1x10x128xbf16>
      tpu.vector_store %arg11[%c0_67, %c0_68, %c0_69], %63 {strides = array<i32>} : memref<6x10x128xbf16, #tpu.memory_space<vmem>>, vector<1x10x128xbf16>,
    } else {
    }
    %c1_i32_19 = arith.constant 1 : i32
    %24 = arith.cmpi eq, %arg1, %c1_i32_19 : i32
    %25 = arith.extui %24 : i1 to i32
    %c0_i32_20 = arith.constant 0 : i32
    %26 = arith.cmpi ne, %25, %c0_i32_20 : i32
    scf.if %26 {
      %cst_66 = arith.constant 0.000000e+00 : bf16
      %60 = vector.broadcast %cst_66 : bf16 to vector<10x128xbf16>
      %c5 = arith.constant 5 : index
      %c0_67 = arith.constant 0 : index
      %c0_68 = arith.constant 0 : index
      %61 = vector.load %arg11[%c5, %c0_67, %c0_68] : memref<6x10x128xbf16, #tpu.memory_space<vmem>>, vector<1x10x128xbf16>
      %62 = vector.shape_cast %61 : vector<1x10x128xbf16> to vector<10x128xbf16>
      %63 = vector.shape_cast %60 : vector<10x128xbf16> to vector<1x10x128xbf16>
      tpu.vector_store %arg11[%c5, %c0_67, %c0_68], %63 {strides = array<i32>} : memref<6x10x128xbf16, #tpu.memory_space<vmem>>, vector<1x10x128xbf16>,
    } else {
    }
    %c0_21 = arith.constant 0 : index
    %c0_22 = arith.constant 0 : index
    %c0_23 = arith.constant 0 : index
    %27 = vector.load %arg11[%c0_21, %c0_22, %c0_23] : memref<6x10x128xbf16, #tpu.memory_space<vmem>>, vector<4x8x128xbf16>
    %c0_24 = arith.constant 0 : index
    %c1_25 = arith.constant 1 : index
    %c0_26 = arith.constant 0 : index
    %28 = vector.load %arg11[%c0_24, %c1_25, %c0_26] : memref<6x10x128xbf16, #tpu.memory_space<vmem>>, vector<4x8x128xbf16>
    %c0_27 = arith.constant 0 : index
    %c2 = arith.constant 2 : index
    %c0_28 = arith.constant 0 : index
    %29 = vector.load %arg11[%c0_27, %c2, %c0_28] : memref<6x10x128xbf16, #tpu.memory_space<vmem>>, vector<4x8x128xbf16>
    %c1_29 = arith.constant 1 : index
    %c0_30 = arith.constant 0 : index
    %c0_31 = arith.constant 0 : index
    %30 = vector.load %arg11[%c1_29, %c0_30, %c0_31] : memref<6x10x128xbf16, #tpu.memory_space<vmem>>, vector<4x8x128xbf16>
    %c1_32 = arith.constant 1 : index
    %c1_33 = arith.constant 1 : index
    %c0_34 = arith.constant 0 : index
    %31 = vector.load %arg11[%c1_32, %c1_33, %c0_34] : memref<6x10x128xbf16, #tpu.memory_space<vmem>>, vector<4x8x128xbf16>
    %c1_35 = arith.constant 1 : index
    %c2_36 = arith.constant 2 : index
    %c0_37 = arith.constant 0 : index
    %32 = vector.load %arg11[%c1_35, %c2_36, %c0_37] : memref<6x10x128xbf16, #tpu.memory_space<vmem>>, vector<4x8x128xbf16>
    %c2_38 = arith.constant 2 : index
    %c0_39 = arith.constant 0 : index
    %c0_40 = arith.constant 0 : index
    %33 = vector.load %arg11[%c2_38, %c0_39, %c0_40] : memref<6x10x128xbf16, #tpu.memory_space<vmem>>, vector<4x8x128xbf16>
    %c2_41 = arith.constant 2 : index
    %c1_42 = arith.constant 1 : index
    %c0_43 = arith.constant 0 : index
    %34 = vector.load %arg11[%c2_41, %c1_42, %c0_43] : memref<6x10x128xbf16, #tpu.memory_space<vmem>>, vector<4x8x128xbf16>
    %c2_44 = arith.constant 2 : index
    %c2_45 = arith.constant 2 : index
    %c0_46 = arith.constant 0 : index
    %35 = vector.load %arg11[%c2_44, %c2_45, %c0_46] : memref<6x10x128xbf16, #tpu.memory_space<vmem>>, vector<4x8x128xbf16>
    %36 = tpu.concatenate %27, %28, %29, %30, %31, %32, %33, %34, %35 in 2 : vector<4x8x128xbf16>, vector<4x8x128xbf16>, vector<4x8x128xbf16>, vector<4x8x128xbf16>, vector<4x8x128xbf16>, vector<4x8x128xbf16>, vector<4x8x128xbf16>, vector<4x8x128xbf16>, vector<4x8x128xbf16> -> vector<4x8x1152xbf16>
    %37 = vector.shape_cast %36 : vector<4x8x1152xbf16> to vector<32x1152xbf16>
    %c0_47 = arith.constant 0 : index
    %c0_48 = arith.constant 0 : index
    %38 = vector.load %arg5[%c0_47, %c0_48] : memref<1152x128xbf16, #tpu.memory_space<vmem>>, vector<1152x128xbf16>
    %cst_49 = arith.constant dense<0.000000e+00> : vector<32x128xf32>
    %39 = tpu.matmul %37, %38, %cst_49 {dimension_numbers = #tpu.dot_dimension_numbers<[1], [0], [0], [1], [0, 0, 1, 1], [], []>} : vector<32x1152xbf16>, vector<1152x128xbf16>, vector<32x128xf32> -> vector<32x128xf32>
    %c0_50 = arith.constant 0 : index
    %c0_51 = arith.constant 0 : index
    %40 = vector.load %arg6[%c0_50, %c0_51] : memref<1x128xf32, #tpu.memory_space<vmem>>, vector<1x128xf32>
    %41 = vector.broadcast %40 : vector<1x128xf32> to vector<32x128xf32>
    %42 = arith.addf %39, %41 : vector<32x128xf32>
    %cst_52 = arith.constant 0.000000e+00 : f32
    %43 = vector.broadcast %cst_52 : f32 to vector<32x128xf32>
    %44 = arith.maximumf %42, %43 : vector<32x128xf32>
    %45 = arith.truncf %44 : vector<32x128xf32> to vector<32x128xbf16>
    %c0_53 = arith.constant 0 : index
    %c0_54 = arith.constant 0 : index
    %46 = vector.load %arg7[%c0_53, %c0_54] : memref<128x512xbf16, #tpu.memory_space<vmem>>, vector<128x512xbf16>
    %cst_55 = arith.constant dense<0.000000e+00> : vector<32x512xf32>
    %47 = tpu.matmul %45, %46, %cst_55 {dimension_numbers = #tpu.dot_dimension_numbers<[1], [0], [0], [1], [0, 0, 1, 1], [], []>} : vector<32x128xbf16>, vector<128x512xbf16>, vector<32x512xf32> -> vector<32x512xf32>
    %c0_56 = arith.constant 0 : index
    %c0_57 = arith.constant 0 : index
    %48 = vector.load %arg8[%c0_56, %c0_57] : memref<1x512xf32, #tpu.memory_space<vmem>>, vector<1x512xf32>
    %49 = vector.broadcast %48 : vector<1x512xf32> to vector<32x512xf32>
    %50 = arith.addf %47, %49 : vector<32x512xf32>
    %c1_58 = arith.constant 1 : index
    %c0_59 = arith.constant 0 : index
    %c0_60 = arith.constant 0 : index
    %51 = vector.load %arg10[%c1_58, %c0_59, %c0_60] : memref<6x8x512xbf16, #tpu.memory_space<vmem>>, vector<4x8x512xbf16>
    %52 = vector.shape_cast %51 : vector<4x8x512xbf16> to vector<32x512xbf16>
    %53 = arith.extf %52 : vector<32x512xbf16> to vector<32x512xf32>
    %54 = arith.addf %50, %53 : vector<32x512xf32>
    %cst_61 = arith.constant 0.000000e+00 : f32
    %55 = vector.broadcast %cst_61 : f32 to vector<32x512xf32>
    %56 = arith.maximumf %54, %55 : vector<32x512xf32>
    %57 = arith.truncf %56 : vector<32x512xf32> to vector<32x512xbf16>
    %58 = vector.shape_cast %57 : vector<32x512xbf16> to vector<1x4x8x512xbf16>
    %c0_62 = arith.constant 0 : index
    %c0_63 = arith.constant 0 : index
    %c0_64 = arith.constant 0 : index
    %c0_65 = arith.constant 0 : index
    %59 = vector.load %arg9[%c0_62, %c0_63, %c0_64, %c0_65] : memref<1x4x8x512xbf16, #tpu.memory_space<vmem>>, vector<1x4x8x512xbf16>
    tpu.vector_store %arg9[%c0_62, %c0_63, %c0_64, %c0_65], %58 {strides = array<i32>} : memref<1x4x8x512xbf16, #tpu.memory_space<vmem>>, vector<1x4x8x512xbf16>,
    return
  }
  func.func @transform_1(%arg0: i32, %arg1: i32) -> (i32, i32) {
    %c0_i32 = arith.constant 0 : i32
    %c0_i32_0 = arith.constant 0 : i32
    %c0_i32_1 = arith.constant 0 : i32
    return %c0_i32, %c0_i32_0 : i32, i32
  }
  func.func @transform_2(%arg0: i32, %arg1: i32) -> (i32, i32) {
    %c0_i32 = arith.constant 0 : i32
    %c0_i32_0 = arith.constant 0 : i32
    %c0_i32_1 = arith.constant 0 : i32
    return %c0_i32, %c0_i32_0 : i32, i32
  }
  func.func @transform_3(%arg0: i32, %arg1: i32) -> (i32, i32) {
    %c0_i32 = arith.constant 0 : i32
    %c0_i32_0 = arith.constant 0 : i32
    %c0_i32_1 = arith.constant 0 : i32
    return %c0_i32, %c0_i32_0 : i32, i32
  }
  func.func @transform_4(%arg0: i32, %arg1: i32) -> (i32, i32) {
    %c0_i32 = arith.constant 0 : i32
    %c0_i32_0 = arith.constant 0 : i32
    %c0_i32_1 = arith.constant 0 : i32
    return %c0_i32, %c0_i32_0 : i32, i32
  }
  func.func @transform_5(%arg0: i32, %arg1: i32) -> (i32, i32) {
    %c0_i32 = arith.constant 0 : i32
    %c0_i32_0 = arith.constant 0 : i32
    %c0_i32_1 = arith.constant 0 : i32
    return %c0_i32, %c0_i32_0 : i32, i32
  }
  func.func @transform_6(%arg0: i32, %arg1: i32) -> (i32, i32) {
    %c0_i32 = arith.constant 0 : i32
    %c0_i32_0 = arith.constant 0 : i32
    %c0_i32_1 = arith.constant 0 : i32
    return %c0_i32, %c0_i32_0 : i32, i32
  }
  func.func @transform_7(%arg0: i32, %arg1: i32) -> (i32, i32, i32, i32) {
    %c0_i32 = arith.constant 0 : i32
    %c0_i32_0 = arith.constant 0 : i32
    %c0_i32_1 = arith.constant 0 : i32
    return %arg0, %arg1, %c0_i32, %c0_i32_0 : i32, i32, i32, i32
  }
}

module attributes {stable_mosaic.version = 11 : i64} {
  func.func @_bottleneck_kernel(%arg0: i32, %arg1: i32, %arg2: memref<2x16x8x512xbf16, #tpu.memory_space<any>>, %arg3: memref<512x128xbf16, #tpu.memory_space<vmem>>, %arg4: memref<1x128xf32, #tpu.memory_space<vmem>>, %arg5: memref<1152x128xbf16, #tpu.memory_space<vmem>>, %arg6: memref<1x128xf32, #tpu.memory_space<vmem>>, %arg7: memref<128x512xbf16, #tpu.memory_space<vmem>>, %arg8: memref<1x512xf32, #tpu.memory_space<vmem>>, %arg9: memref<1x4x8x512xbf16, #tpu.memory_space<vmem>>, %arg10: memref<6x8x512xbf16, #tpu.memory_space<vmem>>, %arg11: memref<6x10x128xbf16, #tpu.memory_space<vmem>>, %arg12: memref<!tpu.dma_semaphore, #tpu.memory_space<semaphore_mem>>) attributes {dimension_semantics = [#tpu.dimension_semantics<parallel>, #tpu.dimension_semantics<parallel>], iteration_bounds = array<i64: 2, 2>, scalar_prefetch = 0 : i64, scratch_operands = 3 : i64, tpu.core_type = #tpu.core_type<tc>, window_params = [{}, {pipeline_mode = #tpu.pipeline_mode<synchronous>, transform_indices = @transform_1, window_bounds = array<i64: 512, 128>}, {pipeline_mode = #tpu.pipeline_mode<synchronous>, transform_indices = @transform_2, window_bounds = array<i64: 1, 128>}, {pipeline_mode = #tpu.pipeline_mode<synchronous>, transform_indices = @transform_3, window_bounds = array<i64: 1152, 128>}, {pipeline_mode = #tpu.pipeline_mode<synchronous>, transform_indices = @transform_4, window_bounds = array<i64: 1, 128>}, {pipeline_mode = #tpu.pipeline_mode<synchronous>, transform_indices = @transform_5, window_bounds = array<i64: 128, 512>}, {pipeline_mode = #tpu.pipeline_mode<synchronous>, transform_indices = @transform_6, window_bounds = array<i64: 1, 512>}, {transform_indices = @transform_7, window_bounds = array<i64: 1, 4, 8, 512>}]} {
    %c1_i32 = arith.constant 1 : i32
    %0 = arith.addi %arg1, %c1_i32 : i32
    %c4_i32 = arith.constant 4 : i32
    %1 = arith.muli %c4_i32, %0 : i32
    %c1_i32_0 = arith.constant 1 : i32
    %2 = arith.subi %1, %c1_i32_0 : i32
    %c0_i32 = arith.constant 0 : i32
    %c0_i32_1 = arith.constant 0 : i32
    %3 = tpu.memref_slice %arg2[%arg0, %2, %c0_i32, %c0_i32_1] : memref<2x16x8x512xbf16, #tpu.memory_space<any>> -> memref<1x6x8x512xbf16, #tpu.memory_space<any>>
    %4 = tpu.memref_squeeze %3 : memref<1x6x8x512xbf16, #tpu.memory_space<any>> -> memref<6x8x512xbf16, #tpu.memory_space<any>>
    tpu.enqueue_dma source(%4 : memref<6x8x512xbf16, #tpu.memory_space<any>>) target(%arg10 : memref<6x8x512xbf16, #tpu.memory_space<vmem>>) target_semaphore(%arg12 : memref<!tpu.dma_semaphore, #tpu.memory_space<semaphore_mem>>)
    %c0_i32_2 = arith.constant 0 : i32
    %c0_i32_3 = arith.constant 0 : i32
    %5 = tpu.memref_slice %arg2[%arg0, %2, %c0_i32_2, %c0_i32_3] : memref<2x16x8x512xbf16, #tpu.memory_space<any>> -> memref<1x6x8x512xbf16, #tpu.memory_space<any>>
    %6 = tpu.memref_squeeze %5 : memref<1x6x8x512xbf16, #tpu.memory_space<any>> -> memref<6x8x512xbf16, #tpu.memory_space<any>>
    tpu.wait_dma2 semaphore(%arg12 : memref<!tpu.dma_semaphore, #tpu.memory_space<semaphore_mem>>) src(%6 : memref<6x8x512xbf16, #tpu.memory_space<any>>) dst(%arg10 : memref<6x8x512xbf16, #tpu.memory_space<vmem>>)
    %c0 = arith.constant 0 : index
    %c0_4 = arith.constant 0 : index
    %c0_5 = arith.constant 0 : index
    %7 = vector.load %arg10[%c0, %c0_4, %c0_5] : memref<6x8x512xbf16, #tpu.memory_space<vmem>>, vector<6x8x512xbf16>
    %8 = vector.shape_cast %7 : vector<6x8x512xbf16> to vector<48x512xbf16>
    %c0_6 = arith.constant 0 : index
    %c0_7 = arith.constant 0 : index
    %9 = vector.load %arg3[%c0_6, %c0_7] : memref<512x128xbf16, #tpu.memory_space<vmem>>, vector<512x128xbf16>
    %cst = arith.constant dense<0.000000e+00> : vector<48x128xf32>
    %10 = tpu.matmul %8, %9, %cst {dimension_numbers = #tpu.dot_dimension_numbers<[1], [0], [0], [1], [0, 0, 1, 1], [], []>} : vector<48x512xbf16>, vector<512x128xbf16>, vector<48x128xf32> -> vector<48x128xf32>
    %c0_8 = arith.constant 0 : index
    %c0_9 = arith.constant 0 : index
    %11 = vector.load %arg4[%c0_8, %c0_9] : memref<1x128xf32, #tpu.memory_space<vmem>>, vector<1x128xf32>
    %12 = vector.broadcast %11 : vector<1x128xf32> to vector<48x128xf32>
    %13 = arith.addf %10, %12 : vector<48x128xf32>
    %cst_10 = arith.constant 0.000000e+00 : f32
    %14 = vector.broadcast %cst_10 : f32 to vector<48x128xf32>
    %15 = arith.maximumf %13, %14 : vector<48x128xf32>
    %16 = arith.truncf %15 : vector<48x128xf32> to vector<48x128xbf16>
    %cst_11 = arith.constant 0.000000e+00 : bf16
    %17 = vector.broadcast %cst_11 : bf16 to vector<6x10x128xbf16>
    %c0_12 = arith.constant 0 : index
    %c0_13 = arith.constant 0 : index
    %c0_14 = arith.constant 0 : index
    %18 = vector.load %arg11[%c0_12, %c0_13, %c0_14] : memref<6x10x128xbf16, #tpu.memory_space<vmem>>, vector<6x10x128xbf16>
    tpu.vector_store %arg11[%c0_12, %c0_13, %c0_14], %17 {strides = array<i32>} : memref<6x10x128xbf16, #tpu.memory_space<vmem>>, vector<6x10x128xbf16>,
    %19 = vector.shape_cast %16 : vector<48x128xbf16> to vector<6x8x128xbf16>
    %c0_15 = arith.constant 0 : index
    %c1 = arith.constant 1 : index
    %c0_16 = arith.constant 0 : index
    %20 = vector.load %arg11[%c0_15, %c1, %c0_16] : memref<6x10x128xbf16, #tpu.memory_space<vmem>>, vector<6x8x128xbf16>
    tpu.vector_store %arg11[%c0_15, %c1, %c0_16], %19 {strides = array<i32>} : memref<6x10x128xbf16, #tpu.memory_space<vmem>>, vector<6x8x128xbf16>,
    %c0_i32_17 = arith.constant 0 : i32
    %21 = arith.cmpi eq, %arg1, %c0_i32_17 : i32
    %22 = arith.extui %21 : i1 to i32
    %c0_i32_18 = arith.constant 0 : i32
    %23 = arith.cmpi ne, %22, %c0_i32_18 : i32
    scf.if %23 {
      %cst_66 = arith.constant 0.000000e+00 : bf16
      %60 = vector.broadcast %cst_66 : bf16 to vector<10x128xbf16>
      %c0_67 = arith.constant 0 : index
      %c0_68 = arith.constant 0 : index
      %c0_69 = arith.constant 0 : index
      %61 = vector.load %arg11[%c0_67, %c0_68, %c0_69] : memref<6x10x128xbf16, #tpu.memory_space<vmem>>, vector<1x10x128xbf16>
      %62 = vector.shape_cast %61 : vector<1x10x128xbf16> to vector<10x128xbf16>
      %63 = vector.shape_cast %60 : vector<10x128xbf16> to vector<1x10x128xbf16>
      tpu.vector_store %arg11[%c0_67, %c0_68, %c0_69], %63 {strides = array<i32>} : memref<6x10x128xbf16, #tpu.memory_space<vmem>>, vector<1x10x128xbf16>,
    } else {
    }
    %c1_i32_19 = arith.constant 1 : i32
    %24 = arith.cmpi eq, %arg1, %c1_i32_19 : i32
    %25 = arith.extui %24 : i1 to i32
    %c0_i32_20 = arith.constant 0 : i32
    %26 = arith.cmpi ne, %25, %c0_i32_20 : i32
    scf.if %26 {
      %cst_66 = arith.constant 0.000000e+00 : bf16
      %60 = vector.broadcast %cst_66 : bf16 to vector<10x128xbf16>
      %c5 = arith.constant 5 : index
      %c0_67 = arith.constant 0 : index
      %c0_68 = arith.constant 0 : index
      %61 = vector.load %arg11[%c5, %c0_67, %c0_68] : memref<6x10x128xbf16, #tpu.memory_space<vmem>>, vector<1x10x128xbf16>
      %62 = vector.shape_cast %61 : vector<1x10x128xbf16> to vector<10x128xbf16>
      %63 = vector.shape_cast %60 : vector<10x128xbf16> to vector<1x10x128xbf16>
      tpu.vector_store %arg11[%c5, %c0_67, %c0_68], %63 {strides = array<i32>} : memref<6x10x128xbf16, #tpu.memory_space<vmem>>, vector<1x10x128xbf16>,
    } else {
    }
    %c0_21 = arith.constant 0 : index
    %c0_22 = arith.constant 0 : index
    %c0_23 = arith.constant 0 : index
    %27 = vector.load %arg11[%c0_21, %c0_22, %c0_23] : memref<6x10x128xbf16, #tpu.memory_space<vmem>>, vector<4x8x128xbf16>
    %c0_24 = arith.constant 0 : index
    %c1_25 = arith.constant 1 : index
    %c0_26 = arith.constant 0 : index
    %28 = vector.load %arg11[%c0_24, %c1_25, %c0_26] : memref<6x10x128xbf16, #tpu.memory_space<vmem>>, vector<4x8x128xbf16>
    %c0_27 = arith.constant 0 : index
    %c2 = arith.constant 2 : index
    %c0_28 = arith.constant 0 : index
    %29 = vector.load %arg11[%c0_27, %c2, %c0_28] : memref<6x10x128xbf16, #tpu.memory_space<vmem>>, vector<4x8x128xbf16>
    %c1_29 = arith.constant 1 : index
    %c0_30 = arith.constant 0 : index
    %c0_31 = arith.constant 0 : index
    %30 = vector.load %arg11[%c1_29, %c0_30, %c0_31] : memref<6x10x128xbf16, #tpu.memory_space<vmem>>, vector<4x8x128xbf16>
    %c1_32 = arith.constant 1 : index
    %c1_33 = arith.constant 1 : index
    %c0_34 = arith.constant 0 : index
    %31 = vector.load %arg11[%c1_32, %c1_33, %c0_34] : memref<6x10x128xbf16, #tpu.memory_space<vmem>>, vector<4x8x128xbf16>
    %c1_35 = arith.constant 1 : index
    %c2_36 = arith.constant 2 : index
    %c0_37 = arith.constant 0 : index
    %32 = vector.load %arg11[%c1_35, %c2_36, %c0_37] : memref<6x10x128xbf16, #tpu.memory_space<vmem>>, vector<4x8x128xbf16>
    %c2_38 = arith.constant 2 : index
    %c0_39 = arith.constant 0 : index
    %c0_40 = arith.constant 0 : index
    %33 = vector.load %arg11[%c2_38, %c0_39, %c0_40] : memref<6x10x128xbf16, #tpu.memory_space<vmem>>, vector<4x8x128xbf16>
    %c2_41 = arith.constant 2 : index
    %c1_42 = arith.constant 1 : index
    %c0_43 = arith.constant 0 : index
    %34 = vector.load %arg11[%c2_41, %c1_42, %c0_43] : memref<6x10x128xbf16, #tpu.memory_space<vmem>>, vector<4x8x128xbf16>
    %c2_44 = arith.constant 2 : index
    %c2_45 = arith.constant 2 : index
    %c0_46 = arith.constant 0 : index
    %35 = vector.load %arg11[%c2_44, %c2_45, %c0_46] : memref<6x10x128xbf16, #tpu.memory_space<vmem>>, vector<4x8x128xbf16>
    %36 = tpu.concatenate %27, %28, %29, %30, %31, %32, %33, %34, %35 in 2 : vector<4x8x128xbf16>, vector<4x8x128xbf16>, vector<4x8x128xbf16>, vector<4x8x128xbf16>, vector<4x8x128xbf16>, vector<4x8x128xbf16>, vector<4x8x128xbf16>, vector<4x8x128xbf16>, vector<4x8x128xbf16> -> vector<4x8x1152xbf16>
    %37 = vector.shape_cast %36 : vector<4x8x1152xbf16> to vector<32x1152xbf16>
    %c0_47 = arith.constant 0 : index
    %c0_48 = arith.constant 0 : index
    %38 = vector.load %arg5[%c0_47, %c0_48] : memref<1152x128xbf16, #tpu.memory_space<vmem>>, vector<1152x128xbf16>
    %cst_49 = arith.constant dense<0.000000e+00> : vector<32x128xf32>
    %39 = tpu.matmul %37, %38, %cst_49 {dimension_numbers = #tpu.dot_dimension_numbers<[1], [0], [0], [1], [0, 0, 1, 1], [], []>} : vector<32x1152xbf16>, vector<1152x128xbf16>, vector<32x128xf32> -> vector<32x128xf32>
    %c0_50 = arith.constant 0 : index
    %c0_51 = arith.constant 0 : index
    %40 = vector.load %arg6[%c0_50, %c0_51] : memref<1x128xf32, #tpu.memory_space<vmem>>, vector<1x128xf32>
    %41 = vector.broadcast %40 : vector<1x128xf32> to vector<32x128xf32>
    %42 = arith.addf %39, %41 : vector<32x128xf32>
    %cst_52 = arith.constant 0.000000e+00 : f32
    %43 = vector.broadcast %cst_52 : f32 to vector<32x128xf32>
    %44 = arith.maximumf %42, %43 : vector<32x128xf32>
    %45 = arith.truncf %44 : vector<32x128xf32> to vector<32x128xbf16>
    %c0_53 = arith.constant 0 : index
    %c0_54 = arith.constant 0 : index
    %46 = vector.load %arg7[%c0_53, %c0_54] : memref<128x512xbf16, #tpu.memory_space<vmem>>, vector<128x512xbf16>
    %cst_55 = arith.constant dense<0.000000e+00> : vector<32x512xf32>
    %47 = tpu.matmul %45, %46, %cst_55 {dimension_numbers = #tpu.dot_dimension_numbers<[1], [0], [0], [1], [0, 0, 1, 1], [], []>} : vector<32x128xbf16>, vector<128x512xbf16>, vector<32x512xf32> -> vector<32x512xf32>
    %c0_56 = arith.constant 0 : index
    %c0_57 = arith.constant 0 : index
    %48 = vector.load %arg8[%c0_56, %c0_57] : memref<1x512xf32, #tpu.memory_space<vmem>>, vector<1x512xf32>
    %49 = vector.broadcast %48 : vector<1x512xf32> to vector<32x512xf32>
    %50 = arith.addf %47, %49 : vector<32x512xf32>
    %c1_58 = arith.constant 1 : index
    %c0_59 = arith.constant 0 : index
    %c0_60 = arith.constant 0 : index
    %51 = vector.load %arg10[%c1_58, %c0_59, %c0_60] : memref<6x8x512xbf16, #tpu.memory_space<vmem>>, vector<4x8x512xbf16>
    %52 = vector.shape_cast %51 : vector<4x8x512xbf16> to vector<32x512xbf16>
    %53 = arith.extf %52 : vector<32x512xbf16> to vector<32x512xf32>
    %54 = arith.addf %50, %53 : vector<32x512xf32>
    %cst_61 = arith.constant 0.000000e+00 : f32
    %55 = vector.broadcast %cst_61 : f32 to vector<32x512xf32>
    %56 = arith.maximumf %54, %55 : vector<32x512xf32>
    %57 = arith.truncf %56 : vector<32x512xf32> to vector<32x512xbf16>
    %58 = vector.shape_cast %57 : vector<32x512xbf16> to vector<1x4x8x512xbf16>
    %c0_62 = arith.constant 0 : index
    %c0_63 = arith.constant 0 : index
    %c0_64 = arith.constant 0 : index
    %c0_65 = arith.constant 0 : index
    %59 = vector.load %arg9[%c0_62, %c0_63, %c0_64, %c0_65] : memref<1x4x8x512xbf16, #tpu.memory_space<vmem>>, vector<1x4x8x512xbf16>
    tpu.vector_store %arg9[%c0_62, %c0_63, %c0_64, %c0_65], %58 {strides = array<i32>} : memref<1x4x8x512xbf16, #tpu.memory_space<vmem>>, vector<1x4x8x512xbf16>,
    return
  }
  func.func @transform_1(%arg0: i32, %arg1: i32) -> (i32, i32) {
    %c0_i32 = arith.constant 0 : i32
    %c0_i32_0 = arith.constant 0 : i32
    %c0_i32_1 = arith.constant 0 : i32
    return %c0_i32, %c0_i32_0 : i32, i32
  }
  func.func @transform_2(%arg0: i32, %arg1: i32) -> (i32, i32) {
    %c0_i32 = arith.constant 0 : i32
    %c0_i32_0 = arith.constant 0 : i32
    %c0_i32_1 = arith.constant 0 : i32
    return %c0_i32, %c0_i32_0 : i32, i32
  }
  func.func @transform_3(%arg0: i32, %arg1: i32) -> (i32, i32) {
    %c0_i32 = arith.constant 0 : i32
    %c0_i32_0 = arith.constant 0 : i32
    %c0_i32_1 = arith.constant 0 : i32
    return %c0_i32, %c0_i32_0 : i32, i32
  }
  func.func @transform_4(%arg0: i32, %arg1: i32) -> (i32, i32) {
    %c0_i32 = arith.constant 0 : i32
    %c0_i32_0 = arith.constant 0 : i32
    %c0_i32_1 = arith.constant 0 : i32
    return %c0_i32, %c0_i32_0 : i32, i32
  }
  func.func @transform_5(%arg0: i32, %arg1: i32) -> (i32, i32) {
    %c0_i32 = arith.constant 0 : i32
    %c0_i32_0 = arith.constant 0 : i32
    %c0_i32_1 = arith.constant 0 : i32
    return %c0_i32, %c0_i32_0 : i32, i32
  }
  func.func @transform_6(%arg0: i32, %arg1: i32) -> (i32, i32) {
    %c0_i32 = arith.constant 0 : i32
    %c0_i32_0 = arith.constant 0 : i32
    %c0_i32_1 = arith.constant 0 : i32
    return %c0_i32, %c0_i32_0 : i32, i32
  }
  func.func @transform_7(%arg0: i32, %arg1: i32) -> (i32, i32, i32, i32) {
    %c1_i32 = arith.constant 1 : i32
    %0 = arith.addi %arg1, %c1_i32 : i32
    %c0_i32 = arith.constant 0 : i32
    %c0_i32_0 = arith.constant 0 : i32
    %c0_i32_1 = arith.constant 0 : i32
    return %arg0, %0, %c0_i32, %c0_i32_0 : i32, i32, i32, i32
  }
}

</mosaic_0001>

<bundles_post_ra>
// kernel: layer3_forward_pallas.7
= control target key start
LH: loop header
LB: loop body
LE: loop exit
PB: predicated region body
PF: predicated region fallthrough
CT: control target
= control target key end

     0   :  { %s3385_s24 = smov 0   ;;  %s3387_s25 = smov 0   ;;  %s4033_s0 = inlined_call_operand.vmem [shape: bf16[2,16,8,512], index: 0, kind: input, shape index: {}]   ;;  %s4034_s1 = inlined_call_operand.vmem [shape: bf16[512,128], index: 1, kind: input, shape index: {}]   ;;  %s4035_s2 = inlined_call_operand.vmem [shape: f32[1,128], index: 2, kind: input, shape index: {}]   ;;  %s4036_s3 = inlined_call_operand.vmem [shape: bf16[1152,128], index: 3, kind: input, shape index: {}]   ;;  %s4037_s4 = inlined_call_operand.vmem [shape: f32[1,128], index: 4, kind: input, shape index: {}]   ;;  %s4038_s5 = inlined_call_operand.vmem [shape: bf16[128,512], index: 5, kind: input, shape index: {}]   ;;  %s4039_s6 = inlined_call_operand.vmem [shape: f32[1,512], index: 6, kind: input, shape index: {}]   ;;  %s4040_s7 = inlined_call_operand.vmem [shape: bf16[2,8,8,512], index: 7, kind: output, shape index: {}]  }
   0x1   :  { %s3389_s26 = smov 0   ;;  %s3391_s27 = smov 0  }
   0x2   :  { %s3393_s28 = smov 0  }
   0x3 LB: > { %s26_s29 = sadd.s32 1, %s3332_s26  ;;  %s29_s30 = sadd.s32 1, %s3336_s27  ;;  %s3340_s28 = sphi %s3393_s28, %s17_s28   ;;  %s3336_s27 = sphi %s3391_s27, %s4052_s27   ;;  %s3332_s26 = sphi %s3389_s26, %s4051_s26   ;;  %s3328_s25 = sphi %s3387_s25, %s4050_s25   ;;  %s3324_s24 = sphi %s3385_s24, %s4049_s24  }
   0x4   : > { %p27_p0 = scmp.ge.s32.totalorder %s26_s29, 2  ;;  %p2594_p1 = scmp.ge.s32.totalorder %s3340_s28, 1 }
   0x5   : > { %p217_p2 = scmp.lt.s32.totalorder %s3340_s28, 5 }
   0x6   : > { %s4054_s29 = smov (%p27_p0, %s26_s29), 0  ;;  %s4056_s30 = smov (!%p27_p0, %s29_s30), %s3336_s27 }
   0x7   : > { %4041 = sst [smem:[#allocation7_spill]] %s4054_s29  ;;  %p218_p3 = pnand %p2594_p1, %p217_p2 }
   0x8   : > { %p31_p4 = scmp.ge.s32.totalorder %s4056_s30, 2  ;;  %s2595_s8 = sshll.u32 (!%p218_p3), %s3324_s24, 2 }
   0x9   : > { %221 = sbr.rel (%p218_p3) target bundleno = 848 (0x350), region = 44  ;;  %p248_p5 = scmp.lt.s32.totalorder (!%p218_p3), %s3328_s25, 1 }
   0xa   : > { %s4058_s30 = smov (%p31_p4, %s4056_s30), 0  ;;  %p250_p6 = scmp.lt.s32.totalorder (!%p218_p3), %s2595_s8, 7 }
   0xb   : > { %4042 = sst [smem:[#allocation8_spill]] %s4058_s30  ;;  %s2816_s9 = sadd.s32 (!%p218_p3), 4, %s2595_s8 }
   0xc   : > { %s2600_s12 = sadd.s32 (!%p218_p3), 4294967295, %s2816_s9  ;;  %s2602_s16 = sshll.u32 (!%p218_p3), %s3328_s25, 6 }
   0xd   : > { %s2601_s14 = sshll.u32 (!%p218_p3), %s2600_s12, 2 }
   0xe   : > { %s249_s10 = scalar_select %p248_p5, %s3328_s25, 1 }
   0xf   : > { %s4060_s8 = smov (!%p250_p6, %s2595_s8), 7  ;;  %s264_s18 = sadd.s32 %s2602_s16, %s2601_s14 }
  0x10   : > { %s2597_s11 = sshll.u32 %s249_s10, 5  ;;  %s2596_s13 = sshll.u32 %s4060_s8, 2 }
  0x11   : > { %s254_s15 = sadd.s32 %s2597_s11, %s2596_s13  ;;  %s2603_s22 = sshll.u32 %s264_s18, 2 }
  0x12   : > { %s2598_s17 = sshll.u32 %s254_s15, 2  ;;  %s266_s29 = scalar_lea.vmem %s4033_s0, %s2603_s22 }
  0x13   : > { %s3426_s21 = scalar_lea.vmem %s4040_s7, %s2598_s17  ;;  %v300_v0 = vld [vmem:[%s266_s29] sm:$0xff]  ;;  %v302_v1 = vld [vmem:[%s266_s29 + $0x8] sm:$0xff]  ;;  %v304_v2 = vld [vmem:[%s266_s29 + $0x10] sm:$0xff] }
  0x14   : > { %301 = vst [vmem:[#allocation2 + $0x30] sm:$0xff] %v300_v0  ;;  %303 = vst [vmem:[#allocation2] sm:$0xff] %v302_v1  ;;  %v306_v3 = vld [vmem:[%s266_s29 + $0x18] sm:$0xff]  ;;  %v308_v4 = vld [vmem:[%s266_s29 + $0x20] sm:$0xff] }
  0x15   : > { %305 = vst [vmem:[#allocation2 + $0x58] sm:$0xff] %v304_v2  ;;  %v310_v5 = vld [vmem:[%s266_s29 + $0x28] sm:$0xff]  ;;  %307 = vst [vmem:[#allocation2 + $0x18] sm:$0xff] %v306_v3  ;;  %v312_v6 = vld [vmem:[%s266_s29 + $0x30] sm:$0xff] }
  0x16   : > { %309 = vst [vmem:[#allocation2 + $0x50] sm:$0xff] %v308_v4  ;;  %311 = vst [vmem:[#allocation2 + $0x20] sm:$0xff] %v310_v5  ;;  %v314_v7 = vld [vmem:[%s266_s29 + $0x38] sm:$0xff]  ;;  %v316_v8 = vld [vmem:[%s266_s29 + $0x40] sm:$0xff] }
  0x17   : > { %313 = vst [vmem:[#allocation2 + $0x8] sm:$0xff] %v312_v6  ;;  %315 = vst [vmem:[#allocation2 + $0x38] sm:$0xff] %v314_v7  ;;  %v318_v9 = vld [vmem:[%s266_s29 + $0x48] sm:$0xff]  ;;  %v320_v10 = vld [vmem:[%s266_s29 + $0x50] sm:$0xff] }
  0x18   : > { %317 = vst [vmem:[#allocation2 + $0x28] sm:$0xff] %v316_v8  ;;  %v322_v11 = vld [vmem:[%s266_s29 + $0x58] sm:$0xff]  ;;  %319 = vst [vmem:[#allocation2 + $0x48] sm:$0xff] %v318_v9 }
  0x19   : > { %321 = vst [vmem:[#allocation2 + $0x10] sm:$0xff] %v320_v10  ;;  %323 = vst [vmem:[#allocation2 + $0x40] sm:$0xff] %v322_v11 }
  0x1a   : > { %331 = vsyncadd [#allocation4], 1536 }
  0x1b   : > { %3320 = dma.done.wait [#allocation4], 1536 }
  0x1c   : > { %3321 = vsyncadd [#allocation4], 4294965760  ;;  %v3100_v12 = vld [vmem:[%s4034_s1 + $0x78] sm:$0xff]   ;;  %v3104_v16 = vld [vmem:[%s4034_s1 + $0x70] sm:$0xff]   ;;  %v3342_v56 = vmov 0   ;;  %vm882_vm0 = vcmask 1043456  }
  0x1d   : > { %v3101_v13 = vld [vmem:[%s4034_s1 + $0xf8] sm:$0xff]   ;;  %2831 = vmatprep.subr.bf16.mxu0 %v3100_v12  ;;  %v3105_v17 = vld [vmem:[%s4034_s1 + $0xf0] sm:$0xff]   ;;  %v3108_v20 = vld [vmem:[%s4034_s1 + $0x68] sm:$0xff]   ;;  %795 = vst [vmem:[#allocation3] sm:$0xf] %v3342_v56  ;;  %vm888_vm2 = vcmask 1040384  }
  0x1e   : > { %v3102_v14 = vld [vmem:[%s4034_s1 + $0x38] sm:$0xff]   ;;  %2865 = vmatprep.subr.bf16.mxu1 %v3101_v13  ;;  %v3106_v18 = vld [vmem:[%s4034_s1 + $0x30] sm:$0xff]   ;;  %v3109_v21 = vld [vmem:[%s4034_s1 + $0xe8] sm:$0xff]   ;;  %796 = vst [vmem:[#allocation3 + $0x4] sm:$0x1] %v3342_v56  ;;  %p2655_p7 = scmp.ne.s32.totalorder %s3324_s24, 0 }
  0x1f   : > { %v3103_v15 = vld [vmem:[%s4034_s1 + $0xb8] sm:$0xff]   ;;  %2832 = vmatpush3.bf16.msra.mxu0 %v3102_v14  ;;  %v3107_v19 = vld [vmem:[%s4034_s1 + $0xb0] sm:$0xff]   ;;  %v3110_v22 = vld [vmem:[%s4034_s1 + $0x28] sm:$0xff]   ;;  %797 = vst [vmem:[#allocation3 + $0x8] sm:$0xf] %v3342_v56 }
  0x20   : > { %2866 = vmatpush3.bf16.msra.mxu1 %v3103_v15  ;;  %2833 = vmatprep.subr.bf16.mxu0 %v3104_v16  ;;  %v3111_v23 = vld [vmem:[%s4034_s1 + $0xa8] sm:$0xff]   ;;  %v3112_v24 = vld [vmem:[%s4034_s1 + $0x60] sm:$0xff]   ;;  %v3116_v28 = vld [vmem:[%s4034_s1 + $0x58] sm:$0xff]   ;;  %798 = vst [vmem:[#allocation3 + $0xc] sm:$0x1] %v3342_v56 }
  0x21   : > { %2867 = vmatprep.subr.bf16.mxu1 %v3105_v17  ;;  %v3113_v25 = vld [vmem:[%s4034_s1 + $0xe0] sm:$0xff]   ;;  %v3117_v29 = vld [vmem:[%s4034_s1 + $0xd8] sm:$0xff]   ;;  %v3120_v32 = vld [vmem:[%s4034_s1 + $0x50] sm:$0xff]   ;;  %799 = vst [vmem:[#allocation3 + $0x10] sm:$0xf] %v3342_v56 }
  0x22   : > { %v3114_v26 = vld [vmem:[%s4034_s1 + $0x20] sm:$0xff]   ;;  %v3118_v30 = vld [vmem:[%s4034_s1 + $0x18] sm:$0xff]   ;;  %v3121_v33 = vld [vmem:[%s4034_s1 + $0xd0] sm:$0xff]   ;;  %800 = vst [vmem:[#allocation3 + $0x14] sm:$0x1] %v3342_v56 }
  0x23   : > { %2834 = vmatpush3.bf16.msra.mxu0 %v3106_v18  ;;  %v3115_v27 = vld [vmem:[%s4034_s1 + $0xa0] sm:$0xff]   ;;  %v3119_v31 = vld [vmem:[%s4034_s1 + $0x98] sm:$0xff]   ;;  %v3122_v34 = vld [vmem:[%s4034_s1 + $0x10] sm:$0xff]   ;;  %801 = vst [vmem:[#allocation3 + $0x18] sm:$0xf] %v3342_v56 }
  0x24   : > { %2868 = vmatpush3.bf16.msra.mxu1 %v3107_v19  ;;  %2835 = vmatprep.subr.bf16.mxu0 %v3108_v20  ;;  %v3123_v35 = vld [vmem:[%s4034_s1 + $0x90] sm:$0xff]   ;;  %v3124_v36 = vld [vmem:[%s4034_s1 + $0x48] sm:$0xff]   ;;  %v3128_v40 = vld [vmem:[%s4034_s1 + $0x40] sm:$0xff]   ;;  %802 = vst [vmem:[#allocation3 + $0x1c] sm:$0x1] %v3342_v56 }
  0x25   : > { %2869 = vmatprep.subr.bf16.mxu1 %v3109_v21  ;;  %v3125_v37 = vld [vmem:[%s4034_s1 + $0xc8] sm:$0xff]   ;;  %v3129_v41 = vld [vmem:[%s4034_s1 + $0xc0] sm:$0xff]   ;;  %v3132_v44 = vld [vmem:[#allocation2 + $0x30] ss:$40 sps:$4 sm:$0xff]   ;;  %803 = vst [vmem:[#allocation3 + $0x20] sm:$0xf] %v3342_v56 }
  0x26   : > { %v3126_v38 = vld [vmem:[%s4034_s1 + $0x8] sm:$0xff]   ;;  %v3130_v42 = vld [vmem:[%s4034_s1] sm:$0xff]   ;;  %v3134_v45 = vld [vmem:[#allocation2 + $0x34] ss:$40 sps:$4 sm:$0xff]   ;;  %804 = vst [vmem:[#allocation3 + $0x24] sm:$0x1] %v3342_v56 }
  0x27   : > { %2836 = vmatpush3.bf16.msra.mxu0 %v3110_v22  ;;  %v3127_v39 = vld [vmem:[%s4034_s1 + $0x88] sm:$0xff]   ;;  %v3131_v43 = vld [vmem:[%s4034_s1 + $0x80] sm:$0xff]   ;;  %704 = vmatprep.mubr.bf16.mxu0 %v3134_v45  ;;  %805 = vst [vmem:[#allocation3 + $0x28] sm:$0xf] %v3342_v56  ;;  %806 = vst [vmem:[#allocation3 + $0x2c] sm:$0x1] %v3342_v56 }
  0x28   : > { %2870 = vmatpush3.bf16.msra.mxu1 %v3111_v23  ;;  %2837 = vmatprep.subr.bf16.mxu0 %v3112_v24  ;;  %v3135_v46 = vld [vmem:[#allocation2] ss:$24 sps:$4 sm:$0xff]   ;;  %v3137_v47 = vld [vmem:[#allocation2 + $0x4] ss:$24 sps:$4 sm:$0xff]   ;;  %v3138_v48 = vld [vmem:[#allocation2 + $0x54] ss:$-72 sps:$4 sm:$0xff]  }
  0x29   : > { %2871 = vmatprep.subr.bf16.mxu1 %v3113_v25  ;;  %761 = vmatprep.mubr.bf16.mxu1 %v3137_v47  ;;  %v3140_v49 = vld [vmem:[#allocation2 + $0x24] ss:$24 sps:$4 sm:$0xff]   ;;  %v3142_v50 = vld [vmem:[#allocation2 + $0x50] ss:$-72 sps:$4 sm:$0xff]   ;;  %v3143_v51 = vld [vmem:[#allocation2 + $0x20] ss:$24 sps:$4 sm:$0xff]  }
  0x2a   : > { %v3144_v52 = vld [vmem:[#allocation2 + $0x2c] ss:$-24 sps:$4 sm:$0xff]   ;;  %v3148_v54 = vld [vmem:[#allocation2 + $0x28] ss:$-24 sps:$4 sm:$0xff]   ;;  %v3542_v59 = vld [vmem:[%s4035_s2] ss:$0 sm:$0xff] }
  0x2b   : > { %2838 = vmatpush3.bf16.msra.mxu0 %v3114_v26  ;;  %v3146_v53 = vld [vmem:[#allocation2 + $0x4c] ss:$-8 sps:$4 sm:$0xff]   ;;  %v3149_v55 = vld [vmem:[#allocation2 + $0x48] ss:$-8 sps:$4 sm:$0xff]   ;;  %vm883_vm1 = vsmask.f32 7938 }
  0x2c   : > { %2872 = vmatpush3.bf16.msra.mxu1 %v3115_v27  ;;  %2839 = vmatprep.subr.bf16.mxu0 %v3116_v28  ;;  %vm889_vm3 = vsmask.f32 256  ;;  %vm3547_vm4 = vmand %vm882_vm0, %vm883_vm1 }
  0x2d   : > { %2873 = vmatprep.subr.bf16.mxu1 %v3117_v29  ;;  %vm3553_vm5 = vmand %vm888_vm2, %vm889_vm3 }
  0x2f   : > { %2840 = vmatpush3.bf16.msra.mxu0 %v3118_v30 }
  0x30   : > { %2874 = vmatpush3.bf16.msra.mxu1 %v3119_v31  ;;  %2841 = vmatprep.subr.bf16.mxu0 %v3120_v32  ;;  %v885_v31 = vld [vmem:[#allocation3] sm:$0xf] }
  0x31   : > { %2875 = vmatprep.subr.bf16.mxu1 %v3121_v33  ;;  %v891_v33 = vld [vmem:[#allocation3 + $0x4] sm:$0x1] }
  0x33   : > { %2842 = vmatpush3.bf16.msra.mxu0 %v3122_v34 }
  0x34   : > { %2876 = vmatpush3.bf16.msra.mxu1 %v3123_v35  ;;  %2843 = vmatprep.subr.bf16.mxu0 %v3124_v36 }
  0x35   : > { %2877 = vmatprep.subr.bf16.mxu1 %v3125_v37 }
  0x37   : > { %2844 = vmatpush3.bf16.msra.mxu0 %v3126_v38 }
  0x38   : > { %2878 = vmatpush3.bf16.msra.mxu1 %v3127_v39  ;;  %2845 = vmatprep.subr.bf16.mxu0 %v3128_v40 }
  0x39   : > { %2879 = vmatprep.subr.bf16.mxu1 %v3129_v41 }
  0x3b   : > { %2846 = vmatpush3.bf16.msra.mxu0 %v3130_v42 }
  0x3c   : > { %2880 = vmatpush3.bf16.msra.mxu1 %v3131_v43 }
  0x3e   : > { %705 = vmatmul.mubr.bf16.vlgmr.msra.gmra.mxu0 %v3132_v44 }
  0x3f   : > { %762 = vmatmul.mubr.bf16.vlgmr.msra.gmra.mxu1 %v3135_v46  ;;  %712 = vmatprep.mubr.bf16.mxu0 %v3138_v48 }
  0x40   : > { %769 = vmatprep.mubr.bf16.mxu1 %v3140_v49  ;;  %v894_v49 = vld [vmem:[#allocation3 + $0x8] sm:$0xf] }
  0x46   : > { %713 = vmatmul.mubr.bf16.gmra.mxu0 %v3142_v50  ;;  %v897_v50 = vld [vmem:[#allocation3 + $0xc] sm:$0x1] }
  0x47   : > { %770 = vmatmul.mubr.bf16.gmra.mxu1 %v3143_v51  ;;  %720 = vmatprep.mubr.bf16.mxu0 %v3144_v52 }
  0x48   : > { %777 = vmatprep.mubr.bf16.mxu1 %v3146_v53 }
  0x4e   : > { %721 = vmatmul.mubr.bf16.gmra.mxu0 %v3148_v54 }
  0x4f   : > { %778 = vmatmul.mubr.bf16.gmra.mxu1 %v3149_v55 }
  0xfe   : > { %v2847_v57 = vpop.f32.mrf.mxu0 }
  0xff   : > { %v2881_v58 = vpop.f32.mrf.mxu1 }
 0x100   : > { %v2848_v60 = vpop.f32.mrf.mxu0 }
 0x101   : > { %v2849_v61 = vadd.f32 %v2848_v60, %v2847_v57  ;;  %v2882_v62 = vpop.f32.mrf.mxu1 }
 0x102   : > { %v2850_v63 = vpop.f32.mrf.mxu0  ;;  %v2883_v1 = vadd.f32 %v2882_v62, %v2881_v58 }
 0x103   : > { %v707_v0 = vadd.f32 %v2849_v61, %v3542_v59  ;;  %v2884_v2 = vpop.f32.mrf.mxu1 }
 0x104   : > { %v2851_v3 = vpop.f32.mrf.mxu0 }
 0x105   : > { %v764_v4 = vadd.f32 %v2883_v1, %v707_v0  ;;  %v2852_v5 = vadd.f32 %v2851_v3, %v2850_v63  ;;  %v2885_v6 = vpop.f32.mrf.mxu1 }
 0x106   : > { %v2853_v7 = vpop.f32.mrf.mxu0  ;;  %v2886_v10 = vadd.f32 %v2885_v6, %v2884_v2 }
 0x107   : > { %v786_v8 = vmax.f32 %v764_v4, 0.0  ;;  %v710_v9 = vadd.f32 %v2852_v5, %v3542_v59  ;;  %v2887_v11 = vpop.f32.mrf.mxu1 }
 0x108   : > { %v2854_v12 = vpop.f32.mrf.mxu0 }
 0x109   : > { %v2817_v13 = vpack.c.bf16 %v786_v8, %v786_v8  ;;  %v767_v14 = vadd.f32 %v2886_v10, %v710_v9  ;;  %v2855_v15 = vadd.f32 %v2854_v12, %v2853_v7  ;;  %v2888_v16 = vpop.f32.mrf.mxu1  ;;  %v900_v8 = vld [vmem:[#allocation3 + $0x10] sm:$0xf]  ;;  %v903_v9 = vld [vmem:[#allocation3 + $0x14] sm:$0x1] }
 0x10a   : > { %v2856_v17 = vpop.f32.mrf.mxu0  ;;  %v2889_v21 = vadd.f32 %v2888_v16, %v2887_v11 }
 0x10b   : > { %v823_v18 = vshrl.u32 %v2817_v13, 16  ;;  %v787_v19 = vmax.f32 %v767_v14, 0.0  ;;  %v715_v20 = vadd.f32 %v2855_v15, %v3542_v59  ;;  %v2890_v22 = vpop.f32.mrf.mxu1  ;;  %v826_v23 = vshll.u32 %v2817_v13, 16 }
 0x10c   : > { %v2857_v24 = vpop.f32.mrf.mxu0 }
 0x10d   : > { %v825_v25 = vrot.slane %v823_v18, 7  ;;  %v2818_v27 = vpack.c.bf16 %v787_v19, %v787_v19  ;;  %v772_v28 = vadd.f32 %v2889_v21, %v715_v20  ;;  %v2858_v29 = vadd.f32 %v2857_v24, %v2856_v17  ;;  %v2891_v30 = vpop.f32.mrf.mxu1 }
 0x10e   : > { %v2859_v34 = vpop.f32.mrf.mxu0  ;;  %v2892_v42 = vadd.f32 %v2891_v30, %v2890_v22  ;;  %v906_v22 = vld [vmem:[#allocation3 + $0x18] sm:$0xf] }
 0x10f   : > { %v828_v35 = vor.u32 %v826_v23, %v825_v25  ;;  %v829_v36 = vrot.slane %v825_v25, 4  ;;  %v831_v37 = vshrl.u32 %v2818_v27, 16  ;;  %v2893_v38 = vpop.f32.mrf.mxu1  ;;  %v834_v39 = vshll.u32 %v2818_v27, 16  ;;  %v909_v23 = vld [vmem:[#allocation3 + $0x1c] sm:$0x1] }
 0x110   : > { %v788_v40 = vmax.f32 %v772_v28, 0.0  ;;  %v718_v41 = vadd.f32 %v2858_v29, %v3542_v59  ;;  %v2860_v43 = vpop.f32.mrf.mxu0 }
 0x111   : > { %v886_v44 = vsel %vm3547_vm4, %v828_v35, %v885_v31  ;;  %v892_v45 = vsel %vm3553_vm5, %v829_v36, %v891_v33  ;;  %v833_v46 = vrot.slane %v831_v37, 7  ;;  %v2861_v47 = vadd.f32 %v2860_v43, %v2859_v34  ;;  %v2894_v48 = vpop.f32.mrf.mxu1  ;;  %v912_v34 = vld [vmem:[#allocation3 + $0x20] sm:$0xf]  ;;  %v915_v35 = vld [vmem:[#allocation3 + $0x24] sm:$0x1] }
 0x112   : > { %887 = vst [vmem:[#allocation3] sm:$0xf] %v886_v44  ;;  %893 = vst [vmem:[#allocation3 + $0x4] sm:$0x1] %v892_v45  ;;  %v2819_v51 = vpack.c.bf16 %v788_v40, %v788_v40  ;;  %v775_v52 = vadd.f32 %v2892_v42, %v718_v41  ;;  %v2862_v53 = vpop.f32.mrf.mxu0  ;;  %v2895_v58 = vadd.f32 %v2894_v48, %v2893_v38  ;;  %v918_v43 = vld [vmem:[#allocation3 + $0x28] sm:$0xf] }
 0x113   : > { %v836_v54 = vor.u32 %v834_v39, %v833_v46  ;;  %v837_v55 = vrot.slane %v833_v46, 4  ;;  %v723_v57 = vadd.f32 %v2861_v47, %v3542_v59  ;;  %v2896_v60 = vpop.f32.mrf.mxu1  ;;  %v921_v44 = vld [vmem:[#allocation3 + $0x2c] sm:$0x1] }
 0x114   : > { %v839_v61 = vshrl.u32 %v2819_v51, 16  ;;  %v789_v62 = vmax.f32 %v775_v52, 0.0  ;;  %v2863_v63 = vpop.f32.mrf.mxu0  ;;  %v842_v6 = vshll.u32 %v2819_v51, 16 }
 0x115   : > { %v895_v0 = vsel %vm3547_vm4, %v836_v54, %v894_v49  ;;  %v898_v1 = vsel %vm3553_vm5, %v837_v55, %v897_v50  ;;  %v780_v2 = vadd.f32 %v2895_v58, %v723_v57  ;;  %v2864_v3 = vadd.f32 %v2863_v63, %v2862_v53  ;;  %v2897_v4 = vpop.f32.mrf.mxu1 }
 0x116   : > { %896 = vst [vmem:[#allocation3 + $0x8] sm:$0xf] %v895_v0  ;;  %899 = vst [vmem:[#allocation3 + $0xc] sm:$0x1] %v898_v1  ;;  %v841_v5 = vrot.slane %v839_v61, 7  ;;  %v2820_v7 = vpack.c.bf16 %v789_v62, %v789_v62  ;;  %v2898_v12 = vadd.f32 %v2897_v4, %v2896_v60 }
 0x117   : > { %v790_v10 = vmax.f32 %v780_v2, 0.0  ;;  %v726_v11 = vadd.f32 %v2864_v3, %v3542_v59 }
 0x118   : > { %v844_v13 = vor.u32 %v842_v6, %v841_v5  ;;  %v845_v14 = vrot.slane %v841_v5, 4  ;;  %v847_v15 = vshrl.u32 %v2820_v7, 16  ;;  %v850_v21 = vshll.u32 %v2820_v7, 16 }
 0x119   : > { %v2821_v16 = vpack.c.bf16 %v790_v10, %v790_v10  ;;  %v783_v17 = vadd.f32 %v2898_v12, %v726_v11 }
 0x11a   : > { %v901_v18 = vsel %vm3547_vm4, %v844_v13, %v900_v8  ;;  %v904_v19 = vsel %vm3553_vm5, %v845_v14, %v903_v9  ;;  %v849_v20 = vrot.slane %v847_v15, 7 }
 0x11b   : > { %902 = vst [vmem:[#allocation3 + $0x10] sm:$0xf] %v901_v18  ;;  %905 = vst [vmem:[#allocation3 + $0x14] sm:$0x1] %v904_v19  ;;  %v855_v24 = vshrl.u32 %v2821_v16, 16  ;;  %v791_v59 = vmax.f32 %v783_v17, 0.0 }
 0x11c   : > { %v852_v25 = vor.u32 %v850_v21, %v849_v20  ;;  %v853_v27 = vrot.slane %v849_v20, 4  ;;  %v858_v29 = vshll.u32 %v2821_v16, 16 }
 0x11d   : > { %v857_v28 = vrot.slane %v855_v24, 7  ;;  %v2822_v30 = vpack.c.bf16 %v791_v59, %v791_v59 }
 0x11e   : > { %v907_v31 = vsel %vm3547_vm4, %v852_v25, %v906_v22  ;;  %v910_v33 = vsel %vm3553_vm5, %v853_v27, %v909_v23 }
 0x11f   : > { %908 = vst [vmem:[#allocation3 + $0x18] sm:$0xf] %v907_v31  ;;  %911 = vst [vmem:[#allocation3 + $0x1c] sm:$0x1] %v910_v33  ;;  %v860_v36 = vor.u32 %v858_v29, %v857_v28  ;;  %v861_v37 = vrot.slane %v857_v28, 4  ;;  %v863_v38 = vshrl.u32 %v2822_v30, 16 }
 0x120   : > { %v866_v42 = vshll.u32 %v2822_v30, 16 }
 0x121   : > { %v913_v39 = vsel %vm3547_vm4, %v860_v36, %v912_v34  ;;  %v916_v40 = vsel %vm3553_vm5, %v861_v37, %v915_v35  ;;  %v865_v41 = vrot.slane %v863_v38, 7 }
 0x122   : > { %914 = vst [vmem:[#allocation3 + $0x20] sm:$0xf] %v913_v39  ;;  %917 = vst [vmem:[#allocation3 + $0x24] sm:$0x1] %v916_v40  ;;  %927 = sbr.rel (%p2655_p7) target bundleno = 297 (0x129), region = 82 }
 0x123   : > { %v868_v45 = vor.u32 %v866_v42, %v865_v41  ;;  %v869_v46 = vrot.slane %v865_v41, 4 }
 0x125   : > { %v919_v47 = vsel %vm3547_vm4, %v868_v45, %v918_v43  ;;  %v922_v48 = vsel %vm3553_vm5, %v869_v46, %v921_v44 }
 0x126   : > { %920 = vst [vmem:[#allocation3 + $0x28] sm:$0xf] %v919_v47  ;;  %923 = vst [vmem:[#allocation3 + $0x2c] sm:$0x1] %v922_v48 }
 0x127   : > { %v3343_v49 = vmov 0  }
 0x128   : > { %928 = vst [vmem:[#allocation3] sm:$0xf] %v3343_v49  ;;  %929 = vst [vmem:[#allocation3 + $0x4] sm:$0x1] %v3343_v49 }
 0x129 PF: > { %p2656_p8 = scmp.ne.s32.totalorder %s3324_s24, 1 }
 0x12b   : > { %933 = sbr.rel (%p2656_p8) target bundleno = 306 (0x132), region = 86 }
 0x130   : > { %v3344_v50 = vmov 0  }
 0x131   : > { %935 = vst [vmem:[#allocation3 + $0x28] sm:$0xf] %v3344_v50  ;;  %936 = vst [vmem:[#allocation3 + $0x2c] sm:$0x1] %v3344_v50 }
 0x132 PF: > { %v3150_v26 = vld [vmem:[%s4036_s3 + $0x78] sm:$0xff]   ;;  %v3154_v53 = vld [vmem:[%s4036_s3 + $0x70] sm:$0xff]   ;;  %v3158_v58 = vld [vmem:[%s4036_s3 + $0x68] sm:$0xff]  }
 0x133   : > { %v3151_v32 = vld [vmem:[%s4036_s3 + $0x38] sm:$0xff]   ;;  %2899 = vmatprep.subr.bf16.mxu0 %v3150_v26  ;;  %v3155_v54 = vld [vmem:[%s4036_s3 + $0x30] sm:$0xff]   ;;  %v3159_v60 = vld [vmem:[%s4036_s3 + $0x28] sm:$0xff]  }
 0x134   : > { %v3152_v51 = vld [vmem:[%s4036_s3 + $0xf8] sm:$0xff]   ;;  %2900 = vmatpush3.bf16.msra.mxu0 %v3151_v32  ;;  %v3156_v55 = vld [vmem:[%s4036_s3 + $0xf0] sm:$0xff]   ;;  %v3160_v61 = vld [vmem:[%s4036_s3 + $0xe8] sm:$0xff]  }
 0x135   : > { %v3153_v52 = vld [vmem:[%s4036_s3 + $0xb8] sm:$0xff]   ;;  %2927 = vmatprep.subr.bf16.mxu1 %v3152_v51  ;;  %2901 = vmatprep.subr.bf16.mxu0 %v3154_v53  ;;  %v3157_v57 = vld [vmem:[%s4036_s3 + $0xb0] sm:$0xff]   ;;  %v3161_v62 = vld [vmem:[%s4036_s3 + $0xa8] sm:$0xff]  }
 0x136   : > { %2928 = vmatpush3.bf16.msra.mxu1 %v3153_v52  ;;  %v3162_v63 = vld [vmem:[%s4036_s3 + $0x60] sm:$0xff]   ;;  %v3166_v3 = vld [vmem:[%s4036_s3 + $0x58] sm:$0xff]   ;;  %v3170_v7 = vld [vmem:[%s4036_s3 + $0x50] sm:$0xff]  }
 0x137   : > { %2929 = vmatprep.subr.bf16.mxu1 %v3156_v55  ;;  %v3163_v0 = vld [vmem:[%s4036_s3 + $0x20] sm:$0xff]   ;;  %v3167_v4 = vld [vmem:[%s4036_s3 + $0x18] sm:$0xff]   ;;  %v3171_v8 = vld [vmem:[%s4036_s3 + $0x10] sm:$0xff]  }
 0x138   : > { %2902 = vmatpush3.bf16.msra.mxu0 %v3155_v54  ;;  %v3164_v1 = vld [vmem:[%s4036_s3 + $0xe0] sm:$0xff]   ;;  %v3168_v5 = vld [vmem:[%s4036_s3 + $0xd8] sm:$0xff]   ;;  %v3172_v9 = vld [vmem:[%s4036_s3 + $0xd0] sm:$0xff]  }
 0x139   : > { %2903 = vmatprep.subr.bf16.mxu0 %v3158_v58  ;;  %v3165_v2 = vld [vmem:[%s4036_s3 + $0xa0] sm:$0xff]   ;;  %v3169_v6 = vld [vmem:[%s4036_s3 + $0x98] sm:$0xff]   ;;  %v3173_v10 = vld [vmem:[%s4036_s3 + $0x90] sm:$0xff]  }
 0x13a   : > { %2930 = vmatpush3.bf16.msra.mxu1 %v3157_v57  ;;  %v3174_v11 = vld [vmem:[%s4036_s3 + $0x48] sm:$0xff]   ;;  %v3178_v15 = vld [vmem:[%s4036_s3 + $0x40] sm:$0xff]   ;;  %v3185_v27 = vld [vmem:[%s4036_s3 + $0x178] sm:$0xff]  }
 0x13b   : > { %2931 = vmatprep.subr.bf16.mxu1 %v3160_v61  ;;  %v3175_v12 = vld [vmem:[%s4036_s3 + $0x8] sm:$0xff]   ;;  %v3179_v16 = vld [vmem:[%s4036_s3] sm:$0xff]   ;;  %v951_v31 = vld [vmem:[#allocation3 + $0x10] sm:$0xf] }
 0x13c   : > { %2904 = vmatpush3.bf16.msra.mxu0 %v3159_v60  ;;  %v3176_v13 = vld [vmem:[%s4036_s3 + $0xc8] sm:$0xff]   ;;  %v3180_v17 = vld [vmem:[%s4036_s3 + $0xc0] sm:$0xff]   ;;  %v3194_v35 = vld [vmem:[%s4036_s3 + $0x1f8] sm:$0xff]  }
 0x13d   : > { %2905 = vmatprep.subr.bf16.mxu0 %v3162_v63  ;;  %v3177_v14 = vld [vmem:[%s4036_s3 + $0x88] sm:$0xff]   ;;  %v937_v18 = vld [vmem:[#allocation3] sm:$0xf]  ;;  %v941_v20 = vld [vmem:[#allocation3 + $0x4] sm:$0x1] }
 0x13e   : > { %2932 = vmatpush3.bf16.msra.mxu1 %v3161_v62  ;;  %v938_v19 = vld [vmem:[#allocation3 + $0x8] sm:$0xf]  ;;  %v942_v21 = vld [vmem:[#allocation3 + $0xc] sm:$0x1]  ;;  %v2657_v22 = vcombine.low %v937_v18, %v941_v20  ;;  %v3183_v24 = vld [vmem:[%s4036_s3 + $0x80] sm:$0xff]  }
 0x13f   : > { %2933 = vmatprep.subr.bf16.mxu1 %v3164_v1  ;;  %v2658_v23 = vcombine.low %v938_v19, %v942_v21  ;;  %v950_v28 = vld [vmem:[#allocation3 + $0x8] sm:$0xf]  ;;  %v945_v38 = vld [vmem:[#allocation3] sm:$0xe]  ;;  %v2682_v41 = vcombine.low %v937_v18, %v938_v19  ;;  %v3191_v42 = vld [vmem:[%s4036_s3 + $0x138] sm:$0xff]  }
 0x140   : > { %2906 = vmatpush3.bf16.msra.mxu0 %v3163_v0  ;;  %v996_v59 = vshrl.u32 %v2657_v22, 16  ;;  %v998_v25 = vshll.u32 %v2657_v22, 16  ;;  %v2685_v34 = vcombine.low %v950_v28, %v951_v31  ;;  %v946_v40 = vld [vmem:[#allocation3 + $0x8] sm:$0xe]  ;;  %v2661_v43 = vcombine.low %v945_v38, %v941_v20  ;;  %v3195_v46 = vld [vmem:[%s4036_s3 + $0x1b8] sm:$0xff]   ;;  %v3196_v47 = vld [vmem:[%s4036_s3 + $0x170] sm:$0xff]  }
 0x141   : > { %2907 = vmatprep.subr.bf16.mxu0 %v3166_v3  ;;  %v1003_v29 = vshrl.u32 %v2658_v23, 16  ;;  %v1005_v30 = vshll.u32 %v2658_v23, 16  ;;  %v2662_v44 = vcombine.low %v946_v40, %v942_v21  ;;  %v3197_v50 = vld [vmem:[%s4036_s3 + $0x130] sm:$0xff]   ;;  %v3200_v52 = vld [vmem:[%s4036_s3 + $0x168] sm:$0xff]   ;;  %v3204_v60 = vld [vmem:[%s4036_s3 + $0x160] sm:$0xff]  }
 0x142   : > { %2934 = vmatpush3.bf16.msra.mxu1 %v3165_v2  ;;  %v1000_v33 = vrot.slane %v998_v25, 1  ;;  %1891 = vmatprep.mubr.bf16.mxu1 %v2685_v34  ;;  %v1035_v48 = vrot.slane %v2661_v43, 1  ;;  %v3198_v32 = vld [vmem:[%s4036_s3 + $0x1f0] sm:$0xff]   ;;  %v3201_v53 = vld [vmem:[%s4036_s3 + $0x128] sm:$0xff]   ;;  %v3205_v63 = vld [vmem:[%s4036_s3 + $0x120] sm:$0xff]  }
 0x143   : > { %2935 = vmatprep.subr.bf16.mxu1 %v3168_v5  ;;  %v1007_v36 = vrot.slane %v1005_v30, 1  ;;  %v1036_v49 = vrot.slane %v2662_v44, 1  ;;  %v3199_v51 = vld [vmem:[%s4036_s3 + $0x1b0] sm:$0xff]   ;;  %v954_v54 = vld [vmem:[#allocation3 + $0xc] sm:$0x1]  ;;  %v3206_v0 = vld [vmem:[%s4036_s3 + $0x1e0] sm:$0xff]  }
 0x144   : > { %2908 = vmatpush3.bf16.msra.mxu0 %v3167_v4  ;;  %v1001_v37 = vor.u32 %v1000_v33, %v996_v59  ;;  %v3202_v55 = vld [vmem:[%s4036_s3 + $0x1e8] sm:$0xff]   ;;  %v955_v57 = vld [vmem:[#allocation3 + $0x14] sm:$0x1]  ;;  %v959_v62 = vld [vmem:[#allocation3 + $0x10] sm:$0xe]  ;;  %v3727_v1 = vcombine.low %v950_v28, %v954_v54 }
 0x145   : > { %2909 = vmatprep.subr.bf16.mxu0 %v3170_v7  ;;  %v1008_v39 = vor.u32 %v1007_v36, %v1003_v29  ;;  %v2684_v26 = vcombine.low %v1035_v48, %v1036_v49  ;;  %v3203_v58 = vld [vmem:[%s4036_s3 + $0x1a8] sm:$0xff]   ;;  %v3207_v2 = vld [vmem:[%s4036_s3 + $0x1a0] sm:$0xff]   ;;  %v3732_v3 = vcombine.low %v951_v31, %v955_v57  ;;  %v3208_v4 = vld [vmem:[%s4036_s3 + $0x158] sm:$0xff]  }
 0x146   : > { %2936 = vmatpush3.bf16.msra.mxu1 %v3169_v6  ;;  %v958_v61 = vld [vmem:[#allocation3 + $0x8] sm:$0xe]  ;;  %v1060_v5 = vshrl.u32 %v3727_v1, 16  ;;  %v3209_v6 = vld [vmem:[%s4036_s3 + $0x118] sm:$0xff]   ;;  %v939_v7 = vld [vmem:[#allocation3 + $0x10] sm:$0xf] }
 0x147   : > { %2937 = vmatprep.subr.bf16.mxu1 %v3172_v9  ;;  %v2683_v45 = vcombine.low %v1001_v37, %v1008_v39  ;;  %v2670_v9 = vcombine.low %v959_v62, %v955_v57  ;;  %v3214_v18 = vld [vmem:[%s4036_s3 + $0x198] sm:$0xff]   ;;  %v953_v25 = vld [vmem:[#allocation3 + $0x20] sm:$0xf]  ;;  %v1067_v30 = vshrl.u32 %v3732_v3, 16  ;;  %v3218_v33 = vld [vmem:[%s4036_s3 + $0x150] sm:$0xff]  }
 0x148   : > { %2910 = vmatpush3.bf16.msra.mxu0 %v3171_v8  ;;  %v2669_v8 = vcombine.low %v958_v61, %v954_v54  ;;  %v952_v23 = vld [vmem:[#allocation3 + $0x18] sm:$0xf]  ;;  %v947_v34 = vld [vmem:[#allocation3 + $0x10] sm:$0xe]  ;;  %v3755_v39 = vld [vmem:[#allocation3 + $0x24] sm:$0x1] }
 0x149   : > { %2911 = vmatprep.subr.bf16.mxu0 %v3174_v11  ;;  %1842 = vmatprep.mubr.bf16.mxu0 %v2683_v45  ;;  %v943_v11 = vld [vmem:[#allocation3 + $0x14] sm:$0x1]  ;;  %v1100_v59 = vrot.slane %v2670_v9, 1  ;;  %v2694_v31 = vcombine.low %v952_v23, %v953_v25  ;;  %v2668_v49 = vcombine.low %v953_v25, %v3755_v39  ;;  %v3225_v54 = vld [vmem:[%s4036_s3 + $0x108] sm:$0xff]   ;;  %v3228_v62 = vld [vmem:[%s4036_s3 + $0x140] sm:$0xff]  }
 0x14a   : > { %2938 = vmatpush3.bf16.msra.mxu1 %v3173_v10  ;;  %v940_v10 = vld [vmem:[#allocation3 + $0x18] sm:$0xf]  ;;  %v3221_v44 = vld [vmem:[%s4036_s3 + $0x110] sm:$0xff]   ;;  %v3227_v61 = vld [vmem:[%s4036_s3 + $0x188] sm:$0xff]  }
 0x14b   : > { %2939 = vmatprep.subr.bf16.mxu1 %v3176_v13  ;;  %v1062_v13 = vshll.u32 %v3727_v1, 16  ;;  %v2691_v38 = vcombine.low %v939_v7, %v940_v10  ;;  %v964_v9 = vld [vmem:[#allocation3 + $0x18] sm:$0xf] }
 0x14c   : > { %2912 = vmatpush3.bf16.msra.mxu0 %v3175_v12  ;;  %v944_v12 = vld [vmem:[#allocation3 + $0x1c] sm:$0x1] }
 0x14d   : > { %2913 = vmatprep.subr.bf16.mxu0 %v3178_v15  ;;  %v2660_v15 = vcombine.low %v940_v10, %v944_v12  ;;  %v1064_v40 = vrot.slane %v1062_v13, 1  ;;  %v967_v10 = vld [vmem:[#allocation3 + $0x14] sm:$0x1] }
 0x14e   : > { %2940 = vmatpush3.bf16.msra.mxu1 %v3177_v14  ;;  %v2659_v14 = vcombine.low %v939_v7, %v943_v11  ;;  %v3232_v7 = vld [vmem:[%s4036_s3 + $0x238] sm:$0xff]  }
 0x14f   : > { %2941 = vmatprep.subr.bf16.mxu1 %v3180_v17  ;;  %v1069_v17 = vshll.u32 %v3732_v3, 16  ;;  %v1017_v21 = vshrl.u32 %v2660_v15, 16  ;;  %v1019_v22 = vshll.u32 %v2660_v15, 16  ;;  %v3230_v3 = vld [vmem:[%s4036_s3 + $0x1c0] sm:$0xff]   ;;  %v960_v15 = vld [vmem:[#allocation3 + $0x18] sm:$0xe] }
 0x150   : > { %2914 = vmatpush3.bf16.msra.mxu0 %v3179_v16  ;;  %v3212_v16 = vld [vmem:[%s4036_s3 + $0x1d8] sm:$0xff]   ;;  %v1010_v19 = vshrl.u32 %v2659_v14, 16  ;;  %v1012_v20 = vshll.u32 %v2659_v14, 16  ;;  %v3236_v14 = vld [vmem:[%s4036_s3 + $0x230] sm:$0xff]  }
 0x151   : > { %2955 = vmatprep.subr.bf16.mxu0 %v3185_v27  ;;  %v3749_v27 = vld [vmem:[#allocation3 + $0x1c] sm:$0x1]  ;;  %v1021_v29 = vrot.slane %v1019_v22, 1  ;;  %v1071_v45 = vrot.slane %v1069_v17, 1 }
 0x152   : > { %2942 = vmatpush3.bf16.msra.mxu1 %v3183_v24  ;;  %v1099_v24 = vrot.slane %v2669_v8, 1  ;;  %v1014_v28 = vrot.slane %v1012_v20, 1  ;;  %v963_v8 = vld [vmem:[#allocation3 + $0x10] sm:$0xf]  ;;  %v2671_v17 = vcombine.low %v960_v15, %v3749_v27  ;;  %v3851_v15 = vld [vmem:[%s4038_s5 + $0xc8] ss:$16 sps:$4 sm:$0xff]  }
 0x153   : > { %2983 = vmatprep.subr.bf16.mxu1 %v3194_v35  ;;  %1843 = vmatmul.mubr.bf16.vlgmr.msra.gmra.mxu0 %v2682_v41  ;;  %v948_v35 = vld [vmem:[#allocation3 + $0x18] sm:$0xe]  ;;  %v1022_v37 = vor.u32 %v1021_v29, %v1017_v21  ;;  %v2667_v41 = vcombine.low %v952_v23, %v3749_v27  ;;  %v1072_v57 = vor.u32 %v1071_v45, %v1067_v30  ;;  %v966_v29 = vld [vmem:[#allocation3 + $0x28] sm:$0xf]  ;;  %v970_v27 = vld [vmem:[#allocation3 + $0x2c] sm:$0x1] }
 0x154   : > { %2956 = vmatpush3.bf16.msra.mxu0 %v3191_v42  ;;  %v1015_v36 = vor.u32 %v1014_v28, %v1010_v19  ;;  %v2663_v42 = vcombine.low %v947_v34, %v943_v11  ;;  %v2664_v43 = vcombine.low %v948_v35, %v944_v12  ;;  %v2687_v48 = vcombine.low %v1099_v24, %v1100_v59  ;;  %v968_v11 = vld [vmem:[#allocation3 + $0x1c] sm:$0x1]  ;;  %v3239_v24 = vld [vmem:[%s4036_s3 + $0x228] sm:$0xff]   ;;  %v965_v28 = vld [vmem:[#allocation3 + $0x20] sm:$0xf] }
 0x155   : > { %1892 = vmatmul.mubr.bf16.vlgmr.msra.gmra.mxu1 %v2684_v26  ;;  %2957 = vmatprep.subr.bf16.mxu0 %v3196_v47  ;;  %v3222_v47 = vld [vmem:[%s4036_s3 + $0x1d0] sm:$0xff]   ;;  %v2673_v12 = vcombine.low %v963_v8, %v967_v10  ;;  %v2674_v13 = vcombine.low %v964_v9, %v968_v11  ;;  %v1101_v25 = vrot.slane %v2671_v17, 1 }
 0x156   : > { %2984 = vmatpush3.bf16.msra.mxu1 %v3195_v46  ;;  %1899 = vmatprep.mubr.bf16.mxu1 %v2694_v31  ;;  %v2692_v46 = vcombine.low %v1015_v36, %v1022_v37  ;;  %v1038_v26 = vrot.slane %v2664_v43, 1  ;;  %v2676_v36 = vcombine.low %v966_v29, %v970_v27  ;;  %v3266_v17 = vld [vmem:[%s4038_s5 + $0xa4] ss:$16 sps:$4 sm:$0xff]  }
 0x157   : > { %2985 = vmatprep.subr.bf16.mxu1 %v3198_v32  ;;  %v3223_v32 = vld [vmem:[%s4036_s3 + $0x190] sm:$0xff]   ;;  %v1124_v20 = vshrl.u32 %v2673_v12, 16  ;;  %v1126_v21 = vshll.u32 %v2673_v12, 16  ;;  %v1131_v22 = vshrl.u32 %v2674_v13, 16  ;;  %v1133_v23 = vshll.u32 %v2674_v13, 16 }
 0x158   : > { %2958 = vmatpush3.bf16.msra.mxu0 %v3197_v50  ;;  %v1037_v50 = vrot.slane %v2663_v42, 1  ;;  %1850 = vmatprep.mubr.bf16.mxu0 %v2692_v46  ;;  %v1145_v46 = vshrl.u32 %v2676_v36, 16  ;;  %v3260_v12 = vld [vmem:[%s4038_s5 + $0xc4] ss:$16 sps:$4 sm:$0xff]   ;;  %v3258_v13 = vld [vmem:[%s4038_s5 + $0xc0] ss:$16 sps:$4 sm:$0xff]  }
 0x159   : > { %2959 = vmatprep.subr.bf16.mxu0 %v3200_v52  ;;  %v1076_v52 = vshll.u32 %v2667_v41, 16  ;;  %v1128_v30 = vrot.slane %v1126_v21, 1  ;;  %v1135_v31 = vrot.slane %v1133_v23, 1  ;;  %v3877_v21 = vld [vmem:[%s4038_s5 + $0x8c] ss:$16 sps:$4 sm:$0xff]  }
 0x15a   : > { %2986 = vmatpush3.bf16.msra.mxu1 %v3199_v51  ;;  %v3224_v51 = vld [vmem:[%s4036_s3 + $0x148] sm:$0xff]  }
 0x15b   : > { %2987 = vmatprep.subr.bf16.mxu1 %v3202_v55  ;;  %1851 = vmatmul.mubr.bf16.gmra.mxu0 %v2691_v38  ;;  %v1065_v55 = vor.u32 %v1064_v40, %v1060_v5  ;;  %v1078_v1 = vrot.slane %v1076_v52, 1  ;;  %v3231_v5 = vld [vmem:[%s4036_s3 + $0x180] sm:$0xff]   ;;  %v1129_v37 = vor.u32 %v1128_v30, %v1124_v20  ;;  %v1136_v38 = vor.u32 %v1135_v31, %v1131_v22  ;;  %v3887_v23 = vld [vmem:[%s4038_s5 + $0x88] ss:$16 sps:$4 sm:$0xff]   ;;  %v3914_v30 = vld [vmem:[%s4038_s5 + $0x4c] ss:$16 sps:$4 sm:$0xff]  }
 0x15c   : > { %2960 = vmatpush3.bf16.msra.mxu0 %v3201_v53  ;;  %v2693_v53 = vcombine.low %v1037_v50, %v1038_v26  ;;  %1940 = vmatprep.mubr.bf16.mxu0 %v2687_v48  ;;  %v3246_v48 = vld [vmem:[%s4036_s3 + $0x218] sm:$0xff]   ;;  %v3272_v20 = vld [vmem:[%s4038_s5 + $0x84] ss:$16 sps:$4 sm:$0xff]   ;;  %v3270_v22 = vld [vmem:[%s4038_s5 + $0x80] ss:$16 sps:$4 sm:$0xff]  }
 0x15d   : > { %2961 = vmatprep.subr.bf16.mxu0 %v3204_v60  ;;  %v1083_v60 = vshll.u32 %v2668_v49, 16  ;;  %v2689_v45 = vcombine.low %v1129_v37, %v1136_v38  ;;  %v3282_v31 = vld [vmem:[%s4038_s5 + $0x40] ss:$16 sps:$4 sm:$0xff]   ;;  %v3296_v37 = vld [vmem:[%s4038_s5 + $0x4] ss:$16 sps:$4 sm:$0xff]  }
 0x15e   : > { %2988 = vmatpush3.bf16.msra.mxu1 %v3203_v58  ;;  %v3226_v58 = vld [vmem:[%s4036_s3 + $0x1c8] sm:$0xff]  }
 0x15f   : > { %2989 = vmatprep.subr.bf16.mxu1 %v3206_v0  ;;  %1900 = vmatmul.mubr.bf16.gmra.mxu1 %v2693_v53  ;;  %v3229_v0 = vld [vmem:[%s4036_s3 + $0x100] sm:$0xff]   ;;  %v3247_v53 = vld [vmem:[%s4036_s3 + $0x210] sm:$0xff]   ;;  %v3950_v38 = vld [vmem:[%s4038_s5 + $0xc] ss:$16 sps:$4 sm:$0xff]  }
 0x160   : > { %2962 = vmatpush3.bf16.msra.mxu0 %v3205_v63  ;;  %v1074_v63 = vshrl.u32 %v2667_v41, 16  ;;  %v2688_v41 = vcombine.low %v963_v8, %v964_v9  ;;  %1989 = vmatprep.mubr.bf16.mxu1 %v2689_v45  ;;  %v3254_v8 = vld [vmem:[%s4038_s5 + $0xe4] ss:$16 sps:$4 sm:$0xff]   ;;  %v3252_v9 = vld [vmem:[%s4038_s5 + $0xe0] ss:$16 sps:$4 sm:$0xff]  }
 0x161   : > { %2963 = vmatprep.subr.bf16.mxu0 %v3208_v4  ;;  %v1081_v4 = vshrl.u32 %v2668_v49, 16 }
 0x162   : > { %2990 = vmatpush3.bf16.msra.mxu1 %v3207_v2  ;;  %v2686_v2 = vcombine.low %v1065_v55, %v1072_v57 }
 0x163   : > { %2991 = vmatprep.subr.bf16.mxu1 %v3212_v16  ;;  %v961_v16 = vld [vmem:[#allocation3 + $0x20] sm:$0xe] }
 0x164   : > { %2964 = vmatpush3.bf16.msra.mxu0 %v3209_v6  ;;  %v1085_v6 = vrot.slane %v1083_v60, 1  ;;  %v2672_v59 = vcombine.low %v961_v16, %v3755_v39  ;;  %v3245_v39 = vld [vmem:[%s4036_s3 + $0x220] sm:$0xff]  }
 0x165   : > { %2965 = vmatprep.subr.bf16.mxu0 %v3218_v33  ;;  %v969_v33 = vld [vmem:[#allocation3 + $0x24] sm:$0x1]  ;;  %v3264_v16 = vld [vmem:[%s4038_s5 + $0xa0] ss:$16 sps:$4 sm:$0xff]  }
 0x166   : > { %2992 = vmatpush3.bf16.msra.mxu1 %v3214_v18  ;;  %v1079_v18 = vor.u32 %v1078_v1, %v1074_v63  ;;  %v1086_v19 = vor.u32 %v1085_v6, %v1081_v4  ;;  %v1102_v34 = vrot.slane %v2672_v59, 1  ;;  %v2675_v35 = vcombine.low %v965_v28, %v969_v33  ;;  %v3249_v4 = vld [vmem:[%s4036_s3 + $0x200] sm:$0xff]   ;;  %v3896_v59 = vld [vmem:[%s4038_s5 + $0x6c] ss:$16 sps:$4 sm:$0xff]  }
 0x167   : > { %2993 = vmatprep.subr.bf16.mxu1 %v3222_v47  ;;  %v1147_v47 = vshll.u32 %v2676_v36, 16  ;;  %v2697_v63 = vcombine.low %v965_v28, %v966_v29  ;;  %v3905_v28 = vld [vmem:[%s4038_s5 + $0x68] ss:$16 sps:$4 sm:$0xff]   ;;  %v3284_v29 = vld [vmem:[%s4038_s5 + $0x44] ss:$16 sps:$4 sm:$0xff]  }
 0x168   : > { %2966 = vmatpush3.bf16.msra.mxu0 %v3221_v44  ;;  %v2695_v40 = vcombine.low %v1079_v18, %v1086_v19  ;;  %v2696_v42 = vcombine.low %v1101_v25, %v1102_v34  ;;  %v1138_v43 = vshrl.u32 %v2675_v35, 16  ;;  %v1140_v44 = vshll.u32 %v2675_v35, 16  ;;  %v3864_v18 = vld [vmem:[%s4038_s5 + $0xa8] ss:$16 sps:$4 sm:$0xff]   ;;  %v3869_v19 = vld [vmem:[%s4038_s5 + $0xac] ss:$16 sps:$4 sm:$0xff]  }
 0x169   : > { %2967 = vmatprep.subr.bf16.mxu0 %v3224_v51  ;;  %v1149_v50 = vrot.slane %v1147_v47, 1  ;;  %v972_v51 = vld [vmem:[#allocation3 + $0x18] sm:$0xe]  ;;  %v3276_v25 = vld [vmem:[%s4038_s5 + $0x60] ss:$16 sps:$4 sm:$0xff]  }
 0x16a   : > { %2994 = vmatpush3.bf16.msra.mxu1 %v3223_v32  ;;  %v1142_v49 = vrot.slane %v1140_v44, 1  ;;  %v971_v32 = vld [vmem:[#allocation3 + $0x10] sm:$0xe]  ;;  %v2678_v55 = vcombine.low %v972_v51, %v968_v11  ;;  %v3834_v11 = vld [vmem:[%s4038_s5 + $0xe8] ss:$16 sps:$4 sm:$0xff]  }
 0x16b   : > { %2995 = vmatprep.subr.bf16.mxu1 %v3226_v58  ;;  %v1150_v52 = vor.u32 %v1149_v50, %v1145_v46  ;;  %v3288_v34 = vld [vmem:[%s4038_s5 + $0x20] ss:$16 sps:$4 sm:$0xff]   ;;  %v3935_v35 = vld [vmem:[%s4038_s5 + $0x2c] ss:$16 sps:$4 sm:$0xff]   ;;  %v3941_v36 = vld [vmem:[%s4038_s5 + $0x28] ss:$16 sps:$4 sm:$0xff]  }
 0x16c   : > { %2968 = vmatpush3.bf16.msra.mxu0 %v3225_v54  ;;  %v1143_v26 = vor.u32 %v1142_v49, %v1138_v43  ;;  %v2677_v54 = vcombine.low %v971_v32, %v967_v10  ;;  %v1164_v60 = vrot.slane %v2678_v55, 1  ;;  %v3257_v10 = vld [vmem:[%s4038_s5 + $0xec] ss:$16 sps:$4 sm:$0xff]  }
 0x16d   : > { %2969 = vmatprep.subr.bf16.mxu0 %v3228_v62  ;;  %v974_v62 = vld [vmem:[#allocation3 + $0x28] sm:$0xe] }
 0x16e   : > { %2996 = vmatpush3.bf16.msra.mxu1 %v3227_v61  ;;  %v2698_v57 = vcombine.low %v1143_v26, %v1150_v52  ;;  %v1163_v58 = vrot.slane %v2677_v54, 1  ;;  %v973_v61 = vld [vmem:[#allocation3 + $0x20] sm:$0xe] }
 0x16f   : > { %2997 = vmatprep.subr.bf16.mxu1 %v3230_v3  ;;  %v2680_v3 = vcombine.low %v974_v62, %v970_v27  ;;  %v3290_v27 = vld [vmem:[%s4038_s5 + $0x24] ss:$16 sps:$4 sm:$0xff]  }
 0x170   : > { %2970 = vmatpush3.bf16.msra.mxu0 %v3229_v0  ;;  %v3248_v0 = vld [vmem:[%s4036_s3 + $0x208] sm:$0xff]   ;;  %v2690_v1 = vcombine.low %v1163_v58, %v1164_v60 }
 0x171   : > { %3021 = vmatprep.subr.bf16.mxu0 %v3232_v7  ;;  %v1166_v6 = vrot.slane %v2680_v3, 1  ;;  %v2681_v3 = vld [vmem:[%s4037_s4] ss:$0 sm:$0xff] }
 0x172   : > { %2998 = vmatpush3.bf16.msra.mxu1 %v3231_v5 }
 0x173   : > { %1941 = vmatmul.mubr.bf16.vlgmr.msra.gmra.mxu0 %v2686_v2  ;;  %v2679_v2 = vcombine.low %v973_v61, %v969_v33  ;;  %2275 = vmatprep.subr.bf16.mxu1 %v3254_v8  ;;  %v3923_v33 = vld [vmem:[%s4038_s5 + $0x48] ss:$16 sps:$4 sm:$0xff]  }
 0x174   : > { %3022 = vmatpush3.bf16.msra.mxu0 %v3232_v7  ;;  %1948 = vmatprep.mubr.bf16.mxu0 %v2696_v42 }
 0x175   : > { %3023 = vmatprep.subr.bf16.mxu0 %v3236_v14  ;;  %1990 = vmatmul.mubr.bf16.vlgmr.msra.gmra.mxu1 %v2688_v41  ;;  %v1165_v5 = vrot.slane %v2679_v2, 1  ;;  %v3959_v41 = vld [vmem:[%s4038_s5 + $0x8] ss:$16 sps:$4 sm:$0xff]  }
 0x176   : > { %1997 = vmatprep.mubr.bf16.mxu1 %v2698_v57  ;;  %2276 = vmatpush1.bf16.msra.mxu1 %v3252_v9 }
 0x177   : > { %v2699_v7 = vcombine.low %v1165_v5, %v1166_v6  ;;  %2277 = vmatprep.subr.bf16.mxu1 %v3260_v12 }
 0x178   : > { %3024 = vmatpush3.bf16.msra.mxu0 %v3236_v14  ;;  %v3846_v14 = vld [vmem:[%s4038_s5 + $0xcc] ss:$16 sps:$4 sm:$0xff]  }
 0x179   : > { %3025 = vmatprep.subr.bf16.mxu0 %v3239_v24 }
 0x17a   : > { %2278 = vmatpush1.bf16.msra.mxu1 %v3258_v13 }
 0x17b   : > { %1949 = vmatmul.mubr.bf16.gmra.mxu0 %v2695_v40  ;;  %2279 = vmatprep.subr.bf16.mxu1 %v3266_v17  ;;  %v3294_v40 = vld [vmem:[%s4038_s5] ss:$16 sps:$4 sm:$0xff]  }
 0x17c   : > { %3026 = vmatpush3.bf16.msra.mxu0 %v3239_v24  ;;  %3037 = vmatprep.mubr.bf16.mxu0 %v2690_v1  ;;  %v3278_v24 = vld [vmem:[%s4038_s5 + $0x64] ss:$16 sps:$4 sm:$0xff]  }
 0x17d   : > { %3027 = vmatprep.subr.bf16.mxu0 %v3245_v39  ;;  %1998 = vmatmul.mubr.bf16.gmra.mxu1 %v2697_v63 }
 0x17e   : > { %2307 = vmatprep.mubr.bf16.mxu1 %v3342_v56  ;;  %2280 = vmatpush1.bf16.msra.mxu1 %v3264_v16 }
 0x17f   : > { %2281 = vmatprep.subr.bf16.mxu1 %v3272_v20 }
 0x180   : > { %3028 = vmatpush3.bf16.msra.mxu0 %v3245_v39 }
 0x181   : > { %3029 = vmatprep.subr.bf16.mxu0 %v3246_v48 }
 0x182   : > { %2282 = vmatpush1.bf16.msra.mxu1 %v3270_v22 }
 0x183   : > { %2283 = vmatprep.subr.bf16.mxu1 %v3278_v24 }
 0x184   : > { %3030 = vmatpush3.bf16.msra.mxu0 %v3246_v48 }
 0x185   : > { %3031 = vmatprep.subr.bf16.mxu0 %v3247_v53 }
 0x186   : > { %2284 = vmatpush1.bf16.msra.mxu1 %v3276_v25 }
 0x187   : > { %2285 = vmatprep.subr.bf16.mxu1 %v3284_v29 }
 0x188   : > { %3032 = vmatpush3.bf16.msra.mxu0 %v3247_v53 }
 0x189   : > { %3033 = vmatprep.subr.bf16.mxu0 %v3248_v0 }
 0x18a   : > { %2286 = vmatpush1.bf16.msra.mxu1 %v3282_v31 }
 0x18b   : > { %2287 = vmatprep.subr.bf16.mxu1 %v3290_v27 }
 0x18c   : > { %3034 = vmatpush3.bf16.msra.mxu0 %v3248_v0 }
 0x18d   : > { %3035 = vmatprep.subr.bf16.mxu0 %v3249_v4 }
 0x18e   : > { %2288 = vmatpush1.bf16.msra.mxu1 %v3288_v34 }
 0x18f   : > { %2289 = vmatprep.subr.bf16.mxu1 %v3296_v37 }
 0x190   : > { %3036 = vmatpush3.bf16.msra.mxu0 %v3249_v4 }
 0x191   : > { %2328 = vmatprep.subr.bf16.mxu0 %v3257_v10 }
 0x192   : > { %2290 = vmatpush1.bf16.msra.mxu1 %v3294_v40 }
 0x193   : > { %3038 = vmatmul.mubr.bf16.vlgmr.msra.gmra.mxu0 %v2699_v7  ;;  %3041 = vmatprep.subr.bf16.mxu1 %v3257_v10 }
 0x194   : > { %2360 = vmatprep.mubr.bf16.mxu0 %v3342_v56  ;;  %2329 = vmatpush1.bf16.msra.mxu0 %v3834_v11 }
 0x195   : > { %2330 = vmatprep.subr.bf16.mxu0 %v3846_v14 }
 0x198   : > { %2331 = vmatpush1.bf16.msra.mxu0 %v3851_v15 }
 0x199   : > { %2332 = vmatprep.subr.bf16.mxu0 %v3869_v19 }
 0x19c   : > { %2333 = vmatpush1.bf16.msra.mxu0 %v3864_v18 }
 0x19d   : > { %2334 = vmatprep.subr.bf16.mxu0 %v3877_v21 }
 0x1a0   : > { %2335 = vmatpush1.bf16.msra.mxu0 %v3887_v23 }
 0x1a1   : > { %2336 = vmatprep.subr.bf16.mxu0 %v3896_v59 }
 0x1a4   : > { %2337 = vmatpush1.bf16.msra.mxu0 %v3905_v28 }
 0x1a5   : > { %2338 = vmatprep.subr.bf16.mxu0 %v3914_v30 }
 0x1a8   : > { %2339 = vmatpush1.bf16.msra.mxu0 %v3923_v33 }
 0x1a9   : > { %2340 = vmatprep.subr.bf16.mxu0 %v3935_v35 }
 0x1ac   : > { %2341 = vmatpush1.bf16.msra.mxu0 %v3941_v36 }
 0x1ad   : > { %2342 = vmatprep.subr.bf16.mxu0 %v3950_v38 }
 0x1b0   : > { %2343 = vmatpush1.bf16.msra.mxu0 %v3959_v41 }
 0x213   : > { %v2915_v42 = vpop.f32.mrf.mxu0 }
 0x215   : > { %v2916_v43 = vpop.f32.mrf.mxu0  ;;  %v2943_v44 = vpop.f32.mrf.mxu1 }
 0x216   : > { %v2917_v2 = vadd.f32 %v2916_v43, %v2915_v42 }
 0x217   : > { %v2918_v39 = vpop.f32.mrf.mxu0  ;;  %v2944_v45 = vpop.f32.mrf.mxu1 }
 0x218   : > { %v1845_v7 = vadd.f32 %v2917_v2, %v2681_v3  ;;  %v2945_v8 = vadd.f32 %v2944_v45, %v2943_v44 }
 0x219   : > { %v2919_v46 = vpop.f32.mrf.mxu0  ;;  %v2946_v47 = vpop.f32.mrf.mxu1 }
 0x21a   : > { %v2920_v4 = vadd.f32 %v2919_v46, %v2918_v39  ;;  %v1894_v22 = vadd.f32 %v2945_v8, %v1845_v7 }
 0x21b   : > { %v2921_v48 = vpop.f32.mrf.mxu0  ;;  %v2947_v50 = vpop.f32.mrf.mxu1 }
 0x21c   : > { %v1848_v9 = vadd.f32 %v2920_v4, %v2681_v3  ;;  %v2948_v10 = vadd.f32 %v2947_v50, %v2946_v47 }
 0x21d   : > { %v2922_v49 = vpop.f32.mrf.mxu0 }
 0x21e   : > { %v2923_v20 = vadd.f32 %v2922_v49, %v2921_v48  ;;  %v1897_v25 = vadd.f32 %v2948_v10, %v1848_v9 }
 0x21f   : > { %v2924_v26 = vpop.f32.mrf.mxu0  ;;  %v2949_v32 = vpop.f32.mrf.mxu1 }
 0x220   : > { %v1853_v42 = vadd.f32 %v2923_v20, %v2681_v3 }
 0x221   : > { %v2925_v51 = vpop.f32.mrf.mxu0  ;;  %v2950_v52 = vpop.f32.mrf.mxu1 }
 0x222   : > { %v2926_v16 = vadd.f32 %v2925_v51, %v2924_v26  ;;  %v2951_v43 = vadd.f32 %v2950_v52, %v2949_v32 }
 0x223   : > { %v2952_v54 = vpop.f32.mrf.mxu1 }
 0x224   : > { %v1856_v27 = vadd.f32 %v2926_v16, %v2681_v3  ;;  %v1902_v49 = vadd.f32 %v2951_v43, %v1853_v42  ;;  %v2384_v16 = vld [vmem:[#allocation2 + $0x50] sm:$0xff] }
 0x225   : > { %v2953_v57 = vpop.f32.mrf.mxu1 }
 0x226   : > { %v2954_v34 = vadd.f32 %v2953_v57, %v2952_v54 }
 0x228   : > { %v1905_v26 = vadd.f32 %v2954_v34, %v1856_v27  ;;  %v2394_v34 = vunpack.c.l.bf16 %v2384_v16 }
 0x233   : > { %v2971_v53 = vpop.f32.mrf.mxu0 }
 0x235   : > { %v2972_v55 = vpop.f32.mrf.mxu0  ;;  %v2999_v60 = vpop.f32.mrf.mxu1 }
 0x236   : > { %v2973_v17 = vadd.f32 %v2972_v55, %v2971_v53 }
 0x237   : > { %v2974_v58 = vpop.f32.mrf.mxu0  ;;  %v3000_v61 = vpop.f32.mrf.mxu1 }
 0x238   : > { %v1943_v37 = vadd.f32 %v2973_v17, %v1894_v22  ;;  %v3001_v40 = vadd.f32 %v3000_v61, %v2999_v60  ;;  %v2385_v17 = vld [vmem:[#allocation2 + $0x20] sm:$0xff] }
 0x239   : > { %v2975_v62 = vpop.f32.mrf.mxu0  ;;  %v3002_v63 = vpop.f32.mrf.mxu1 }
 0x23a   : > { %v2976_v24 = vadd.f32 %v2975_v62, %v2974_v58  ;;  %v1992_v48 = vadd.f32 %v3001_v40, %v1943_v37  ;;  %v2396_v40 = vunpack.c.l.bf16 %v2385_v17 }
 0x23b   : > { %v2977_v0 = vpop.f32.mrf.mxu0  ;;  %v3003_v1 = vpop.f32.mrf.mxu1 }
 0x23c   : > { %v1946_v44 = vadd.f32 %v2976_v24, %v1897_v25  ;;  %v3004_v45 = vadd.f32 %v3003_v1, %v3002_v63 }
 0x23d   : > { %v2978_v5 = vpop.f32.mrf.mxu0  ;;  %v3005_v6 = vpop.f32.mrf.mxu1 }
 0x23e   : > { %v2979_v51 = vadd.f32 %v2978_v5, %v2977_v0  ;;  %v1995_v2 = vadd.f32 %v3004_v45, %v1946_v44  ;;  %v2397_v44 = vunpack.c.h.bf16 %v2385_v17  ;;  %v2386_v45 = vld [vmem:[#allocation2 + $0x8] sm:$0xff] }
 0x23f   : > { %v2980_v12 = vpop.f32.mrf.mxu0  ;;  %v3006_v13 = vpop.f32.mrf.mxu1 }
 0x240   : > { %v1951_v57 = vadd.f32 %v2979_v51, %v1902_v49  ;;  %v3007_v60 = vadd.f32 %v3006_v13, %v3005_v6 }
 0x241   : > { %v2981_v29 = vpop.f32.mrf.mxu0  ;;  %v3008_v31 = vpop.f32.mrf.mxu1 }
 0x242   : > { %v2982_v46 = vadd.f32 %v2981_v29, %v2980_v12  ;;  %v2000_v63 = vadd.f32 %v3007_v60, %v1951_v57  ;;  %v2398_v60 = vunpack.c.l.bf16 %v2386_v45 }
 0x243   : > { %v3009_v47 = vpop.f32.mrf.mxu1 }
 0x244   : > { %v1954_v55 = vadd.f32 %v2982_v46, %v1905_v26  ;;  %v3010_v58 = vadd.f32 %v3009_v47, %v3008_v31 }
 0x246   : > { %v2003_v52 = vadd.f32 %v3010_v58, %v1954_v55 }
 0x253   : > { %v3039_v39 = vpop.f32.mrf.mxu0 }
 0x254   : > { %v2049_v7 = vadd.f32 %v3039_v39, %v2000_v63  ;;  %v2395_v39 = vunpack.c.h.bf16 %v2384_v16 }
 0x255   : > { %v2040_v50 = vpop.f32.mrf.mxu0 }
 0x256   : > { %v2041_v62 = vadd.f32 %v2040_v50, %v1992_v48  ;;  %v2057_v5 = vmax.f32 %v2049_v7, 0.0 }
 0x257   : > { %v3040_v53 = vpop.f32.mrf.mxu0 }
 0x258   : > { %v2055_v32 = vmax.f32 %v2041_v62, 0.0  ;;  %v2052_v1 = vadd.f32 %v3040_v53, %v2003_v52  ;;  %v2388_v62 = vld [vmem:[#allocation2 + $0x28] sm:$0xff] }
 0x259   : > { %v2043_v54 = vpop.f32.mrf.mxu0 }
 0x25a   : > { %v2044_v61 = vadd.f32 %v2043_v54, %v1995_v2  ;;  %v2058_v0 = vmax.f32 %v2052_v1, 0.0 }
 0x25c   : > { %v2056_v3 = vmax.f32 %v2044_v61, 0.0  ;;  %v2060_v6 = vpack.c.bf16 %v2058_v0, %v2057_v5  ;;  %v2399_v61 = vunpack.c.h.bf16 %v2386_v45  ;;  %v2402_v0 = vunpack.c.l.bf16 %v2388_v62 }
 0x25e   : > { %v2059_v4 = vpack.c.bf16 %v2056_v3, %v2055_v32 }
 0x260   : > { %2308 = vmatmul.mubr.bf16.vlgmr.msra.gmra.mxu1 %v2059_v4  ;;  %2361 = vmatmul.mubr.bf16.vlgmr.msra.gmra.mxu0 %v2059_v4 }
 0x261   : > { %3049 = vmatpush1.bf16.msra.mxu1 %v3834_v11  ;;  %2317 = vmatprep.mubr.bf16.mxu1 %v3342_v56 }
 0x262   : > { %3042 = vmatprep.subr.bf16.mxu1 %v3846_v14 }
 0x265   : > { %3050 = vmatpush1.bf16.msra.mxu1 %v3851_v15 }
 0x266   : > { %3043 = vmatprep.subr.bf16.mxu1 %v3869_v19 }
 0x268   : > { %2318 = vmatmul.mubr.bf16.gmra.mxu1 %v2060_v6 }
 0x269   : > { %3051 = vmatpush1.bf16.msra.mxu1 %v3864_v18  ;;  %2370 = vmatprep.mubr.bf16.mxu1 %v3342_v56  ;;  %v2095_v56 = vlaneseq  ;;  %v2093_v18 = vld [vmem:[%s4039_s6] sm:$0xf] }
 0x26a   : > { %3044 = vmatprep.subr.bf16.mxu1 %v3877_v21 }
 0x26b   : > { %v2096_v11 = vshrl.u32 %v2095_v56, 7 }
 0x26d   : > { %3052 = vmatpush1.bf16.msra.mxu1 %v3887_v23  ;;  %v2097_v14 = vsub.s32 0, %v2096_v11  ;;  %v2105_v15 = vsub.s32 2, %v2096_v11  ;;  %v2101_v19 = vsub.s32 1, %v2096_v11  ;;  %v2109_v21 = vsub.s32 3, %v2096_v11  ;;  %v2382_v23 = vld [vmem:[#allocation2 + $0x58] sm:$0xff] }
 0x26e   : > { %3045 = vmatprep.subr.bf16.mxu1 %v3896_v59  ;;  %v2383_v59 = vld [vmem:[#allocation2 + $0x18] sm:$0xff]  ;;  %v2391_v12 = vunpack.c.h.bf16 %v2382_v23 }
 0x26f   : > { %v2393_v13 = vunpack.c.h.bf16 %v2383_v59 }
 0x271   : > { %3053 = vmatpush1.bf16.msra.mxu1 %v3905_v28  ;;  %v3986_v28 = vrot.slane %v2093_v18, %v2097_v14 }
 0x272   : > { %3046 = vmatprep.subr.bf16.mxu1 %v3914_v30  ;;  %v3988_v30 = vrot.slane %v2093_v18, %v2105_v15 }
 0x275   : > { %3054 = vmatpush1.bf16.msra.mxu1 %v3923_v33  ;;  %v2390_v33 = vunpack.c.l.bf16 %v2382_v23 }
 0x276   : > { %3047 = vmatprep.subr.bf16.mxu1 %v3935_v35  ;;  %v2392_v35 = vunpack.c.l.bf16 %v2383_v59 }
 0x279   : > { %3055 = vmatpush1.bf16.msra.mxu1 %v3941_v36  ;;  %v3990_v36 = vrot.slane %v2093_v18, %v2101_v19 }
 0x27a   : > { %3048 = vmatprep.subr.bf16.mxu1 %v3950_v38  ;;  %v3992_v38 = vrot.slane %v2093_v18, %v2109_v21  ;;  %v2403_v18 = vunpack.c.h.bf16 %v2388_v62 }
 0x27d   : > { %3056 = vmatpush1.bf16.msra.mxu1 %v3959_v41 }
 0x280   : > { %2371 = vmatmul.mubr.bf16.vlgmr.msra.gmra.mxu1 %v2060_v6 }
 0x320   : > { %v2309_v41 = vpop.f32.mrf.mxu1  ;;  %v2362_v8 = vpop.f32.mrf.mxu0 }
 0x321   : > { %v2310_v9 = vadd.f32 %v2309_v41, %v3986_v28  ;;  %v2363_v10 = vadd.f32 %v2362_v8, %v3988_v30 }
 0x322   : > { %v2311_v20 = vpop.f32.mrf.mxu1  ;;  %v2364_v22 = vpop.f32.mrf.mxu0 }
 0x323   : > { %v2406_v24 = vadd.f32 %v2390_v33, %v2310_v9  ;;  %v2408_v25 = vadd.f32 %v2392_v35, %v2363_v10  ;;  %v2312_v29 = vadd.f32 %v2311_v20, %v3990_v36  ;;  %v2365_v31 = vadd.f32 %v2364_v22, %v3992_v38  ;;  %v2387_v20 = vld [vmem:[#allocation2 + $0x38] sm:$0xff] }
 0x324   : > { %v2313_v27 = vpop.f32.mrf.mxu1  ;;  %v2366_v37 = vpop.f32.mrf.mxu0  ;;  %v2400_v22 = vunpack.c.l.bf16 %v2387_v20 }
 0x325   : > { %v2407_v42 = vadd.f32 %v2391_v12, %v2312_v29  ;;  %v2409_v43 = vadd.f32 %v2393_v13, %v2365_v31  ;;  %v2422_v46 = vmax.f32 %v2406_v24, 0.0  ;;  %v2424_v47 = vmax.f32 %v2408_v25, 0.0  ;;  %v2389_v25 = vld [vmem:[#allocation2 + $0x48] sm:$0xff] }
 0x326   : > { %v2314_v50 = vadd.f32 %v2313_v27, %v3986_v28  ;;  %v2367_v26 = vadd.f32 %v2366_v37, %v3988_v30  ;;  %v2315_v51 = vpop.f32.mrf.mxu1  ;;  %v2368_v48 = vpop.f32.mrf.mxu0  ;;  %v2401_v29 = vunpack.c.h.bf16 %v2387_v20 }
 0x327   : > { %v2423_v49 = vmax.f32 %v2407_v42, 0.0  ;;  %v2425_v53 = vmax.f32 %v2409_v43, 0.0  ;;  %v2316_v55 = vadd.f32 %v2315_v51, %v3990_v36  ;;  %v2369_v58 = vadd.f32 %v2368_v48, %v3992_v38 }
 0x328   : > { %v2410_v2 = vadd.f32 %v2394_v34, %v2314_v50  ;;  %v2412_v54 = vadd.f32 %v2396_v40, %v2367_v26  ;;  %v2319_v57 = vpop.f32.mrf.mxu1  ;;  %v2405_v43 = vunpack.c.h.bf16 %v2389_v25 }
 0x329   : > { %v2823_v32 = vpack.c.bf16 %v2423_v49, %v2422_v46  ;;  %v2824_v52 = vpack.c.bf16 %v2425_v53, %v2424_v47  ;;  %v2411_v3 = vadd.f32 %v2395_v39, %v2316_v55  ;;  %v2413_v63 = vadd.f32 %v2397_v44, %v2369_v58 }
 0x32a   : > { %v2426_v1 = vmax.f32 %v2410_v2, 0.0  ;;  %v2320_v4 = vadd.f32 %v2319_v57, %v3986_v28  ;;  %v2321_v7 = vpop.f32.mrf.mxu1  ;;  %v2428_v5 = vmax.f32 %v2412_v54, 0.0 }
 0x32b   : > { %2486 = vst [vmem:[%s3426_s21] sm:$0xff] %v2823_v32  ;;  %2487 = vst [vmem:[%s3426_s21 + $0x8] sm:$0xff] %v2824_v52  ;;  %v2427_v6 = vmax.f32 %v2411_v3, 0.0  ;;  %v2429_v56 = vmax.f32 %v2413_v63, 0.0  ;;  %v2322_v11 = vadd.f32 %v2321_v7, %v3990_v36 }
 0x32c   : > { %v2414_v14 = vadd.f32 %v2398_v60, %v2320_v4  ;;  %v2323_v15 = vpop.f32.mrf.mxu1 }
 0x32d   : > { %v2825_v19 = vpack.c.bf16 %v2427_v6, %v2426_v1  ;;  %v2826_v21 = vpack.c.bf16 %v2429_v56, %v2428_v5  ;;  %v2415_v23 = vadd.f32 %v2399_v61, %v2322_v11  ;;  %v2324_v59 = vadd.f32 %v2323_v15, %v3986_v28 }
 0x32e   : > { %v2325_v33 = vpop.f32.mrf.mxu1  ;;  %v2430_v35 = vmax.f32 %v2414_v14, 0.0 }
 0x32f   : > { %2488 = vst [vmem:[%s3426_s21 + $0x10] sm:$0xff] %v2825_v19  ;;  %2489 = vst [vmem:[%s3426_s21 + $0x18] sm:$0xff] %v2826_v21  ;;  %v2431_v41 = vmax.f32 %v2415_v23, 0.0  ;;  %v2418_v8 = vadd.f32 %v2402_v0, %v2324_v59  ;;  %v2326_v9 = vadd.f32 %v2325_v33, %v3990_v36  ;;  %v2404_v36 = vunpack.c.l.bf16 %v2389_v25 }
 0x331   : > { %v2827_v10 = vpack.c.bf16 %v2431_v41, %v2430_v35  ;;  %v2419_v12 = vadd.f32 %v2403_v18, %v2326_v9  ;;  %v2434_v13 = vmax.f32 %v2418_v8, 0.0 }
 0x333   : > { %2490 = vst [vmem:[%s3426_s21 + $0x20] sm:$0xff] %v2827_v10  ;;  %v2435_v16 = vmax.f32 %v2419_v12, 0.0 }
 0x335   : > { %v2829_v17 = vpack.c.bf16 %v2435_v16, %v2434_v13 }
 0x337   : > { %2492 = vst [vmem:[%s3426_s21 + $0x30] sm:$0xff] %v2829_v17 }
 0x340   : > { %v2372_v24 = vpop.f32.mrf.mxu1 }
 0x341   : > { %v2373_v28 = vadd.f32 %v2372_v24, %v3988_v30 }
 0x342   : > { %v2374_v31 = vpop.f32.mrf.mxu1 }
 0x343   : > { %v2416_v27 = vadd.f32 %v2400_v22, %v2373_v28  ;;  %v2375_v34 = vadd.f32 %v2374_v31, %v3992_v38 }
 0x344   : > { %v2376_v37 = vpop.f32.mrf.mxu1 }
 0x345   : > { %v2417_v40 = vadd.f32 %v2401_v29, %v2375_v34  ;;  %v2377_v42 = vadd.f32 %v2376_v37, %v3988_v30  ;;  %v2432_v44 = vmax.f32 %v2416_v27, 0.0 }
 0x346   : > { %v2378_v39 = vpop.f32.mrf.mxu1 }
 0x347   : > { %v2433_v45 = vmax.f32 %v2417_v40, 0.0  ;;  %v2420_v46 = vadd.f32 %v2404_v36, %v2377_v42  ;;  %v2379_v47 = vadd.f32 %v2378_v39, %v3992_v38 }
 0x349   : > { %v2828_v50 = vpack.c.bf16 %v2433_v45, %v2432_v44  ;;  %v2421_v26 = vadd.f32 %v2405_v43, %v2379_v47  ;;  %v2436_v51 = vmax.f32 %v2420_v46, 0.0 }
 0x34b   : > { %2491 = vst [vmem:[%s3426_s21 + $0x28] sm:$0xff] %v2828_v50  ;;  %v2437_v48 = vmax.f32 %v2421_v26, 0.0 }
 0x34d   : > { %v2830_v49 = vpack.c.bf16 %v2437_v48, %v2436_v51 }
 0x34f   : > { %2493 = vst [vmem:[%s3426_s21 + $0x38] sm:$0xff] %v2830_v49 }
 0x350 PF: > { %s17_s28 = sadd.s32 1, %s3340_s28   ;;  %s4047_s20 = sld [smem:[#allocation7_spill]] }
 0x351   : > { %p14_p9 = scmp.ge.s32.totalorder %s17_s28, 6   ;;  %s4048_s22 = sld [smem:[#allocation8_spill]] }
 0x352   : > { %s4049_s24 = smov %s3332_s26  ;;  %s4050_s25 = smov %s3336_s27 }
 0x353   :  { %16 = sbr.rel (!%p14_p9) target bundleno = 3 (0x3), region = 126 }
 0x356   : > { %s4051_s26 = smov %s4047_s20 }
 0x357   : > { %s4052_s27 = smov %s4048_s22 }
 0x358   :  { %2526 = vsyncmov [#allocation4] }
 0x35b   :  { %s2527_s21 = vpop.sfrf %2526 }
 0x35c   :  { %p2814_p10 = scmp.ne.s32.totalorder %s2527_s21, 0 }
 0x35e   :  { %2531 = shalt.err (%p2814_p10)  }

// kernel: layer3_forward_pallas.5
= control target key start
LH: loop header
LB: loop body
LE: loop exit
PB: predicated region body
PF: predicated region fallthrough
CT: control target
= control target key end

     0   :  { %s3395_s24 = smov 0   ;;  %s3397_s25 = smov 0   ;;  %s4038_s0 = inlined_call_operand.vmem [shape: bf16[2,16,8,512], index: 0, kind: input, shape index: {}]   ;;  %s4039_s1 = inlined_call_operand.vmem [shape: bf16[512,128], index: 1, kind: input, shape index: {}]   ;;  %s4040_s2 = inlined_call_operand.vmem [shape: f32[1,128], index: 2, kind: input, shape index: {}]   ;;  %s4041_s3 = inlined_call_operand.vmem [shape: bf16[1152,128], index: 3, kind: input, shape index: {}]   ;;  %s4042_s4 = inlined_call_operand.vmem [shape: f32[1,128], index: 4, kind: input, shape index: {}]   ;;  %s4043_s5 = inlined_call_operand.vmem [shape: bf16[128,512], index: 5, kind: input, shape index: {}]   ;;  %s4044_s6 = inlined_call_operand.vmem [shape: f32[1,512], index: 6, kind: input, shape index: {}]   ;;  %s4045_s7 = inlined_call_operand.vmem [shape: bf16[2,16,8,512], index: 7, kind: output, shape index: {}]  }
   0x1   :  { %s3399_s26 = smov 0   ;;  %s3401_s27 = smov 0  }
   0x2   :  { %s3403_s28 = smov 0  }
   0x3 LB: > { %s26_s29 = sadd.s32 1, %s3342_s26  ;;  %s29_s30 = sadd.s32 1, %s3346_s27  ;;  %s3350_s28 = sphi %s3403_s28, %s17_s28   ;;  %s3346_s27 = sphi %s3401_s27, %s4053_s27   ;;  %s3342_s26 = sphi %s3399_s26, %s4052_s26   ;;  %s3338_s25 = sphi %s3397_s25, %s4051_s25   ;;  %s3334_s24 = sphi %s3395_s24, %s4050_s24  }
   0x4   : > { %p27_p0 = scmp.ge.s32.totalorder %s26_s29, 2  ;;  %p2602_p1 = scmp.ge.s32.totalorder %s3350_s28, 1 }
   0x5   : > { %p219_p2 = scmp.lt.s32.totalorder %s3350_s28, 5 }
   0x6   : > { %s4055_s29 = smov (%p27_p0, %s26_s29), 0  ;;  %s4057_s30 = smov (!%p27_p0, %s29_s30), %s3346_s27 }
   0x7   : > { %p220_p3 = pnand %p2602_p1, %p219_p2  ;;  %p31_p4 = scmp.ge.s32.totalorder %s4057_s30, 2 }
   0x8   : > { %s2823_s8 = sshll.u32 (!%p220_p3), %s3334_s24, 2  ;;  %p252_p5 = scmp.lt.s32.totalorder (!%p220_p3), %s3338_s25, 1 }
   0x9   : > { %s4059_s30 = smov (%p31_p4, %s4057_s30), 0  ;;  %223 = sbr.rel (%p220_p3) target bundleno = 847 (0x34f), region = 44 }
   0xa   : > { %s2824_s9 = sadd.s32 (!%p220_p3), 4, %s2823_s8  ;;  %s2610_s10 = sshll.u32 (!%p220_p3), %s3338_s25, 6 }
   0xb   : > { %p254_p6 = scmp.lt.s32.totalorder (!%p220_p3), %s2824_s9, 15  ;;  %s2608_s11 = sadd.s32 (!%p220_p3), 4294967295, %s2824_s9 }
   0xc   : > { %s2609_s13 = sshll.u32 (!%p220_p3), %s2608_s11, 2 }
   0xd   : > { %s269_s14 = sadd.s32 (!%p220_p3), %s2610_s10, %s2609_s13 }
   0xe   : > { %s4061_s25 = smov (!%p252_p5, %s3338_s25), 1  ;;  %s4063_s9 = smov (!%p254_p6, %s2824_s9), 15 }
   0xf   : > { %s2605_s12 = sshll.u32 %s4061_s25, 6  ;;  %s2604_s15 = sshll.u32 %s4063_s9, 2 }
  0x10   : > { %s2611_s16 = sshll.u32 %s269_s14, 2  ;;  %s258_s17 = sadd.s32 %s2605_s12, %s2604_s15 }
  0x11   : > { %s271_s20 = scalar_lea.vmem %s4038_s0, %s2611_s16  ;;  %s2606_s21 = sshll.u32 %s258_s17, 2 }
  0x12   : > { %v305_v0 = vld [vmem:[%s271_s20] sm:$0xff]  ;;  %v307_v1 = vld [vmem:[%s271_s20 + $0x8] sm:$0xff]  ;;  %v309_v2 = vld [vmem:[%s271_s20 + $0x10] sm:$0xff]  ;;  %s3434_s8 = scalar_lea.vmem %s4045_s7, %s2606_s21 }
  0x13   : > { %306 = vst [vmem:[#allocation2 + $0x30] sm:$0xff] %v305_v0  ;;  %308 = vst [vmem:[#allocation2] sm:$0xff] %v307_v1  ;;  %v311_v3 = vld [vmem:[%s271_s20 + $0x18] sm:$0xff]  ;;  %v313_v4 = vld [vmem:[%s271_s20 + $0x20] sm:$0xff] }
  0x14   : > { %310 = vst [vmem:[#allocation2 + $0x58] sm:$0xff] %v309_v2  ;;  %v315_v5 = vld [vmem:[%s271_s20 + $0x28] sm:$0xff]  ;;  %312 = vst [vmem:[#allocation2 + $0x18] sm:$0xff] %v311_v3  ;;  %v317_v6 = vld [vmem:[%s271_s20 + $0x30] sm:$0xff] }
  0x15   : > { %314 = vst [vmem:[#allocation2 + $0x50] sm:$0xff] %v313_v4  ;;  %316 = vst [vmem:[#allocation2 + $0x20] sm:$0xff] %v315_v5  ;;  %v319_v7 = vld [vmem:[%s271_s20 + $0x38] sm:$0xff]  ;;  %v321_v8 = vld [vmem:[%s271_s20 + $0x40] sm:$0xff] }
  0x16   : > { %318 = vst [vmem:[#allocation2 + $0x8] sm:$0xff] %v317_v6  ;;  %320 = vst [vmem:[#allocation2 + $0x38] sm:$0xff] %v319_v7  ;;  %v323_v9 = vld [vmem:[%s271_s20 + $0x48] sm:$0xff]  ;;  %v325_v10 = vld [vmem:[%s271_s20 + $0x50] sm:$0xff] }
  0x17   : > { %322 = vst [vmem:[#allocation2 + $0x28] sm:$0xff] %v321_v8  ;;  %v327_v11 = vld [vmem:[%s271_s20 + $0x58] sm:$0xff]  ;;  %324 = vst [vmem:[#allocation2 + $0x48] sm:$0xff] %v323_v9 }
  0x18   : > { %326 = vst [vmem:[#allocation2 + $0x10] sm:$0xff] %v325_v10  ;;  %328 = vst [vmem:[#allocation2 + $0x40] sm:$0xff] %v327_v11 }
  0x19   : > { %336 = vsyncadd [#allocation4], 1536 }
  0x1a   : > { %3330 = dma.done.wait [#allocation4], 1536 }
  0x1b   : > { %3331 = vsyncadd [#allocation4], 4294965760  ;;  %v3110_v12 = vld [vmem:[%s4039_s1 + $0x78] sm:$0xff]   ;;  %v3114_v16 = vld [vmem:[%s4039_s1 + $0x70] sm:$0xff]   ;;  %v3352_v56 = vmov 0   ;;  %vm887_vm0 = vcmask 1043456  }
  0x1c   : > { %v3111_v13 = vld [vmem:[%s4039_s1 + $0xf8] sm:$0xff]   ;;  %2841 = vmatprep.subr.bf16.mxu0 %v3110_v12  ;;  %v3115_v17 = vld [vmem:[%s4039_s1 + $0xf0] sm:$0xff]   ;;  %v3118_v20 = vld [vmem:[%s4039_s1 + $0x68] sm:$0xff]   ;;  %800 = vst [vmem:[#allocation3] sm:$0xf] %v3352_v56  ;;  %vm893_vm2 = vcmask 1040384  }
  0x1d   : > { %v3112_v14 = vld [vmem:[%s4039_s1 + $0x38] sm:$0xff]   ;;  %2875 = vmatprep.subr.bf16.mxu1 %v3111_v13  ;;  %v3116_v18 = vld [vmem:[%s4039_s1 + $0x30] sm:$0xff]   ;;  %v3119_v21 = vld [vmem:[%s4039_s1 + $0xe8] sm:$0xff]   ;;  %801 = vst [vmem:[#allocation3 + $0x4] sm:$0x1] %v3352_v56  ;;  %p2663_p7 = scmp.ne.s32.totalorder %s3334_s24, 0 }
  0x1e   : > { %v3113_v15 = vld [vmem:[%s4039_s1 + $0xb8] sm:$0xff]   ;;  %2842 = vmatpush3.bf16.msra.mxu0 %v3112_v14  ;;  %v3117_v19 = vld [vmem:[%s4039_s1 + $0xb0] sm:$0xff]   ;;  %v3120_v22 = vld [vmem:[%s4039_s1 + $0x28] sm:$0xff]   ;;  %802 = vst [vmem:[#allocation3 + $0x8] sm:$0xf] %v3352_v56 }
  0x1f   : > { %2876 = vmatpush3.bf16.msra.mxu1 %v3113_v15  ;;  %2843 = vmatprep.subr.bf16.mxu0 %v3114_v16  ;;  %v3121_v23 = vld [vmem:[%s4039_s1 + $0xa8] sm:$0xff]   ;;  %v3122_v24 = vld [vmem:[%s4039_s1 + $0x60] sm:$0xff]   ;;  %v3126_v28 = vld [vmem:[%s4039_s1 + $0x58] sm:$0xff]   ;;  %803 = vst [vmem:[#allocation3 + $0xc] sm:$0x1] %v3352_v56 }
  0x20   : > { %2877 = vmatprep.subr.bf16.mxu1 %v3115_v17  ;;  %v3123_v25 = vld [vmem:[%s4039_s1 + $0xe0] sm:$0xff]   ;;  %v3127_v29 = vld [vmem:[%s4039_s1 + $0xd8] sm:$0xff]   ;;  %v3130_v32 = vld [vmem:[%s4039_s1 + $0x50] sm:$0xff]   ;;  %804 = vst [vmem:[#allocation3 + $0x10] sm:$0xf] %v3352_v56 }
  0x21   : > { %v3124_v26 = vld [vmem:[%s4039_s1 + $0x20] sm:$0xff]   ;;  %v3128_v30 = vld [vmem:[%s4039_s1 + $0x18] sm:$0xff]   ;;  %v3131_v33 = vld [vmem:[%s4039_s1 + $0xd0] sm:$0xff]   ;;  %805 = vst [vmem:[#allocation3 + $0x14] sm:$0x1] %v3352_v56 }
  0x22   : > { %2844 = vmatpush3.bf16.msra.mxu0 %v3116_v18  ;;  %v3125_v27 = vld [vmem:[%s4039_s1 + $0xa0] sm:$0xff]   ;;  %v3129_v31 = vld [vmem:[%s4039_s1 + $0x98] sm:$0xff]   ;;  %v3132_v34 = vld [vmem:[%s4039_s1 + $0x10] sm:$0xff]   ;;  %806 = vst [vmem:[#allocation3 + $0x18] sm:$0xf] %v3352_v56 }
  0x23   : > { %2878 = vmatpush3.bf16.msra.mxu1 %v3117_v19  ;;  %2845 = vmatprep.subr.bf16.mxu0 %v3118_v20  ;;  %v3133_v35 = vld [vmem:[%s4039_s1 + $0x90] sm:$0xff]   ;;  %v3134_v36 = vld [vmem:[%s4039_s1 + $0x48] sm:$0xff]   ;;  %v3138_v40 = vld [vmem:[%s4039_s1 + $0x40] sm:$0xff]   ;;  %807 = vst [vmem:[#allocation3 + $0x1c] sm:$0x1] %v3352_v56 }
  0x24   : > { %2879 = vmatprep.subr.bf16.mxu1 %v3119_v21  ;;  %v3135_v37 = vld [vmem:[%s4039_s1 + $0xc8] sm:$0xff]   ;;  %v3139_v41 = vld [vmem:[%s4039_s1 + $0xc0] sm:$0xff]   ;;  %v3142_v44 = vld [vmem:[#allocation2 + $0x30] ss:$40 sps:$4 sm:$0xff]   ;;  %808 = vst [vmem:[#allocation3 + $0x20] sm:$0xf] %v3352_v56 }
  0x25   : > { %v3136_v38 = vld [vmem:[%s4039_s1 + $0x8] sm:$0xff]   ;;  %v3140_v42 = vld [vmem:[%s4039_s1] sm:$0xff]   ;;  %v3144_v45 = vld [vmem:[#allocation2 + $0x34] ss:$40 sps:$4 sm:$0xff]   ;;  %809 = vst [vmem:[#allocation3 + $0x24] sm:$0x1] %v3352_v56 }
  0x26   : > { %2846 = vmatpush3.bf16.msra.mxu0 %v3120_v22  ;;  %v3137_v39 = vld [vmem:[%s4039_s1 + $0x88] sm:$0xff]   ;;  %v3141_v43 = vld [vmem:[%s4039_s1 + $0x80] sm:$0xff]   ;;  %709 = vmatprep.mubr.bf16.mxu0 %v3144_v45  ;;  %810 = vst [vmem:[#allocation3 + $0x28] sm:$0xf] %v3352_v56  ;;  %811 = vst [vmem:[#allocation3 + $0x2c] sm:$0x1] %v3352_v56 }
  0x27   : > { %2880 = vmatpush3.bf16.msra.mxu1 %v3121_v23  ;;  %2847 = vmatprep.subr.bf16.mxu0 %v3122_v24  ;;  %v3145_v46 = vld [vmem:[#allocation2] ss:$24 sps:$4 sm:$0xff]   ;;  %v3147_v47 = vld [vmem:[#allocation2 + $0x4] ss:$24 sps:$4 sm:$0xff]   ;;  %v3148_v48 = vld [vmem:[#allocation2 + $0x54] ss:$-72 sps:$4 sm:$0xff]  }
  0x28   : > { %2881 = vmatprep.subr.bf16.mxu1 %v3123_v25  ;;  %766 = vmatprep.mubr.bf16.mxu1 %v3147_v47  ;;  %v3150_v49 = vld [vmem:[#allocation2 + $0x24] ss:$24 sps:$4 sm:$0xff]   ;;  %v3152_v50 = vld [vmem:[#allocation2 + $0x50] ss:$-72 sps:$4 sm:$0xff]   ;;  %v3153_v51 = vld [vmem:[#allocation2 + $0x20] ss:$24 sps:$4 sm:$0xff]  }
  0x29   : > { %v3154_v52 = vld [vmem:[#allocation2 + $0x2c] ss:$-24 sps:$4 sm:$0xff]   ;;  %v3158_v54 = vld [vmem:[#allocation2 + $0x28] ss:$-24 sps:$4 sm:$0xff]   ;;  %v3547_v59 = vld [vmem:[%s4040_s2] ss:$0 sm:$0xff] }
  0x2a   : > { %2848 = vmatpush3.bf16.msra.mxu0 %v3124_v26  ;;  %v3156_v53 = vld [vmem:[#allocation2 + $0x4c] ss:$-8 sps:$4 sm:$0xff]   ;;  %v3159_v55 = vld [vmem:[#allocation2 + $0x48] ss:$-8 sps:$4 sm:$0xff]   ;;  %vm888_vm1 = vsmask.f32 7938 }
  0x2b   : > { %2882 = vmatpush3.bf16.msra.mxu1 %v3125_v27  ;;  %2849 = vmatprep.subr.bf16.mxu0 %v3126_v28  ;;  %vm894_vm3 = vsmask.f32 256  ;;  %vm3552_vm4 = vmand %vm887_vm0, %vm888_vm1 }
  0x2c   : > { %2883 = vmatprep.subr.bf16.mxu1 %v3127_v29  ;;  %vm3558_vm5 = vmand %vm893_vm2, %vm894_vm3 }
  0x2e   : > { %2850 = vmatpush3.bf16.msra.mxu0 %v3128_v30 }
  0x2f   : > { %2884 = vmatpush3.bf16.msra.mxu1 %v3129_v31  ;;  %2851 = vmatprep.subr.bf16.mxu0 %v3130_v32  ;;  %v890_v31 = vld [vmem:[#allocation3] sm:$0xf] }
  0x30   : > { %2885 = vmatprep.subr.bf16.mxu1 %v3131_v33  ;;  %v896_v33 = vld [vmem:[#allocation3 + $0x4] sm:$0x1] }
  0x32   : > { %2852 = vmatpush3.bf16.msra.mxu0 %v3132_v34 }
  0x33   : > { %2886 = vmatpush3.bf16.msra.mxu1 %v3133_v35  ;;  %2853 = vmatprep.subr.bf16.mxu0 %v3134_v36 }
  0x34   : > { %2887 = vmatprep.subr.bf16.mxu1 %v3135_v37 }
  0x36   : > { %2854 = vmatpush3.bf16.msra.mxu0 %v3136_v38 }
  0x37   : > { %2888 = vmatpush3.bf16.msra.mxu1 %v3137_v39  ;;  %2855 = vmatprep.subr.bf16.mxu0 %v3138_v40 }
  0x38   : > { %2889 = vmatprep.subr.bf16.mxu1 %v3139_v41 }
  0x3a   : > { %2856 = vmatpush3.bf16.msra.mxu0 %v3140_v42 }
  0x3b   : > { %2890 = vmatpush3.bf16.msra.mxu1 %v3141_v43 }
  0x3d   : > { %710 = vmatmul.mubr.bf16.vlgmr.msra.gmra.mxu0 %v3142_v44 }
  0x3e   : > { %767 = vmatmul.mubr.bf16.vlgmr.msra.gmra.mxu1 %v3145_v46  ;;  %717 = vmatprep.mubr.bf16.mxu0 %v3148_v48 }
  0x3f   : > { %774 = vmatprep.mubr.bf16.mxu1 %v3150_v49  ;;  %v899_v49 = vld [vmem:[#allocation3 + $0x8] sm:$0xf] }
  0x45   : > { %718 = vmatmul.mubr.bf16.gmra.mxu0 %v3152_v50  ;;  %v902_v50 = vld [vmem:[#allocation3 + $0xc] sm:$0x1] }
  0x46   : > { %775 = vmatmul.mubr.bf16.gmra.mxu1 %v3153_v51  ;;  %725 = vmatprep.mubr.bf16.mxu0 %v3154_v52 }
  0x47   : > { %782 = vmatprep.mubr.bf16.mxu1 %v3156_v53 }
  0x4d   : > { %726 = vmatmul.mubr.bf16.gmra.mxu0 %v3158_v54 }
  0x4e   : > { %783 = vmatmul.mubr.bf16.gmra.mxu1 %v3159_v55 }
  0xfd   : > { %v2857_v57 = vpop.f32.mrf.mxu0 }
  0xfe   : > { %v2891_v58 = vpop.f32.mrf.mxu1 }
  0xff   : > { %v2858_v60 = vpop.f32.mrf.mxu0 }
 0x100   : > { %v2859_v61 = vadd.f32 %v2858_v60, %v2857_v57  ;;  %v2892_v62 = vpop.f32.mrf.mxu1 }
 0x101   : > { %v2860_v63 = vpop.f32.mrf.mxu0  ;;  %v2893_v1 = vadd.f32 %v2892_v62, %v2891_v58 }
 0x102   : > { %v712_v0 = vadd.f32 %v2859_v61, %v3547_v59  ;;  %v2894_v2 = vpop.f32.mrf.mxu1 }
 0x103   : > { %v2861_v3 = vpop.f32.mrf.mxu0 }
 0x104   : > { %v769_v4 = vadd.f32 %v2893_v1, %v712_v0  ;;  %v2862_v5 = vadd.f32 %v2861_v3, %v2860_v63  ;;  %v2895_v6 = vpop.f32.mrf.mxu1 }
 0x105   : > { %v2863_v7 = vpop.f32.mrf.mxu0  ;;  %v2896_v10 = vadd.f32 %v2895_v6, %v2894_v2 }
 0x106   : > { %v791_v8 = vmax.f32 %v769_v4, 0.0  ;;  %v715_v9 = vadd.f32 %v2862_v5, %v3547_v59  ;;  %v2897_v11 = vpop.f32.mrf.mxu1 }
 0x107   : > { %v2864_v12 = vpop.f32.mrf.mxu0 }
 0x108   : > { %v2827_v13 = vpack.c.bf16 %v791_v8, %v791_v8  ;;  %v772_v14 = vadd.f32 %v2896_v10, %v715_v9  ;;  %v2865_v15 = vadd.f32 %v2864_v12, %v2863_v7  ;;  %v2898_v16 = vpop.f32.mrf.mxu1  ;;  %v905_v8 = vld [vmem:[#allocation3 + $0x10] sm:$0xf]  ;;  %v908_v9 = vld [vmem:[#allocation3 + $0x14] sm:$0x1] }
 0x109   : > { %v2866_v17 = vpop.f32.mrf.mxu0  ;;  %v2899_v21 = vadd.f32 %v2898_v16, %v2897_v11 }
 0x10a   : > { %v828_v18 = vshrl.u32 %v2827_v13, 16  ;;  %v792_v19 = vmax.f32 %v772_v14, 0.0  ;;  %v720_v20 = vadd.f32 %v2865_v15, %v3547_v59  ;;  %v2900_v22 = vpop.f32.mrf.mxu1  ;;  %v831_v23 = vshll.u32 %v2827_v13, 16 }
 0x10b   : > { %v2867_v24 = vpop.f32.mrf.mxu0 }
 0x10c   : > { %v830_v25 = vrot.slane %v828_v18, 7  ;;  %v2828_v27 = vpack.c.bf16 %v792_v19, %v792_v19  ;;  %v777_v28 = vadd.f32 %v2899_v21, %v720_v20  ;;  %v2868_v29 = vadd.f32 %v2867_v24, %v2866_v17  ;;  %v2901_v30 = vpop.f32.mrf.mxu1 }
 0x10d   : > { %v2869_v34 = vpop.f32.mrf.mxu0  ;;  %v2902_v42 = vadd.f32 %v2901_v30, %v2900_v22  ;;  %v911_v22 = vld [vmem:[#allocation3 + $0x18] sm:$0xf] }
 0x10e   : > { %v833_v35 = vor.u32 %v831_v23, %v830_v25  ;;  %v834_v36 = vrot.slane %v830_v25, 4  ;;  %v836_v37 = vshrl.u32 %v2828_v27, 16  ;;  %v2903_v38 = vpop.f32.mrf.mxu1  ;;  %v839_v39 = vshll.u32 %v2828_v27, 16  ;;  %v914_v23 = vld [vmem:[#allocation3 + $0x1c] sm:$0x1] }
 0x10f   : > { %v793_v40 = vmax.f32 %v777_v28, 0.0  ;;  %v723_v41 = vadd.f32 %v2868_v29, %v3547_v59  ;;  %v2870_v43 = vpop.f32.mrf.mxu0 }
 0x110   : > { %v891_v44 = vsel %vm3552_vm4, %v833_v35, %v890_v31  ;;  %v897_v45 = vsel %vm3558_vm5, %v834_v36, %v896_v33  ;;  %v838_v46 = vrot.slane %v836_v37, 7  ;;  %v2871_v47 = vadd.f32 %v2870_v43, %v2869_v34  ;;  %v2904_v48 = vpop.f32.mrf.mxu1  ;;  %v917_v34 = vld [vmem:[#allocation3 + $0x20] sm:$0xf]  ;;  %v920_v35 = vld [vmem:[#allocation3 + $0x24] sm:$0x1] }
 0x111   : > { %892 = vst [vmem:[#allocation3] sm:$0xf] %v891_v44  ;;  %898 = vst [vmem:[#allocation3 + $0x4] sm:$0x1] %v897_v45  ;;  %v2829_v51 = vpack.c.bf16 %v793_v40, %v793_v40  ;;  %v780_v52 = vadd.f32 %v2902_v42, %v723_v41  ;;  %v2872_v53 = vpop.f32.mrf.mxu0  ;;  %v2905_v58 = vadd.f32 %v2904_v48, %v2903_v38  ;;  %v923_v43 = vld [vmem:[#allocation3 + $0x28] sm:$0xf] }
 0x112   : > { %v841_v54 = vor.u32 %v839_v39, %v838_v46  ;;  %v842_v55 = vrot.slane %v838_v46, 4  ;;  %v728_v57 = vadd.f32 %v2871_v47, %v3547_v59  ;;  %v2906_v60 = vpop.f32.mrf.mxu1  ;;  %v926_v44 = vld [vmem:[#allocation3 + $0x2c] sm:$0x1] }
 0x113   : > { %v844_v61 = vshrl.u32 %v2829_v51, 16  ;;  %v794_v62 = vmax.f32 %v780_v52, 0.0  ;;  %v2873_v63 = vpop.f32.mrf.mxu0  ;;  %v847_v6 = vshll.u32 %v2829_v51, 16 }
 0x114   : > { %v900_v0 = vsel %vm3552_vm4, %v841_v54, %v899_v49  ;;  %v903_v1 = vsel %vm3558_vm5, %v842_v55, %v902_v50  ;;  %v785_v2 = vadd.f32 %v2905_v58, %v728_v57  ;;  %v2874_v3 = vadd.f32 %v2873_v63, %v2872_v53  ;;  %v2907_v4 = vpop.f32.mrf.mxu1 }
 0x115   : > { %901 = vst [vmem:[#allocation3 + $0x8] sm:$0xf] %v900_v0  ;;  %904 = vst [vmem:[#allocation3 + $0xc] sm:$0x1] %v903_v1  ;;  %v846_v5 = vrot.slane %v844_v61, 7  ;;  %v2830_v7 = vpack.c.bf16 %v794_v62, %v794_v62  ;;  %v2908_v12 = vadd.f32 %v2907_v4, %v2906_v60 }
 0x116   : > { %v795_v10 = vmax.f32 %v785_v2, 0.0  ;;  %v731_v11 = vadd.f32 %v2874_v3, %v3547_v59 }
 0x117   : > { %v849_v13 = vor.u32 %v847_v6, %v846_v5  ;;  %v850_v14 = vrot.slane %v846_v5, 4  ;;  %v852_v15 = vshrl.u32 %v2830_v7, 16  ;;  %v855_v21 = vshll.u32 %v2830_v7, 16 }
 0x118   : > { %v2831_v16 = vpack.c.bf16 %v795_v10, %v795_v10  ;;  %v788_v17 = vadd.f32 %v2908_v12, %v731_v11 }
 0x119   : > { %v906_v18 = vsel %vm3552_vm4, %v849_v13, %v905_v8  ;;  %v909_v19 = vsel %vm3558_vm5, %v850_v14, %v908_v9  ;;  %v854_v20 = vrot.slane %v852_v15, 7 }
 0x11a   : > { %907 = vst [vmem:[#allocation3 + $0x10] sm:$0xf] %v906_v18  ;;  %910 = vst [vmem:[#allocation3 + $0x14] sm:$0x1] %v909_v19  ;;  %v860_v24 = vshrl.u32 %v2831_v16, 16  ;;  %v796_v59 = vmax.f32 %v788_v17, 0.0 }
 0x11b   : > { %v857_v25 = vor.u32 %v855_v21, %v854_v20  ;;  %v858_v27 = vrot.slane %v854_v20, 4  ;;  %v863_v29 = vshll.u32 %v2831_v16, 16 }
 0x11c   : > { %v862_v28 = vrot.slane %v860_v24, 7  ;;  %v2832_v30 = vpack.c.bf16 %v796_v59, %v796_v59 }
 0x11d   : > { %v912_v31 = vsel %vm3552_vm4, %v857_v25, %v911_v22  ;;  %v915_v33 = vsel %vm3558_vm5, %v858_v27, %v914_v23 }
 0x11e   : > { %913 = vst [vmem:[#allocation3 + $0x18] sm:$0xf] %v912_v31  ;;  %916 = vst [vmem:[#allocation3 + $0x1c] sm:$0x1] %v915_v33  ;;  %v865_v36 = vor.u32 %v863_v29, %v862_v28  ;;  %v866_v37 = vrot.slane %v862_v28, 4  ;;  %v868_v38 = vshrl.u32 %v2832_v30, 16 }
 0x11f   : > { %v871_v42 = vshll.u32 %v2832_v30, 16 }
 0x120   : > { %v918_v39 = vsel %vm3552_vm4, %v865_v36, %v917_v34  ;;  %v921_v40 = vsel %vm3558_vm5, %v866_v37, %v920_v35  ;;  %v870_v41 = vrot.slane %v868_v38, 7 }
 0x121   : > { %919 = vst [vmem:[#allocation3 + $0x20] sm:$0xf] %v918_v39  ;;  %922 = vst [vmem:[#allocation3 + $0x24] sm:$0x1] %v921_v40  ;;  %932 = sbr.rel (%p2663_p7) target bundleno = 296 (0x128), region = 82 }
 0x122   : > { %v873_v45 = vor.u32 %v871_v42, %v870_v41  ;;  %v874_v46 = vrot.slane %v870_v41, 4 }
 0x124   : > { %v924_v47 = vsel %vm3552_vm4, %v873_v45, %v923_v43  ;;  %v927_v48 = vsel %vm3558_vm5, %v874_v46, %v926_v44 }
 0x125   : > { %925 = vst [vmem:[#allocation3 + $0x28] sm:$0xf] %v924_v47  ;;  %928 = vst [vmem:[#allocation3 + $0x2c] sm:$0x1] %v927_v48 }
 0x126   : > { %v3353_v49 = vmov 0  }
 0x127   : > { %933 = vst [vmem:[#allocation3] sm:$0xf] %v3353_v49  ;;  %934 = vst [vmem:[#allocation3 + $0x4] sm:$0x1] %v3353_v49 }
 0x128 PF: > { %p2664_p8 = scmp.ne.s32.totalorder %s3334_s24, 1 }
 0x12a   : > { %938 = sbr.rel (%p2664_p8) target bundleno = 305 (0x131), region = 86 }
 0x12f   : > { %v3354_v50 = vmov 0  }
 0x130   : > { %940 = vst [vmem:[#allocation3 + $0x28] sm:$0xf] %v3354_v50  ;;  %941 = vst [vmem:[#allocation3 + $0x2c] sm:$0x1] %v3354_v50 }
 0x131 PF: > { %v3160_v26 = vld [vmem:[%s4041_s3 + $0x78] sm:$0xff]   ;;  %v3164_v53 = vld [vmem:[%s4041_s3 + $0x70] sm:$0xff]   ;;  %v3168_v58 = vld [vmem:[%s4041_s3 + $0x68] sm:$0xff]  }
 0x132   : > { %v3161_v32 = vld [vmem:[%s4041_s3 + $0x38] sm:$0xff]   ;;  %2909 = vmatprep.subr.bf16.mxu0 %v3160_v26  ;;  %v3165_v54 = vld [vmem:[%s4041_s3 + $0x30] sm:$0xff]   ;;  %v3169_v60 = vld [vmem:[%s4041_s3 + $0x28] sm:$0xff]  }
 0x133   : > { %v3162_v51 = vld [vmem:[%s4041_s3 + $0xf8] sm:$0xff]   ;;  %2910 = vmatpush3.bf16.msra.mxu0 %v3161_v32  ;;  %v3166_v55 = vld [vmem:[%s4041_s3 + $0xf0] sm:$0xff]   ;;  %v3170_v61 = vld [vmem:[%s4041_s3 + $0xe8] sm:$0xff]  }
 0x134   : > { %v3163_v52 = vld [vmem:[%s4041_s3 + $0xb8] sm:$0xff]   ;;  %2937 = vmatprep.subr.bf16.mxu1 %v3162_v51  ;;  %2911 = vmatprep.subr.bf16.mxu0 %v3164_v53  ;;  %v3167_v57 = vld [vmem:[%s4041_s3 + $0xb0] sm:$0xff]   ;;  %v3171_v62 = vld [vmem:[%s4041_s3 + $0xa8] sm:$0xff]  }
 0x135   : > { %2938 = vmatpush3.bf16.msra.mxu1 %v3163_v52  ;;  %v3172_v63 = vld [vmem:[%s4041_s3 + $0x60] sm:$0xff]   ;;  %v3176_v3 = vld [vmem:[%s4041_s3 + $0x58] sm:$0xff]   ;;  %v3180_v7 = vld [vmem:[%s4041_s3 + $0x50] sm:$0xff]  }
 0x136   : > { %2939 = vmatprep.subr.bf16.mxu1 %v3166_v55  ;;  %v3173_v0 = vld [vmem:[%s4041_s3 + $0x20] sm:$0xff]   ;;  %v3177_v4 = vld [vmem:[%s4041_s3 + $0x18] sm:$0xff]   ;;  %v3181_v8 = vld [vmem:[%s4041_s3 + $0x10] sm:$0xff]  }
 0x137   : > { %2912 = vmatpush3.bf16.msra.mxu0 %v3165_v54  ;;  %v3174_v1 = vld [vmem:[%s4041_s3 + $0xe0] sm:$0xff]   ;;  %v3178_v5 = vld [vmem:[%s4041_s3 + $0xd8] sm:$0xff]   ;;  %v3182_v9 = vld [vmem:[%s4041_s3 + $0xd0] sm:$0xff]  }
 0x138   : > { %2913 = vmatprep.subr.bf16.mxu0 %v3168_v58  ;;  %v3175_v2 = vld [vmem:[%s4041_s3 + $0xa0] sm:$0xff]   ;;  %v3179_v6 = vld [vmem:[%s4041_s3 + $0x98] sm:$0xff]   ;;  %v3183_v10 = vld [vmem:[%s4041_s3 + $0x90] sm:$0xff]  }
 0x139   : > { %2940 = vmatpush3.bf16.msra.mxu1 %v3167_v57  ;;  %v3184_v11 = vld [vmem:[%s4041_s3 + $0x48] sm:$0xff]   ;;  %v3188_v15 = vld [vmem:[%s4041_s3 + $0x40] sm:$0xff]   ;;  %v3195_v27 = vld [vmem:[%s4041_s3 + $0x178] sm:$0xff]  }
 0x13a   : > { %2941 = vmatprep.subr.bf16.mxu1 %v3170_v61  ;;  %v3185_v12 = vld [vmem:[%s4041_s3 + $0x8] sm:$0xff]   ;;  %v3189_v16 = vld [vmem:[%s4041_s3] sm:$0xff]   ;;  %v956_v31 = vld [vmem:[#allocation3 + $0x10] sm:$0xf] }
 0x13b   : > { %2914 = vmatpush3.bf16.msra.mxu0 %v3169_v60  ;;  %v3186_v13 = vld [vmem:[%s4041_s3 + $0xc8] sm:$0xff]   ;;  %v3190_v17 = vld [vmem:[%s4041_s3 + $0xc0] sm:$0xff]   ;;  %v3204_v35 = vld [vmem:[%s4041_s3 + $0x1f8] sm:$0xff]  }
 0x13c   : > { %2915 = vmatprep.subr.bf16.mxu0 %v3172_v63  ;;  %v3187_v14 = vld [vmem:[%s4041_s3 + $0x88] sm:$0xff]   ;;  %v942_v18 = vld [vmem:[#allocation3] sm:$0xf]  ;;  %v946_v20 = vld [vmem:[#allocation3 + $0x4] sm:$0x1] }
 0x13d   : > { %2942 = vmatpush3.bf16.msra.mxu1 %v3171_v62  ;;  %v943_v19 = vld [vmem:[#allocation3 + $0x8] sm:$0xf]  ;;  %v947_v21 = vld [vmem:[#allocation3 + $0xc] sm:$0x1]  ;;  %v2665_v22 = vcombine.low %v942_v18, %v946_v20  ;;  %v3193_v24 = vld [vmem:[%s4041_s3 + $0x80] sm:$0xff]  }
 0x13e   : > { %2943 = vmatprep.subr.bf16.mxu1 %v3174_v1  ;;  %v2666_v23 = vcombine.low %v943_v19, %v947_v21  ;;  %v955_v28 = vld [vmem:[#allocation3 + $0x8] sm:$0xf]  ;;  %v950_v38 = vld [vmem:[#allocation3] sm:$0xe]  ;;  %v2690_v41 = vcombine.low %v942_v18, %v943_v19  ;;  %v3201_v42 = vld [vmem:[%s4041_s3 + $0x138] sm:$0xff]  }
 0x13f   : > { %2916 = vmatpush3.bf16.msra.mxu0 %v3173_v0  ;;  %v1001_v59 = vshrl.u32 %v2665_v22, 16  ;;  %v1003_v25 = vshll.u32 %v2665_v22, 16  ;;  %v2693_v34 = vcombine.low %v955_v28, %v956_v31  ;;  %v951_v40 = vld [vmem:[#allocation3 + $0x8] sm:$0xe]  ;;  %v2669_v43 = vcombine.low %v950_v38, %v946_v20  ;;  %v3205_v46 = vld [vmem:[%s4041_s3 + $0x1b8] sm:$0xff]   ;;  %v3206_v47 = vld [vmem:[%s4041_s3 + $0x170] sm:$0xff]  }
 0x140   : > { %2917 = vmatprep.subr.bf16.mxu0 %v3176_v3  ;;  %v1008_v29 = vshrl.u32 %v2666_v23, 16  ;;  %v1010_v30 = vshll.u32 %v2666_v23, 16  ;;  %v2670_v44 = vcombine.low %v951_v40, %v947_v21  ;;  %v3207_v50 = vld [vmem:[%s4041_s3 + $0x130] sm:$0xff]   ;;  %v3210_v52 = vld [vmem:[%s4041_s3 + $0x168] sm:$0xff]   ;;  %v3214_v60 = vld [vmem:[%s4041_s3 + $0x160] sm:$0xff]  }
 0x141   : > { %2944 = vmatpush3.bf16.msra.mxu1 %v3175_v2  ;;  %v1005_v33 = vrot.slane %v1003_v25, 1  ;;  %1896 = vmatprep.mubr.bf16.mxu1 %v2693_v34  ;;  %v1040_v48 = vrot.slane %v2669_v43, 1  ;;  %v3208_v32 = vld [vmem:[%s4041_s3 + $0x1f0] sm:$0xff]   ;;  %v3211_v53 = vld [vmem:[%s4041_s3 + $0x128] sm:$0xff]   ;;  %v3215_v63 = vld [vmem:[%s4041_s3 + $0x120] sm:$0xff]  }
 0x142   : > { %2945 = vmatprep.subr.bf16.mxu1 %v3178_v5  ;;  %v1012_v36 = vrot.slane %v1010_v30, 1  ;;  %v1041_v49 = vrot.slane %v2670_v44, 1  ;;  %v3209_v51 = vld [vmem:[%s4041_s3 + $0x1b0] sm:$0xff]   ;;  %v959_v54 = vld [vmem:[#allocation3 + $0xc] sm:$0x1]  ;;  %v3216_v0 = vld [vmem:[%s4041_s3 + $0x1e0] sm:$0xff]  }
 0x143   : > { %2918 = vmatpush3.bf16.msra.mxu0 %v3177_v4  ;;  %v1006_v37 = vor.u32 %v1005_v33, %v1001_v59  ;;  %v3212_v55 = vld [vmem:[%s4041_s3 + $0x1e8] sm:$0xff]   ;;  %v960_v57 = vld [vmem:[#allocation3 + $0x14] sm:$0x1]  ;;  %v964_v62 = vld [vmem:[#allocation3 + $0x10] sm:$0xe]  ;;  %v3732_v1 = vcombine.low %v955_v28, %v959_v54 }
 0x144   : > { %2919 = vmatprep.subr.bf16.mxu0 %v3180_v7  ;;  %v1013_v39 = vor.u32 %v1012_v36, %v1008_v29  ;;  %v2692_v26 = vcombine.low %v1040_v48, %v1041_v49  ;;  %v3213_v58 = vld [vmem:[%s4041_s3 + $0x1a8] sm:$0xff]   ;;  %v3217_v2 = vld [vmem:[%s4041_s3 + $0x1a0] sm:$0xff]   ;;  %v3737_v3 = vcombine.low %v956_v31, %v960_v57  ;;  %v3218_v4 = vld [vmem:[%s4041_s3 + $0x158] sm:$0xff]  }
 0x145   : > { %2946 = vmatpush3.bf16.msra.mxu1 %v3179_v6  ;;  %v963_v61 = vld [vmem:[#allocation3 + $0x8] sm:$0xe]  ;;  %v1065_v5 = vshrl.u32 %v3732_v1, 16  ;;  %v3219_v6 = vld [vmem:[%s4041_s3 + $0x118] sm:$0xff]   ;;  %v944_v7 = vld [vmem:[#allocation3 + $0x10] sm:$0xf] }
 0x146   : > { %2947 = vmatprep.subr.bf16.mxu1 %v3182_v9  ;;  %v2691_v45 = vcombine.low %v1006_v37, %v1013_v39  ;;  %v2678_v9 = vcombine.low %v964_v62, %v960_v57  ;;  %v3224_v18 = vld [vmem:[%s4041_s3 + $0x198] sm:$0xff]   ;;  %v958_v25 = vld [vmem:[#allocation3 + $0x20] sm:$0xf]  ;;  %v1072_v30 = vshrl.u32 %v3737_v3, 16  ;;  %v3228_v33 = vld [vmem:[%s4041_s3 + $0x150] sm:$0xff]  }
 0x147   : > { %2920 = vmatpush3.bf16.msra.mxu0 %v3181_v8  ;;  %v2677_v8 = vcombine.low %v963_v61, %v959_v54  ;;  %v957_v23 = vld [vmem:[#allocation3 + $0x18] sm:$0xf]  ;;  %v952_v34 = vld [vmem:[#allocation3 + $0x10] sm:$0xe]  ;;  %v3760_v39 = vld [vmem:[#allocation3 + $0x24] sm:$0x1] }
 0x148   : > { %2921 = vmatprep.subr.bf16.mxu0 %v3184_v11  ;;  %1847 = vmatprep.mubr.bf16.mxu0 %v2691_v45  ;;  %v948_v11 = vld [vmem:[#allocation3 + $0x14] sm:$0x1]  ;;  %v1105_v59 = vrot.slane %v2678_v9, 1  ;;  %v2702_v31 = vcombine.low %v957_v23, %v958_v25  ;;  %v2676_v49 = vcombine.low %v958_v25, %v3760_v39  ;;  %v3235_v54 = vld [vmem:[%s4041_s3 + $0x108] sm:$0xff]   ;;  %v3238_v62 = vld [vmem:[%s4041_s3 + $0x140] sm:$0xff]  }
 0x149   : > { %2948 = vmatpush3.bf16.msra.mxu1 %v3183_v10  ;;  %v945_v10 = vld [vmem:[#allocation3 + $0x18] sm:$0xf]  ;;  %v3231_v44 = vld [vmem:[%s4041_s3 + $0x110] sm:$0xff]   ;;  %v3237_v61 = vld [vmem:[%s4041_s3 + $0x188] sm:$0xff]  }
 0x14a   : > { %2949 = vmatprep.subr.bf16.mxu1 %v3186_v13  ;;  %v1067_v13 = vshll.u32 %v3732_v1, 16  ;;  %v2699_v38 = vcombine.low %v944_v7, %v945_v10  ;;  %v969_v9 = vld [vmem:[#allocation3 + $0x18] sm:$0xf] }
 0x14b   : > { %2922 = vmatpush3.bf16.msra.mxu0 %v3185_v12  ;;  %v949_v12 = vld [vmem:[#allocation3 + $0x1c] sm:$0x1] }
 0x14c   : > { %2923 = vmatprep.subr.bf16.mxu0 %v3188_v15  ;;  %v2668_v15 = vcombine.low %v945_v10, %v949_v12  ;;  %v1069_v40 = vrot.slane %v1067_v13, 1  ;;  %v972_v10 = vld [vmem:[#allocation3 + $0x14] sm:$0x1] }
 0x14d   : > { %2950 = vmatpush3.bf16.msra.mxu1 %v3187_v14  ;;  %v2667_v14 = vcombine.low %v944_v7, %v948_v11  ;;  %v3242_v7 = vld [vmem:[%s4041_s3 + $0x238] sm:$0xff]  }
 0x14e   : > { %2951 = vmatprep.subr.bf16.mxu1 %v3190_v17  ;;  %v1074_v17 = vshll.u32 %v3737_v3, 16  ;;  %v1022_v21 = vshrl.u32 %v2668_v15, 16  ;;  %v1024_v22 = vshll.u32 %v2668_v15, 16  ;;  %v3240_v3 = vld [vmem:[%s4041_s3 + $0x1c0] sm:$0xff]   ;;  %v965_v15 = vld [vmem:[#allocation3 + $0x18] sm:$0xe] }
 0x14f   : > { %2924 = vmatpush3.bf16.msra.mxu0 %v3189_v16  ;;  %v3222_v16 = vld [vmem:[%s4041_s3 + $0x1d8] sm:$0xff]   ;;  %v1015_v19 = vshrl.u32 %v2667_v14, 16  ;;  %v1017_v20 = vshll.u32 %v2667_v14, 16  ;;  %v3246_v14 = vld [vmem:[%s4041_s3 + $0x230] sm:$0xff]  }
 0x150   : > { %2965 = vmatprep.subr.bf16.mxu0 %v3195_v27  ;;  %v3754_v27 = vld [vmem:[#allocation3 + $0x1c] sm:$0x1]  ;;  %v1026_v29 = vrot.slane %v1024_v22, 1  ;;  %v1076_v45 = vrot.slane %v1074_v17, 1 }
 0x151   : > { %2952 = vmatpush3.bf16.msra.mxu1 %v3193_v24  ;;  %v1104_v24 = vrot.slane %v2677_v8, 1  ;;  %v1019_v28 = vrot.slane %v1017_v20, 1  ;;  %v968_v8 = vld [vmem:[#allocation3 + $0x10] sm:$0xf]  ;;  %v2679_v17 = vcombine.low %v965_v15, %v3754_v27  ;;  %v3856_v15 = vld [vmem:[%s4043_s5 + $0xc8] ss:$16 sps:$4 sm:$0xff]  }
 0x152   : > { %2993 = vmatprep.subr.bf16.mxu1 %v3204_v35  ;;  %1848 = vmatmul.mubr.bf16.vlgmr.msra.gmra.mxu0 %v2690_v41  ;;  %v953_v35 = vld [vmem:[#allocation3 + $0x18] sm:$0xe]  ;;  %v1027_v37 = vor.u32 %v1026_v29, %v1022_v21  ;;  %v2675_v41 = vcombine.low %v957_v23, %v3754_v27  ;;  %v1077_v57 = vor.u32 %v1076_v45, %v1072_v30  ;;  %v971_v29 = vld [vmem:[#allocation3 + $0x28] sm:$0xf]  ;;  %v975_v27 = vld [vmem:[#allocation3 + $0x2c] sm:$0x1] }
 0x153   : > { %2966 = vmatpush3.bf16.msra.mxu0 %v3201_v42  ;;  %v1020_v36 = vor.u32 %v1019_v28, %v1015_v19  ;;  %v2671_v42 = vcombine.low %v952_v34, %v948_v11  ;;  %v2672_v43 = vcombine.low %v953_v35, %v949_v12  ;;  %v2695_v48 = vcombine.low %v1104_v24, %v1105_v59  ;;  %v973_v11 = vld [vmem:[#allocation3 + $0x1c] sm:$0x1]  ;;  %v3249_v24 = vld [vmem:[%s4041_s3 + $0x228] sm:$0xff]   ;;  %v970_v28 = vld [vmem:[#allocation3 + $0x20] sm:$0xf] }
 0x154   : > { %1897 = vmatmul.mubr.bf16.vlgmr.msra.gmra.mxu1 %v2692_v26  ;;  %2967 = vmatprep.subr.bf16.mxu0 %v3206_v47  ;;  %v3232_v47 = vld [vmem:[%s4041_s3 + $0x1d0] sm:$0xff]   ;;  %v2681_v12 = vcombine.low %v968_v8, %v972_v10  ;;  %v2682_v13 = vcombine.low %v969_v9, %v973_v11  ;;  %v1106_v25 = vrot.slane %v2679_v17, 1 }
 0x155   : > { %2994 = vmatpush3.bf16.msra.mxu1 %v3205_v46  ;;  %1904 = vmatprep.mubr.bf16.mxu1 %v2702_v31  ;;  %v2700_v46 = vcombine.low %v1020_v36, %v1027_v37  ;;  %v1043_v26 = vrot.slane %v2672_v43, 1  ;;  %v2684_v36 = vcombine.low %v971_v29, %v975_v27  ;;  %v3276_v17 = vld [vmem:[%s4043_s5 + $0xa4] ss:$16 sps:$4 sm:$0xff]  }
 0x156   : > { %2995 = vmatprep.subr.bf16.mxu1 %v3208_v32  ;;  %v3233_v32 = vld [vmem:[%s4041_s3 + $0x190] sm:$0xff]   ;;  %v1129_v20 = vshrl.u32 %v2681_v12, 16  ;;  %v1131_v21 = vshll.u32 %v2681_v12, 16  ;;  %v1136_v22 = vshrl.u32 %v2682_v13, 16  ;;  %v1138_v23 = vshll.u32 %v2682_v13, 16 }
 0x157   : > { %2968 = vmatpush3.bf16.msra.mxu0 %v3207_v50  ;;  %v1042_v50 = vrot.slane %v2671_v42, 1  ;;  %1855 = vmatprep.mubr.bf16.mxu0 %v2700_v46  ;;  %v1150_v46 = vshrl.u32 %v2684_v36, 16  ;;  %v3270_v12 = vld [vmem:[%s4043_s5 + $0xc4] ss:$16 sps:$4 sm:$0xff]   ;;  %v3268_v13 = vld [vmem:[%s4043_s5 + $0xc0] ss:$16 sps:$4 sm:$0xff]  }
 0x158   : > { %2969 = vmatprep.subr.bf16.mxu0 %v3210_v52  ;;  %v1081_v52 = vshll.u32 %v2675_v41, 16  ;;  %v1133_v30 = vrot.slane %v1131_v21, 1  ;;  %v1140_v31 = vrot.slane %v1138_v23, 1  ;;  %v3882_v21 = vld [vmem:[%s4043_s5 + $0x8c] ss:$16 sps:$4 sm:$0xff]  }
 0x159   : > { %2996 = vmatpush3.bf16.msra.mxu1 %v3209_v51  ;;  %v3234_v51 = vld [vmem:[%s4041_s3 + $0x148] sm:$0xff]  }
 0x15a   : > { %2997 = vmatprep.subr.bf16.mxu1 %v3212_v55  ;;  %1856 = vmatmul.mubr.bf16.gmra.mxu0 %v2699_v38  ;;  %v1070_v55 = vor.u32 %v1069_v40, %v1065_v5  ;;  %v1083_v1 = vrot.slane %v1081_v52, 1  ;;  %v3241_v5 = vld [vmem:[%s4041_s3 + $0x180] sm:$0xff]   ;;  %v1134_v37 = vor.u32 %v1133_v30, %v1129_v20  ;;  %v1141_v38 = vor.u32 %v1140_v31, %v1136_v22  ;;  %v3892_v23 = vld [vmem:[%s4043_s5 + $0x88] ss:$16 sps:$4 sm:$0xff]   ;;  %v3919_v30 = vld [vmem:[%s4043_s5 + $0x4c] ss:$16 sps:$4 sm:$0xff]  }
 0x15b   : > { %2970 = vmatpush3.bf16.msra.mxu0 %v3211_v53  ;;  %v2701_v53 = vcombine.low %v1042_v50, %v1043_v26  ;;  %1945 = vmatprep.mubr.bf16.mxu0 %v2695_v48  ;;  %v3256_v48 = vld [vmem:[%s4041_s3 + $0x218] sm:$0xff]   ;;  %v3282_v20 = vld [vmem:[%s4043_s5 + $0x84] ss:$16 sps:$4 sm:$0xff]   ;;  %v3280_v22 = vld [vmem:[%s4043_s5 + $0x80] ss:$16 sps:$4 sm:$0xff]  }
 0x15c   : > { %2971 = vmatprep.subr.bf16.mxu0 %v3214_v60  ;;  %v1088_v60 = vshll.u32 %v2676_v49, 16  ;;  %v2697_v45 = vcombine.low %v1134_v37, %v1141_v38  ;;  %v3292_v31 = vld [vmem:[%s4043_s5 + $0x40] ss:$16 sps:$4 sm:$0xff]   ;;  %v3306_v37 = vld [vmem:[%s4043_s5 + $0x4] ss:$16 sps:$4 sm:$0xff]  }
 0x15d   : > { %2998 = vmatpush3.bf16.msra.mxu1 %v3213_v58  ;;  %v3236_v58 = vld [vmem:[%s4041_s3 + $0x1c8] sm:$0xff]  }
 0x15e   : > { %2999 = vmatprep.subr.bf16.mxu1 %v3216_v0  ;;  %1905 = vmatmul.mubr.bf16.gmra.mxu1 %v2701_v53  ;;  %v3239_v0 = vld [vmem:[%s4041_s3 + $0x100] sm:$0xff]   ;;  %v3257_v53 = vld [vmem:[%s4041_s3 + $0x210] sm:$0xff]   ;;  %v3955_v38 = vld [vmem:[%s4043_s5 + $0xc] ss:$16 sps:$4 sm:$0xff]  }
 0x15f   : > { %2972 = vmatpush3.bf16.msra.mxu0 %v3215_v63  ;;  %v1079_v63 = vshrl.u32 %v2675_v41, 16  ;;  %v2696_v41 = vcombine.low %v968_v8, %v969_v9  ;;  %1994 = vmatprep.mubr.bf16.mxu1 %v2697_v45  ;;  %v3264_v8 = vld [vmem:[%s4043_s5 + $0xe4] ss:$16 sps:$4 sm:$0xff]   ;;  %v3262_v9 = vld [vmem:[%s4043_s5 + $0xe0] ss:$16 sps:$4 sm:$0xff]  }
 0x160   : > { %2973 = vmatprep.subr.bf16.mxu0 %v3218_v4  ;;  %v1086_v4 = vshrl.u32 %v2676_v49, 16 }
 0x161   : > { %3000 = vmatpush3.bf16.msra.mxu1 %v3217_v2  ;;  %v2694_v2 = vcombine.low %v1070_v55, %v1077_v57 }
 0x162   : > { %3001 = vmatprep.subr.bf16.mxu1 %v3222_v16  ;;  %v966_v16 = vld [vmem:[#allocation3 + $0x20] sm:$0xe] }
 0x163   : > { %2974 = vmatpush3.bf16.msra.mxu0 %v3219_v6  ;;  %v1090_v6 = vrot.slane %v1088_v60, 1  ;;  %v2680_v59 = vcombine.low %v966_v16, %v3760_v39  ;;  %v3255_v39 = vld [vmem:[%s4041_s3 + $0x220] sm:$0xff]  }
 0x164   : > { %2975 = vmatprep.subr.bf16.mxu0 %v3228_v33  ;;  %v974_v33 = vld [vmem:[#allocation3 + $0x24] sm:$0x1]  ;;  %v3274_v16 = vld [vmem:[%s4043_s5 + $0xa0] ss:$16 sps:$4 sm:$0xff]  }
 0x165   : > { %3002 = vmatpush3.bf16.msra.mxu1 %v3224_v18  ;;  %v1084_v18 = vor.u32 %v1083_v1, %v1079_v63  ;;  %v1091_v19 = vor.u32 %v1090_v6, %v1086_v4  ;;  %v1107_v34 = vrot.slane %v2680_v59, 1  ;;  %v2683_v35 = vcombine.low %v970_v28, %v974_v33  ;;  %v3259_v4 = vld [vmem:[%s4041_s3 + $0x200] sm:$0xff]   ;;  %v3901_v59 = vld [vmem:[%s4043_s5 + $0x6c] ss:$16 sps:$4 sm:$0xff]  }
 0x166   : > { %3003 = vmatprep.subr.bf16.mxu1 %v3232_v47  ;;  %v1152_v47 = vshll.u32 %v2684_v36, 16  ;;  %v2705_v63 = vcombine.low %v970_v28, %v971_v29  ;;  %v3910_v28 = vld [vmem:[%s4043_s5 + $0x68] ss:$16 sps:$4 sm:$0xff]   ;;  %v3294_v29 = vld [vmem:[%s4043_s5 + $0x44] ss:$16 sps:$4 sm:$0xff]  }
 0x167   : > { %2976 = vmatpush3.bf16.msra.mxu0 %v3231_v44  ;;  %v2703_v40 = vcombine.low %v1084_v18, %v1091_v19  ;;  %v2704_v42 = vcombine.low %v1106_v25, %v1107_v34  ;;  %v1143_v43 = vshrl.u32 %v2683_v35, 16  ;;  %v1145_v44 = vshll.u32 %v2683_v35, 16  ;;  %v3869_v18 = vld [vmem:[%s4043_s5 + $0xa8] ss:$16 sps:$4 sm:$0xff]   ;;  %v3874_v19 = vld [vmem:[%s4043_s5 + $0xac] ss:$16 sps:$4 sm:$0xff]  }
 0x168   : > { %2977 = vmatprep.subr.bf16.mxu0 %v3234_v51  ;;  %v1154_v50 = vrot.slane %v1152_v47, 1  ;;  %v977_v51 = vld [vmem:[#allocation3 + $0x18] sm:$0xe]  ;;  %v3286_v25 = vld [vmem:[%s4043_s5 + $0x60] ss:$16 sps:$4 sm:$0xff]  }
 0x169   : > { %3004 = vmatpush3.bf16.msra.mxu1 %v3233_v32  ;;  %v1147_v49 = vrot.slane %v1145_v44, 1  ;;  %v976_v32 = vld [vmem:[#allocation3 + $0x10] sm:$0xe]  ;;  %v2686_v55 = vcombine.low %v977_v51, %v973_v11  ;;  %v3839_v11 = vld [vmem:[%s4043_s5 + $0xe8] ss:$16 sps:$4 sm:$0xff]  }
 0x16a   : > { %3005 = vmatprep.subr.bf16.mxu1 %v3236_v58  ;;  %v1155_v52 = vor.u32 %v1154_v50, %v1150_v46  ;;  %v3298_v34 = vld [vmem:[%s4043_s5 + $0x20] ss:$16 sps:$4 sm:$0xff]   ;;  %v3940_v35 = vld [vmem:[%s4043_s5 + $0x2c] ss:$16 sps:$4 sm:$0xff]   ;;  %v3946_v36 = vld [vmem:[%s4043_s5 + $0x28] ss:$16 sps:$4 sm:$0xff]  }
 0x16b   : > { %2978 = vmatpush3.bf16.msra.mxu0 %v3235_v54  ;;  %v1148_v26 = vor.u32 %v1147_v49, %v1143_v43  ;;  %v2685_v54 = vcombine.low %v976_v32, %v972_v10  ;;  %v1169_v60 = vrot.slane %v2686_v55, 1  ;;  %v3267_v10 = vld [vmem:[%s4043_s5 + $0xec] ss:$16 sps:$4 sm:$0xff]  }
 0x16c   : > { %2979 = vmatprep.subr.bf16.mxu0 %v3238_v62  ;;  %v979_v62 = vld [vmem:[#allocation3 + $0x28] sm:$0xe] }
 0x16d   : > { %3006 = vmatpush3.bf16.msra.mxu1 %v3237_v61  ;;  %v2706_v57 = vcombine.low %v1148_v26, %v1155_v52  ;;  %v1168_v58 = vrot.slane %v2685_v54, 1  ;;  %v978_v61 = vld [vmem:[#allocation3 + $0x20] sm:$0xe] }
 0x16e   : > { %3007 = vmatprep.subr.bf16.mxu1 %v3240_v3  ;;  %v2688_v3 = vcombine.low %v979_v62, %v975_v27  ;;  %v3300_v27 = vld [vmem:[%s4043_s5 + $0x24] ss:$16 sps:$4 sm:$0xff]  }
 0x16f   : > { %2980 = vmatpush3.bf16.msra.mxu0 %v3239_v0  ;;  %v3258_v0 = vld [vmem:[%s4041_s3 + $0x208] sm:$0xff]   ;;  %v2698_v1 = vcombine.low %v1168_v58, %v1169_v60 }
 0x170   : > { %3031 = vmatprep.subr.bf16.mxu0 %v3242_v7  ;;  %v1171_v6 = vrot.slane %v2688_v3, 1  ;;  %v2689_v3 = vld [vmem:[%s4042_s4] ss:$0 sm:$0xff] }
 0x171   : > { %3008 = vmatpush3.bf16.msra.mxu1 %v3241_v5 }
 0x172   : > { %1946 = vmatmul.mubr.bf16.vlgmr.msra.gmra.mxu0 %v2694_v2  ;;  %v2687_v2 = vcombine.low %v978_v61, %v974_v33  ;;  %2280 = vmatprep.subr.bf16.mxu1 %v3264_v8  ;;  %v3928_v33 = vld [vmem:[%s4043_s5 + $0x48] ss:$16 sps:$4 sm:$0xff]  }
 0x173   : > { %3032 = vmatpush3.bf16.msra.mxu0 %v3242_v7  ;;  %1953 = vmatprep.mubr.bf16.mxu0 %v2704_v42 }
 0x174   : > { %3033 = vmatprep.subr.bf16.mxu0 %v3246_v14  ;;  %1995 = vmatmul.mubr.bf16.vlgmr.msra.gmra.mxu1 %v2696_v41  ;;  %v1170_v5 = vrot.slane %v2687_v2, 1  ;;  %v3964_v41 = vld [vmem:[%s4043_s5 + $0x8] ss:$16 sps:$4 sm:$0xff]  }
 0x175   : > { %2002 = vmatprep.mubr.bf16.mxu1 %v2706_v57  ;;  %2281 = vmatpush1.bf16.msra.mxu1 %v3262_v9 }
 0x176   : > { %v2707_v7 = vcombine.low %v1170_v5, %v1171_v6  ;;  %2282 = vmatprep.subr.bf16.mxu1 %v3270_v12 }
 0x177   : > { %3034 = vmatpush3.bf16.msra.mxu0 %v3246_v14  ;;  %v3851_v14 = vld [vmem:[%s4043_s5 + $0xcc] ss:$16 sps:$4 sm:$0xff]  }
 0x178   : > { %3035 = vmatprep.subr.bf16.mxu0 %v3249_v24 }
 0x179   : > { %2283 = vmatpush1.bf16.msra.mxu1 %v3268_v13 }
 0x17a   : > { %1954 = vmatmul.mubr.bf16.gmra.mxu0 %v2703_v40  ;;  %2284 = vmatprep.subr.bf16.mxu1 %v3276_v17  ;;  %v3304_v40 = vld [vmem:[%s4043_s5] ss:$16 sps:$4 sm:$0xff]  }
 0x17b   : > { %3036 = vmatpush3.bf16.msra.mxu0 %v3249_v24  ;;  %3047 = vmatprep.mubr.bf16.mxu0 %v2698_v1  ;;  %v3288_v24 = vld [vmem:[%s4043_s5 + $0x64] ss:$16 sps:$4 sm:$0xff]  }
 0x17c   : > { %3037 = vmatprep.subr.bf16.mxu0 %v3255_v39  ;;  %2003 = vmatmul.mubr.bf16.gmra.mxu1 %v2705_v63 }
 0x17d   : > { %2312 = vmatprep.mubr.bf16.mxu1 %v3352_v56  ;;  %2285 = vmatpush1.bf16.msra.mxu1 %v3274_v16 }
 0x17e   : > { %2286 = vmatprep.subr.bf16.mxu1 %v3282_v20 }
 0x17f   : > { %3038 = vmatpush3.bf16.msra.mxu0 %v3255_v39 }
 0x180   : > { %3039 = vmatprep.subr.bf16.mxu0 %v3256_v48 }
 0x181   : > { %2287 = vmatpush1.bf16.msra.mxu1 %v3280_v22 }
 0x182   : > { %2288 = vmatprep.subr.bf16.mxu1 %v3288_v24 }
 0x183   : > { %3040 = vmatpush3.bf16.msra.mxu0 %v3256_v48 }
 0x184   : > { %3041 = vmatprep.subr.bf16.mxu0 %v3257_v53 }
 0x185   : > { %2289 = vmatpush1.bf16.msra.mxu1 %v3286_v25 }
 0x186   : > { %2290 = vmatprep.subr.bf16.mxu1 %v3294_v29 }
 0x187   : > { %3042 = vmatpush3.bf16.msra.mxu0 %v3257_v53 }
 0x188   : > { %3043 = vmatprep.subr.bf16.mxu0 %v3258_v0 }
 0x189   : > { %2291 = vmatpush1.bf16.msra.mxu1 %v3292_v31 }
 0x18a   : > { %2292 = vmatprep.subr.bf16.mxu1 %v3300_v27 }
 0x18b   : > { %3044 = vmatpush3.bf16.msra.mxu0 %v3258_v0 }
 0x18c   : > { %3045 = vmatprep.subr.bf16.mxu0 %v3259_v4 }
 0x18d   : > { %2293 = vmatpush1.bf16.msra.mxu1 %v3298_v34 }
 0x18e   : > { %2294 = vmatprep.subr.bf16.mxu1 %v3306_v37 }
 0x18f   : > { %3046 = vmatpush3.bf16.msra.mxu0 %v3259_v4 }
 0x190   : > { %2333 = vmatprep.subr.bf16.mxu0 %v3267_v10 }
 0x191   : > { %2295 = vmatpush1.bf16.msra.mxu1 %v3304_v40 }
 0x192   : > { %3048 = vmatmul.mubr.bf16.vlgmr.msra.gmra.mxu0 %v2707_v7  ;;  %3051 = vmatprep.subr.bf16.mxu1 %v3267_v10 }
 0x193   : > { %2365 = vmatprep.mubr.bf16.mxu0 %v3352_v56  ;;  %2334 = vmatpush1.bf16.msra.mxu0 %v3839_v11 }
 0x194   : > { %2335 = vmatprep.subr.bf16.mxu0 %v3851_v14 }
 0x197   : > { %2336 = vmatpush1.bf16.msra.mxu0 %v3856_v15 }
 0x198   : > { %2337 = vmatprep.subr.bf16.mxu0 %v3874_v19 }
 0x19b   : > { %2338 = vmatpush1.bf16.msra.mxu0 %v3869_v18 }
 0x19c   : > { %2339 = vmatprep.subr.bf16.mxu0 %v3882_v21 }
 0x19f   : > { %2340 = vmatpush1.bf16.msra.mxu0 %v3892_v23 }
 0x1a0   : > { %2341 = vmatprep.subr.bf16.mxu0 %v3901_v59 }
 0x1a3   : > { %2342 = vmatpush1.bf16.msra.mxu0 %v3910_v28 }
 0x1a4   : > { %2343 = vmatprep.subr.bf16.mxu0 %v3919_v30 }
 0x1a7   : > { %2344 = vmatpush1.bf16.msra.mxu0 %v3928_v33 }
 0x1a8   : > { %2345 = vmatprep.subr.bf16.mxu0 %v3940_v35 }
 0x1ab   : > { %2346 = vmatpush1.bf16.msra.mxu0 %v3946_v36 }
 0x1ac   : > { %2347 = vmatprep.subr.bf16.mxu0 %v3955_v38 }
 0x1af   : > { %2348 = vmatpush1.bf16.msra.mxu0 %v3964_v41 }
 0x212   : > { %v2925_v42 = vpop.f32.mrf.mxu0 }
 0x214   : > { %v2926_v43 = vpop.f32.mrf.mxu0  ;;  %v2953_v44 = vpop.f32.mrf.mxu1 }
 0x215   : > { %v2927_v2 = vadd.f32 %v2926_v43, %v2925_v42 }
 0x216   : > { %v2928_v39 = vpop.f32.mrf.mxu0  ;;  %v2954_v45 = vpop.f32.mrf.mxu1 }
 0x217   : > { %v1850_v7 = vadd.f32 %v2927_v2, %v2689_v3  ;;  %v2955_v8 = vadd.f32 %v2954_v45, %v2953_v44 }
 0x218   : > { %v2929_v46 = vpop.f32.mrf.mxu0  ;;  %v2956_v47 = vpop.f32.mrf.mxu1 }
 0x219   : > { %v2930_v4 = vadd.f32 %v2929_v46, %v2928_v39  ;;  %v1899_v22 = vadd.f32 %v2955_v8, %v1850_v7 }
 0x21a   : > { %v2931_v48 = vpop.f32.mrf.mxu0  ;;  %v2957_v50 = vpop.f32.mrf.mxu1 }
 0x21b   : > { %v1853_v9 = vadd.f32 %v2930_v4, %v2689_v3  ;;  %v2958_v10 = vadd.f32 %v2957_v50, %v2956_v47 }
 0x21c   : > { %v2932_v49 = vpop.f32.mrf.mxu0 }
 0x21d   : > { %v2933_v20 = vadd.f32 %v2932_v49, %v2931_v48  ;;  %v1902_v25 = vadd.f32 %v2958_v10, %v1853_v9 }
 0x21e   : > { %v2934_v26 = vpop.f32.mrf.mxu0  ;;  %v2959_v32 = vpop.f32.mrf.mxu1 }
 0x21f   : > { %v1858_v42 = vadd.f32 %v2933_v20, %v2689_v3 }
 0x220   : > { %v2935_v51 = vpop.f32.mrf.mxu0  ;;  %v2960_v52 = vpop.f32.mrf.mxu1 }
 0x221   : > { %v2936_v16 = vadd.f32 %v2935_v51, %v2934_v26  ;;  %v2961_v43 = vadd.f32 %v2960_v52, %v2959_v32 }
 0x222   : > { %v2962_v54 = vpop.f32.mrf.mxu1 }
 0x223   : > { %v1861_v27 = vadd.f32 %v2936_v16, %v2689_v3  ;;  %v1907_v49 = vadd.f32 %v2961_v43, %v1858_v42  ;;  %v2389_v16 = vld [vmem:[#allocation2 + $0x50] sm:$0xff] }
 0x224   : > { %v2963_v57 = vpop.f32.mrf.mxu1 }
 0x225   : > { %v2964_v34 = vadd.f32 %v2963_v57, %v2962_v54 }
 0x227   : > { %v1910_v26 = vadd.f32 %v2964_v34, %v1861_v27  ;;  %v2399_v34 = vunpack.c.l.bf16 %v2389_v16 }
 0x232   : > { %v2981_v53 = vpop.f32.mrf.mxu0 }
 0x234   : > { %v2982_v55 = vpop.f32.mrf.mxu0  ;;  %v3009_v60 = vpop.f32.mrf.mxu1 }
 0x235   : > { %v2983_v17 = vadd.f32 %v2982_v55, %v2981_v53 }
 0x236   : > { %v2984_v58 = vpop.f32.mrf.mxu0  ;;  %v3010_v61 = vpop.f32.mrf.mxu1 }
 0x237   : > { %v1948_v37 = vadd.f32 %v2983_v17, %v1899_v22  ;;  %v3011_v40 = vadd.f32 %v3010_v61, %v3009_v60  ;;  %v2390_v17 = vld [vmem:[#allocation2 + $0x20] sm:$0xff] }
 0x238   : > { %v2985_v62 = vpop.f32.mrf.mxu0  ;;  %v3012_v63 = vpop.f32.mrf.mxu1 }
 0x239   : > { %v2986_v24 = vadd.f32 %v2985_v62, %v2984_v58  ;;  %v1997_v48 = vadd.f32 %v3011_v40, %v1948_v37  ;;  %v2401_v40 = vunpack.c.l.bf16 %v2390_v17 }
 0x23a   : > { %v2987_v0 = vpop.f32.mrf.mxu0  ;;  %v3013_v1 = vpop.f32.mrf.mxu1 }
 0x23b   : > { %v1951_v44 = vadd.f32 %v2986_v24, %v1902_v25  ;;  %v3014_v45 = vadd.f32 %v3013_v1, %v3012_v63 }
 0x23c   : > { %v2988_v5 = vpop.f32.mrf.mxu0  ;;  %v3015_v6 = vpop.f32.mrf.mxu1 }
 0x23d   : > { %v2989_v51 = vadd.f32 %v2988_v5, %v2987_v0  ;;  %v2000_v2 = vadd.f32 %v3014_v45, %v1951_v44  ;;  %v2402_v44 = vunpack.c.h.bf16 %v2390_v17  ;;  %v2391_v45 = vld [vmem:[#allocation2 + $0x8] sm:$0xff] }
 0x23e   : > { %v2990_v12 = vpop.f32.mrf.mxu0  ;;  %v3016_v13 = vpop.f32.mrf.mxu1 }
 0x23f   : > { %v1956_v57 = vadd.f32 %v2989_v51, %v1907_v49  ;;  %v3017_v60 = vadd.f32 %v3016_v13, %v3015_v6 }
 0x240   : > { %v2991_v29 = vpop.f32.mrf.mxu0  ;;  %v3018_v31 = vpop.f32.mrf.mxu1 }
 0x241   : > { %v2992_v46 = vadd.f32 %v2991_v29, %v2990_v12  ;;  %v2005_v63 = vadd.f32 %v3017_v60, %v1956_v57  ;;  %v2403_v60 = vunpack.c.l.bf16 %v2391_v45 }
 0x242   : > { %v3019_v47 = vpop.f32.mrf.mxu1 }
 0x243   : > { %v1959_v55 = vadd.f32 %v2992_v46, %v1910_v26  ;;  %v3020_v58 = vadd.f32 %v3019_v47, %v3018_v31 }
 0x245   : > { %v2008_v52 = vadd.f32 %v3020_v58, %v1959_v55 }
 0x252   : > { %v3049_v39 = vpop.f32.mrf.mxu0 }
 0x253   : > { %v2054_v7 = vadd.f32 %v3049_v39, %v2005_v63  ;;  %v2400_v39 = vunpack.c.h.bf16 %v2389_v16 }
 0x254   : > { %v2045_v50 = vpop.f32.mrf.mxu0 }
 0x255   : > { %v2046_v62 = vadd.f32 %v2045_v50, %v1997_v48  ;;  %v2062_v5 = vmax.f32 %v2054_v7, 0.0 }
 0x256   : > { %v3050_v53 = vpop.f32.mrf.mxu0 }
 0x257   : > { %v2060_v32 = vmax.f32 %v2046_v62, 0.0  ;;  %v2057_v1 = vadd.f32 %v3050_v53, %v2008_v52  ;;  %v2393_v62 = vld [vmem:[#allocation2 + $0x28] sm:$0xff] }
 0x258   : > { %v2048_v54 = vpop.f32.mrf.mxu0 }
 0x259   : > { %v2049_v61 = vadd.f32 %v2048_v54, %v2000_v2  ;;  %v2063_v0 = vmax.f32 %v2057_v1, 0.0 }
 0x25b   : > { %v2061_v3 = vmax.f32 %v2049_v61, 0.0  ;;  %v2065_v6 = vpack.c.bf16 %v2063_v0, %v2062_v5  ;;  %v2404_v61 = vunpack.c.h.bf16 %v2391_v45  ;;  %v2407_v0 = vunpack.c.l.bf16 %v2393_v62 }
 0x25d   : > { %v2064_v4 = vpack.c.bf16 %v2061_v3, %v2060_v32 }
 0x25f   : > { %2313 = vmatmul.mubr.bf16.vlgmr.msra.gmra.mxu1 %v2064_v4  ;;  %2366 = vmatmul.mubr.bf16.vlgmr.msra.gmra.mxu0 %v2064_v4 }
 0x260   : > { %3059 = vmatpush1.bf16.msra.mxu1 %v3839_v11  ;;  %2322 = vmatprep.mubr.bf16.mxu1 %v3352_v56 }
 0x261   : > { %3052 = vmatprep.subr.bf16.mxu1 %v3851_v14 }
 0x264   : > { %3060 = vmatpush1.bf16.msra.mxu1 %v3856_v15 }
 0x265   : > { %3053 = vmatprep.subr.bf16.mxu1 %v3874_v19 }
 0x267   : > { %2323 = vmatmul.mubr.bf16.gmra.mxu1 %v2065_v6 }
 0x268   : > { %3061 = vmatpush1.bf16.msra.mxu1 %v3869_v18  ;;  %2375 = vmatprep.mubr.bf16.mxu1 %v3352_v56  ;;  %v2100_v56 = vlaneseq  ;;  %v2098_v18 = vld [vmem:[%s4044_s6] sm:$0xf] }
 0x269   : > { %3054 = vmatprep.subr.bf16.mxu1 %v3882_v21 }
 0x26a   : > { %v2101_v11 = vshrl.u32 %v2100_v56, 7 }
 0x26c   : > { %3062 = vmatpush1.bf16.msra.mxu1 %v3892_v23  ;;  %v2102_v14 = vsub.s32 0, %v2101_v11  ;;  %v2110_v15 = vsub.s32 2, %v2101_v11  ;;  %v2106_v19 = vsub.s32 1, %v2101_v11  ;;  %v2114_v21 = vsub.s32 3, %v2101_v11  ;;  %v2387_v23 = vld [vmem:[#allocation2 + $0x58] sm:$0xff] }
 0x26d   : > { %3055 = vmatprep.subr.bf16.mxu1 %v3901_v59  ;;  %v2388_v59 = vld [vmem:[#allocation2 + $0x18] sm:$0xff]  ;;  %v2396_v12 = vunpack.c.h.bf16 %v2387_v23 }
 0x26e   : > { %v2398_v13 = vunpack.c.h.bf16 %v2388_v59 }
 0x270   : > { %3063 = vmatpush1.bf16.msra.mxu1 %v3910_v28  ;;  %v3991_v28 = vrot.slane %v2098_v18, %v2102_v14 }
 0x271   : > { %3056 = vmatprep.subr.bf16.mxu1 %v3919_v30  ;;  %v3993_v30 = vrot.slane %v2098_v18, %v2110_v15 }
 0x274   : > { %3064 = vmatpush1.bf16.msra.mxu1 %v3928_v33  ;;  %v2395_v33 = vunpack.c.l.bf16 %v2387_v23 }
 0x275   : > { %3057 = vmatprep.subr.bf16.mxu1 %v3940_v35  ;;  %v2397_v35 = vunpack.c.l.bf16 %v2388_v59 }
 0x278   : > { %3065 = vmatpush1.bf16.msra.mxu1 %v3946_v36  ;;  %v3995_v36 = vrot.slane %v2098_v18, %v2106_v19 }
 0x279   : > { %3058 = vmatprep.subr.bf16.mxu1 %v3955_v38  ;;  %v3997_v38 = vrot.slane %v2098_v18, %v2114_v21  ;;  %v2408_v18 = vunpack.c.h.bf16 %v2393_v62 }
 0x27c   : > { %3066 = vmatpush1.bf16.msra.mxu1 %v3964_v41 }
 0x27f   : > { %2376 = vmatmul.mubr.bf16.vlgmr.msra.gmra.mxu1 %v2065_v6 }
 0x31f   : > { %v2314_v41 = vpop.f32.mrf.mxu1  ;;  %v2367_v8 = vpop.f32.mrf.mxu0 }
 0x320   : > { %v2315_v9 = vadd.f32 %v2314_v41, %v3991_v28  ;;  %v2368_v10 = vadd.f32 %v2367_v8, %v3993_v30 }
 0x321   : > { %v2316_v20 = vpop.f32.mrf.mxu1  ;;  %v2369_v22 = vpop.f32.mrf.mxu0 }
 0x322   : > { %v2411_v24 = vadd.f32 %v2395_v33, %v2315_v9  ;;  %v2413_v25 = vadd.f32 %v2397_v35, %v2368_v10  ;;  %v2317_v29 = vadd.f32 %v2316_v20, %v3995_v36  ;;  %v2370_v31 = vadd.f32 %v2369_v22, %v3997_v38  ;;  %v2392_v20 = vld [vmem:[#allocation2 + $0x38] sm:$0xff] }
 0x323   : > { %v2318_v27 = vpop.f32.mrf.mxu1  ;;  %v2371_v37 = vpop.f32.mrf.mxu0  ;;  %v2405_v22 = vunpack.c.l.bf16 %v2392_v20 }
 0x324   : > { %v2412_v42 = vadd.f32 %v2396_v12, %v2317_v29  ;;  %v2414_v43 = vadd.f32 %v2398_v13, %v2370_v31  ;;  %v2427_v46 = vmax.f32 %v2411_v24, 0.0  ;;  %v2429_v47 = vmax.f32 %v2413_v25, 0.0  ;;  %v2394_v25 = vld [vmem:[#allocation2 + $0x48] sm:$0xff] }
 0x325   : > { %v2319_v50 = vadd.f32 %v2318_v27, %v3991_v28  ;;  %v2372_v26 = vadd.f32 %v2371_v37, %v3993_v30  ;;  %v2320_v51 = vpop.f32.mrf.mxu1  ;;  %v2373_v48 = vpop.f32.mrf.mxu0  ;;  %v2406_v29 = vunpack.c.h.bf16 %v2392_v20 }
 0x326   : > { %v2428_v49 = vmax.f32 %v2412_v42, 0.0  ;;  %v2430_v53 = vmax.f32 %v2414_v43, 0.0  ;;  %v2321_v55 = vadd.f32 %v2320_v51, %v3995_v36  ;;  %v2374_v58 = vadd.f32 %v2373_v48, %v3997_v38 }
 0x327   : > { %v2415_v2 = vadd.f32 %v2399_v34, %v2319_v50  ;;  %v2417_v54 = vadd.f32 %v2401_v40, %v2372_v26  ;;  %v2324_v57 = vpop.f32.mrf.mxu1  ;;  %v2410_v43 = vunpack.c.h.bf16 %v2394_v25 }
 0x328   : > { %v2833_v32 = vpack.c.bf16 %v2428_v49, %v2427_v46  ;;  %v2834_v52 = vpack.c.bf16 %v2430_v53, %v2429_v47  ;;  %v2416_v3 = vadd.f32 %v2400_v39, %v2321_v55  ;;  %v2418_v63 = vadd.f32 %v2402_v44, %v2374_v58 }
 0x329   : > { %v2431_v1 = vmax.f32 %v2415_v2, 0.0  ;;  %v2325_v4 = vadd.f32 %v2324_v57, %v3991_v28  ;;  %v2326_v7 = vpop.f32.mrf.mxu1  ;;  %v2433_v5 = vmax.f32 %v2417_v54, 0.0 }
 0x32a   : > { %2491 = vst [vmem:[%s3434_s8] sm:$0xff] %v2833_v32  ;;  %2492 = vst [vmem:[%s3434_s8 + $0x8] sm:$0xff] %v2834_v52  ;;  %v2432_v6 = vmax.f32 %v2416_v3, 0.0  ;;  %v2434_v56 = vmax.f32 %v2418_v63, 0.0  ;;  %v2327_v11 = vadd.f32 %v2326_v7, %v3995_v36 }
 0x32b   : > { %v2419_v14 = vadd.f32 %v2403_v60, %v2325_v4  ;;  %v2328_v15 = vpop.f32.mrf.mxu1 }
 0x32c   : > { %v2835_v19 = vpack.c.bf16 %v2432_v6, %v2431_v1  ;;  %v2836_v21 = vpack.c.bf16 %v2434_v56, %v2433_v5  ;;  %v2420_v23 = vadd.f32 %v2404_v61, %v2327_v11  ;;  %v2329_v59 = vadd.f32 %v2328_v15, %v3991_v28 }
 0x32d   : > { %v2330_v33 = vpop.f32.mrf.mxu1  ;;  %v2435_v35 = vmax.f32 %v2419_v14, 0.0 }
 0x32e   : > { %2493 = vst [vmem:[%s3434_s8 + $0x10] sm:$0xff] %v2835_v19  ;;  %2494 = vst [vmem:[%s3434_s8 + $0x18] sm:$0xff] %v2836_v21  ;;  %v2436_v41 = vmax.f32 %v2420_v23, 0.0  ;;  %v2423_v8 = vadd.f32 %v2407_v0, %v2329_v59  ;;  %v2331_v9 = vadd.f32 %v2330_v33, %v3995_v36  ;;  %v2409_v36 = vunpack.c.l.bf16 %v2394_v25 }
 0x330   : > { %v2837_v10 = vpack.c.bf16 %v2436_v41, %v2435_v35  ;;  %v2424_v12 = vadd.f32 %v2408_v18, %v2331_v9  ;;  %v2439_v13 = vmax.f32 %v2423_v8, 0.0 }
 0x332   : > { %2495 = vst [vmem:[%s3434_s8 + $0x20] sm:$0xff] %v2837_v10  ;;  %v2440_v16 = vmax.f32 %v2424_v12, 0.0 }
 0x334   : > { %v2839_v17 = vpack.c.bf16 %v2440_v16, %v2439_v13 }
 0x336   : > { %2497 = vst [vmem:[%s3434_s8 + $0x30] sm:$0xff] %v2839_v17 }
 0x33f   : > { %v2377_v24 = vpop.f32.mrf.mxu1 }
 0x340   : > { %v2378_v28 = vadd.f32 %v2377_v24, %v3993_v30 }
 0x341   : > { %v2379_v31 = vpop.f32.mrf.mxu1 }
 0x342   : > { %v2421_v27 = vadd.f32 %v2405_v22, %v2378_v28  ;;  %v2380_v34 = vadd.f32 %v2379_v31, %v3997_v38 }
 0x343   : > { %v2381_v37 = vpop.f32.mrf.mxu1 }
 0x344   : > { %v2422_v40 = vadd.f32 %v2406_v29, %v2380_v34  ;;  %v2382_v42 = vadd.f32 %v2381_v37, %v3993_v30  ;;  %v2437_v44 = vmax.f32 %v2421_v27, 0.0 }
 0x345   : > { %v2383_v39 = vpop.f32.mrf.mxu1 }
 0x346   : > { %v2438_v45 = vmax.f32 %v2422_v40, 0.0  ;;  %v2425_v46 = vadd.f32 %v2409_v36, %v2382_v42  ;;  %v2384_v47 = vadd.f32 %v2383_v39, %v3997_v38 }
 0x348   : > { %v2838_v50 = vpack.c.bf16 %v2438_v45, %v2437_v44  ;;  %v2426_v26 = vadd.f32 %v2410_v43, %v2384_v47  ;;  %v2441_v51 = vmax.f32 %v2425_v46, 0.0 }
 0x34a   : > { %2496 = vst [vmem:[%s3434_s8 + $0x28] sm:$0xff] %v2838_v50  ;;  %v2442_v48 = vmax.f32 %v2426_v26, 0.0 }
 0x34c   : > { %v2840_v49 = vpack.c.bf16 %v2442_v48, %v2441_v51 }
 0x34e   : > { %2498 = vst [vmem:[%s3434_s8 + $0x38] sm:$0xff] %v2840_v49 }
 0x34f PF: > { %s17_s28 = sadd.s32 1, %s3350_s28   ;;  %s4050_s24 = smov %s3342_s26 }
 0x350   : > { %p14_p9 = scmp.ge.s32.totalorder %s17_s28, 6   ;;  %s4051_s25 = smov %s3346_s27 }
 0x351   : > { %s4052_s26 = smov %s4055_s29  ;;  %s4053_s27 = smov %s4059_s30 }
 0x352   :  { %16 = sbr.rel (!%p14_p9) target bundleno = 3 (0x3), region = 126 }
 0x357   :  { %2534 = vsyncmov [#allocation4] }
 0x35a   :  { %s2535_s8 = vpop.sfrf %2534 }
 0x35b   :  { %p2822_p10 = scmp.ne.s32.totalorder %s2535_s8, 0 }
 0x35d   :  { %2539 = shalt.err (%p2822_p10)  }

// kernel: layer3_forward_pallas.4
= control target key start
LH: loop header
LB: loop body
LE: loop exit
PB: predicated region body
PF: predicated region fallthrough
CT: control target
= control target key end

     0   :  { %s3811_s30 = smov 0   ;;  %s3813_s10 = smov 0   ;;  %s4551_s0 = inlined_call_operand.vmem [shape: bf16[2,16,8,256], index: 0, kind: input, shape index: {}]   ;;  %s4552_s1 = inlined_call_operand.vmem [shape: bf16[256,512], index: 1, kind: input, shape index: {}]   ;;  %s4553_s2 = inlined_call_operand.vmem [shape: f32[1,512], index: 2, kind: input, shape index: {}]   ;;  %s4554_s3 = inlined_call_operand.vmem [shape: bf16[256,128], index: 3, kind: input, shape index: {}]   ;;  %s4555_s4 = inlined_call_operand.vmem [shape: f32[1,128], index: 4, kind: input, shape index: {}]   ;;  %s4556_s5 = inlined_call_operand.vmem [shape: bf16[1152,128], index: 5, kind: input, shape index: {}]   ;;  %s4557_s6 = inlined_call_operand.vmem [shape: f32[1,128], index: 6, kind: input, shape index: {}]   ;;  %s4558_s7 = inlined_call_operand.vmem [shape: bf16[128,512], index: 7, kind: input, shape index: {}]   ;;  %s4559_s8 = inlined_call_operand.vmem [shape: f32[1,512], index: 8, kind: input, shape index: {}]   ;;  %s4560_s9 = inlined_call_operand.vmem [shape: bf16[2,16,8,512], index: 9, kind: output, shape index: {}]  }
   0x1   :  { %s3815_s11 = smov 0   ;;  %s3817_s12 = smov 0  }
   0x2   :  { %s3819_s13 = smov 0  }
   0x3 LB: > { %s28_s14 = sadd.s32 1, %s3748_s11  ;;  %s31_s15 = sadd.s32 1, %s3752_s12  ;;  %s3756_s13 = sphi %s3819_s13, %s19_s13   ;;  %s3752_s12 = sphi %s3817_s12, %s4572_s12   ;;  %s3748_s11 = sphi %s3815_s11, %s4571_s11   ;;  %s3744_s10 = sphi %s3813_s10, %s4570_s10   ;;  %s3740_s30 = sphi %s3811_s30, %s4569_s30  }
   0x4   : > { %p29_p0 = scmp.ge.s32.totalorder %s28_s14, 2  ;;  %p2935_p1 = scmp.ge.s32.totalorder %s3756_s13, 1 }
   0x5   : > { %p269_p2 = scmp.lt.s32.totalorder %s3756_s13, 5 }
   0x6   : > { %s4574_s14 = smov (%p29_p0, %s28_s14), 0  ;;  %s4576_s15 = smov (!%p29_p0, %s31_s15), %s3752_s12 }
   0x7   : > { %4561 = sst [smem:[#allocation7_spill]] %s4574_s14  ;;  %p270_p3 = pnand %p2935_p1, %p269_p2 }
   0x8   : > { %p33_p4 = scmp.ge.s32.totalorder %s4576_s15, 2  ;;  %s3202_s16 = sshll.u32 (!%p270_p3), %s3740_s30, 2 }
   0x9   : > { %273 = sbr.rel (%p270_p3) target bundleno = 881 (0x371), region = 52  ;;  %p306_p5 = scmp.lt.s32.totalorder (!%p270_p3), %s3744_s10, 1 }
   0xa   : > { %s4578_s15 = smov (%p33_p4, %s4576_s15), 0  ;;  %s3203_s17 = sadd.s32 (!%p270_p3), 4, %s3202_s16 }
   0xb   : > { %4562 = sst [smem:[#allocation8_spill]] %s4578_s15  ;;  %s2943_s18 = sshll.u32 (!%p270_p3), %s3744_s10, 5 }
   0xc   : > { %p308_p6 = scmp.lt.s32.totalorder (!%p270_p3), %s3203_s17, 15  ;;  %s2941_s19 = sadd.s32 (!%p270_p3), 4294967295, %s3203_s17 }
   0xd   : > { %s2942_s21 = sshll.u32 (!%p270_p3), %s2941_s19, 1 }
   0xe   : > { %s4580_s10 = smov (!%p306_p5, %s3744_s10), 1  ;;  %s4582_s17 = smov (!%p308_p6, %s3203_s17), 15 }
   0xf   : > { %s2938_s20 = sshll.u32 %s4580_s10, 6  ;;  %s323_s22 = sadd.s32 %s2943_s18, %s2942_s21 }
  0x10   : > { %s2937_s23 = sshll.u32 %s4582_s17, 2  ;;  %s2944_s24 = sshll.u32 %s323_s22, 2 }
  0x11   : > { %s312_s25 = sadd.s32 %s2938_s20, %s2937_s23  ;;  %s325_s28 = scalar_lea.vmem %s4551_s0, %s2944_s24 }
  0x12   : > { %s2939_s29 = sshll.u32 %s312_s25, 2  ;;  %v359_v0 = vld [vmem:[%s325_s28] sm:$0xff]  ;;  %v361_v1 = vld [vmem:[%s325_s28 + $0x8] sm:$0xff]  ;;  %v363_v2 = vld [vmem:[%s325_s28 + $0x10] sm:$0xff] }
  0x13   : > { %s3850_s14 = scalar_lea.vmem %s4560_s9, %s2939_s29  ;;  %360 = vst [vmem:[#allocation2 + $0x28] sm:$0xff] %v359_v0  ;;  %362 = vst [vmem:[#allocation2 + $0x10] sm:$0xff] %v361_v1  ;;  %v365_v3 = vld [vmem:[%s325_s28 + $0x18] sm:$0xff]  ;;  %v367_v4 = vld [vmem:[%s325_s28 + $0x20] sm:$0xff] }
  0x14   : > { %364 = vst [vmem:[#allocation2 + $0x8] sm:$0xff] %v363_v2  ;;  %v369_v5 = vld [vmem:[%s325_s28 + $0x28] sm:$0xff]  ;;  %366 = vst [vmem:[#allocation2] sm:$0xff] %v365_v3 }
  0x15   : > { %368 = vst [vmem:[#allocation2 + $0x18] sm:$0xff] %v367_v4  ;;  %370 = vst [vmem:[#allocation2 + $0x20] sm:$0xff] %v369_v5 }
  0x16   : > { %378 = vsyncadd [#allocation4], 768 }
  0x17   : > { %3736 = dma.done.wait [#allocation4], 768 }
  0x18   : > { %3737 = vsyncadd [#allocation4], 4294966528  ;;  %v3439_v6 = vld [vmem:[%s4554_s3 + $0x78] sm:$0xff]   ;;  %v3441_v8 = vld [vmem:[%s4554_s3 + $0x70] sm:$0xff]   ;;  %v3758_v28 = vmov 0   ;;  %vm708_vm0 = vcmask 1043456  }
  0x19   : > { %v3440_v7 = vld [vmem:[%s4554_s3 + $0x38] sm:$0xff]   ;;  %3220 = vmatprep.subr.bf16.mxu0 %v3439_v6  ;;  %v3442_v9 = vld [vmem:[%s4554_s3 + $0x30] sm:$0xff]   ;;  %v3443_v10 = vld [vmem:[%s4554_s3 + $0x68] sm:$0xff]   ;;  %621 = vst [vmem:[#allocation3] sm:$0xf] %v3758_v28  ;;  %vm714_vm2 = vcmask 1040384  }
  0x1a   : > { %3221 = vmatpush3.bf16.msra.mxu0 %v3440_v7  ;;  %v3444_v11 = vld [vmem:[%s4554_s3 + $0x28] sm:$0xff]   ;;  %v3445_v12 = vld [vmem:[%s4554_s3 + $0x60] sm:$0xff]   ;;  %v3447_v14 = vld [vmem:[%s4554_s3 + $0x58] sm:$0xff]   ;;  %622 = vst [vmem:[#allocation3 + $0x4] sm:$0x1] %v3758_v28  ;;  %p2974_p7 = scmp.ne.s32.totalorder %s3740_s30, 0 }
  0x1b   : > { %3222 = vmatprep.subr.bf16.mxu0 %v3441_v8  ;;  %v3446_v13 = vld [vmem:[%s4554_s3 + $0x20] sm:$0xff]   ;;  %v3448_v15 = vld [vmem:[%s4554_s3 + $0x18] sm:$0xff]   ;;  %v3449_v16 = vld [vmem:[%s4554_s3 + $0x50] sm:$0xff]   ;;  %623 = vst [vmem:[#allocation3 + $0x8] sm:$0xf] %v3758_v28 }
  0x1c   : > { %v3457_v17 = vld [vmem:[#allocation2 + $0x2c] ss:$-24 sps:$4 sm:$0xff]   ;;  %v3453_v21 = vld [vmem:[%s4554_s3 + $0x40] sm:$0xff]   ;;  %v3455_v23 = vld [vmem:[#allocation2 + $0x28] ss:$-24 sps:$4 sm:$0xff]  }
  0x1d   : > { %v3450_v18 = vld [vmem:[%s4554_s3 + $0x10] sm:$0xff]   ;;  %587 = vmatprep.mubr.bf16.mxu0 %v3457_v17  ;;  %v3451_v19 = vld [vmem:[%s4554_s3 + $0x48] sm:$0xff]   ;;  %v3454_v22 = vld [vmem:[%s4554_s3] sm:$0xff]   ;;  %624 = vst [vmem:[#allocation3 + $0xc] sm:$0x1] %v3758_v28 }
  0x1e   : > { %3223 = vmatpush3.bf16.msra.mxu0 %v3442_v9  ;;  %v3452_v20 = vld [vmem:[%s4554_s3 + $0x8] sm:$0xff]   ;;  %v3461_v26 = vld [vmem:[#allocation2 + $0x1c] ss:$8 sps:$4 sm:$0xff]   ;;  %v3463_v27 = vld [vmem:[#allocation2 + $0x18] ss:$8 sps:$4 sm:$0xff]  }
  0x1f   : > { %3224 = vmatprep.subr.bf16.mxu0 %v3443_v10  ;;  %v3458_v24 = vld [vmem:[#allocation2 + $0xc] ss:$-8 sps:$4 sm:$0xff]   ;;  %v3460_v25 = vld [vmem:[#allocation2 + $0x8] ss:$-8 sps:$4 sm:$0xff]   ;;  %625 = vst [vmem:[#allocation3 + $0x10] sm:$0xf] %v3758_v28 }
  0x20   : > { %626 = vst [vmem:[#allocation3 + $0x14] sm:$0x1] %v3758_v28  ;;  %627 = vst [vmem:[#allocation3 + $0x18] sm:$0xf] %v3758_v28  ;;  %v3915_v30 = vld [vmem:[%s4555_s4] ss:$0 sm:$0xff] }
  0x21   : > { %628 = vst [vmem:[#allocation3 + $0x1c] sm:$0x1] %v3758_v28  ;;  %629 = vst [vmem:[#allocation3 + $0x20] sm:$0xf] %v3758_v28  ;;  %vm709_vm1 = vsmask.f32 7938 }
  0x22   : > { %3225 = vmatpush3.bf16.msra.mxu0 %v3444_v11  ;;  %630 = vst [vmem:[#allocation3 + $0x24] sm:$0x1] %v3758_v28  ;;  %631 = vst [vmem:[#allocation3 + $0x28] sm:$0xf] %v3758_v28  ;;  %vm715_vm3 = vsmask.f32 256 }
  0x23   : > { %3226 = vmatprep.subr.bf16.mxu0 %v3445_v12  ;;  %632 = vst [vmem:[#allocation3 + $0x2c] sm:$0x1] %v3758_v28  ;;  %vm3919_vm4 = vmand %vm708_vm0, %vm709_vm1  ;;  %v711_v51 = vld [vmem:[#allocation3] sm:$0xf]  ;;  %v717_v53 = vld [vmem:[#allocation3 + $0x4] sm:$0x1] }
  0x24   : > { %vm3924_vm5 = vmand %vm714_vm2, %vm715_vm3  ;;  %v720_v1 = vld [vmem:[#allocation3 + $0x8] sm:$0xf]  ;;  %v723_v2 = vld [vmem:[#allocation3 + $0xc] sm:$0x1] }
  0x26   : > { %3227 = vmatpush3.bf16.msra.mxu0 %v3446_v13 }
  0x27   : > { %3228 = vmatprep.subr.bf16.mxu0 %v3447_v14 }
  0x2a   : > { %3229 = vmatpush3.bf16.msra.mxu0 %v3448_v15 }
  0x2b   : > { %3230 = vmatprep.subr.bf16.mxu0 %v3449_v16 }
  0x2e   : > { %3231 = vmatpush3.bf16.msra.mxu0 %v3450_v18 }
  0x2f   : > { %3232 = vmatprep.subr.bf16.mxu0 %v3451_v19  ;;  %v726_v19 = vld [vmem:[#allocation3 + $0x10] sm:$0xf] }
  0x32   : > { %3233 = vmatpush3.bf16.msra.mxu0 %v3452_v20  ;;  %v729_v20 = vld [vmem:[#allocation3 + $0x14] sm:$0x1] }
  0x33   : > { %3234 = vmatprep.subr.bf16.mxu0 %v3453_v21 }
  0x36   : > { %3235 = vmatpush3.bf16.msra.mxu0 %v3454_v22 }
  0x39   : > { %588 = vmatmul.mubr.bf16.vlgmr.msra.gmra.mxu0 %v3455_v23 }
  0x3a   : > { %595 = vmatprep.mubr.bf16.mxu0 %v3458_v24 }
  0x41   : > { %596 = vmatmul.mubr.bf16.gmra.mxu0 %v3460_v25 }
  0x42   : > { %603 = vmatprep.mubr.bf16.mxu0 %v3461_v26 }
  0x49   : > { %604 = vmatmul.mubr.bf16.gmra.mxu0 %v3463_v27 }
  0xf9   : > { %v3236_v29 = vpop.f32.mrf.mxu0 }
  0xfb   : > { %v3237_v31 = vpop.f32.mrf.mxu0 }
  0xfc   : > { %v3238_v32 = vadd.f32 %v3237_v31, %v3236_v29 }
  0xfd   : > { %v3239_v33 = vpop.f32.mrf.mxu0 }
  0xfe   : > { %v590_v34 = vadd.f32 %v3238_v32, %v3915_v30 }
  0xff   : > { %v3240_v35 = vpop.f32.mrf.mxu0 }
 0x100   : > { %v612_v36 = vmax.f32 %v590_v34, 0.0  ;;  %v3241_v37 = vadd.f32 %v3240_v35, %v3239_v33  ;;  %v732_v34 = vld [vmem:[#allocation3 + $0x18] sm:$0xf]  ;;  %v735_v35 = vld [vmem:[#allocation3 + $0x1c] sm:$0x1] }
 0x101   : > { %v3242_v38 = vpop.f32.mrf.mxu0 }
 0x102   : > { %v3206_v39 = vpack.c.bf16 %v612_v36, %v612_v36  ;;  %v593_v40 = vadd.f32 %v3241_v37, %v3915_v30 }
 0x103   : > { %v3243_v41 = vpop.f32.mrf.mxu0 }
 0x104   : > { %v649_v42 = vshrl.u32 %v3206_v39, 16  ;;  %v613_v43 = vmax.f32 %v593_v40, 0.0  ;;  %v3244_v44 = vadd.f32 %v3243_v41, %v3242_v38  ;;  %v652_v47 = vshll.u32 %v3206_v39, 16 }
 0x105   : > { %v3245_v45 = vpop.f32.mrf.mxu0 }
 0x106   : > { %v651_v46 = vrot.slane %v649_v42, 7  ;;  %v3207_v49 = vpack.c.bf16 %v613_v43, %v613_v43  ;;  %v598_v50 = vadd.f32 %v3244_v44, %v3915_v30  ;;  %v738_v44 = vld [vmem:[#allocation3 + $0x20] sm:$0xf] }
 0x107   : > { %v3246_v54 = vpop.f32.mrf.mxu0 }
 0x108   : > { %v654_v55 = vor.u32 %v652_v47, %v651_v46  ;;  %v655_v56 = vrot.slane %v651_v46, 4  ;;  %v657_v57 = vshrl.u32 %v3207_v49, 16  ;;  %v614_v58 = vmax.f32 %v598_v50, 0.0 }
 0x109   : > { %v3247_v59 = vadd.f32 %v3246_v54, %v3245_v45  ;;  %v3248_v60 = vpop.f32.mrf.mxu0  ;;  %v660_v0 = vshll.u32 %v3207_v49, 16  ;;  %v741_v45 = vld [vmem:[#allocation3 + $0x24] sm:$0x1] }
 0x10a   : > { %v712_v61 = vsel %vm3919_vm4, %v654_v55, %v711_v51  ;;  %v718_v62 = vsel %vm3924_vm5, %v655_v56, %v717_v53  ;;  %v659_v63 = vrot.slane %v657_v57, 7  ;;  %v3208_v3 = vpack.c.bf16 %v614_v58, %v614_v58  ;;  %v744_v55 = vld [vmem:[#allocation3 + $0x28] sm:$0xf]  ;;  %v747_v56 = vld [vmem:[#allocation3 + $0x2c] sm:$0x1] }
 0x10b   : > { %713 = vst [vmem:[#allocation3] sm:$0xf] %v712_v61  ;;  %719 = vst [vmem:[#allocation3 + $0x4] sm:$0x1] %v718_v62  ;;  %v601_v4 = vadd.f32 %v3247_v59, %v3915_v30  ;;  %v3249_v5 = vpop.f32.mrf.mxu0 }
 0x10c   : > { %v662_v6 = vor.u32 %v660_v0, %v659_v63  ;;  %v663_v7 = vrot.slane %v659_v63, 4  ;;  %v3250_v8 = vadd.f32 %v3249_v5, %v3248_v60  ;;  %v665_v9 = vshrl.u32 %v3208_v3, 16 }
 0x10d   : > { %v615_v10 = vmax.f32 %v601_v4, 0.0  ;;  %v3251_v11 = vpop.f32.mrf.mxu0  ;;  %v668_v16 = vshll.u32 %v3208_v3, 16 }
 0x10e   : > { %v721_v12 = vsel %vm3919_vm4, %v662_v6, %v720_v1  ;;  %v724_v13 = vsel %vm3924_vm5, %v663_v7, %v723_v2  ;;  %v606_v14 = vadd.f32 %v3250_v8, %v3915_v30  ;;  %v667_v15 = vrot.slane %v665_v9, 7 }
 0x10f   : > { %722 = vst [vmem:[#allocation3 + $0x8] sm:$0xf] %v721_v12  ;;  %725 = vst [vmem:[#allocation3 + $0xc] sm:$0x1] %v724_v13  ;;  %v3209_v17 = vpack.c.bf16 %v615_v10, %v615_v10  ;;  %v3252_v18 = vpop.f32.mrf.mxu0 }
 0x110   : > { %v616_v21 = vmax.f32 %v606_v14, 0.0  ;;  %v3253_v22 = vadd.f32 %v3252_v18, %v3251_v11  ;;  %v670_v23 = vor.u32 %v668_v16, %v667_v15  ;;  %v671_v24 = vrot.slane %v667_v15, 4 }
 0x111   : > { %v673_v25 = vshrl.u32 %v3209_v17, 16  ;;  %v676_v33 = vshll.u32 %v3209_v17, 16 }
 0x112   : > { %v3210_v26 = vpack.c.bf16 %v616_v21, %v616_v21  ;;  %v609_v27 = vadd.f32 %v3253_v22, %v3915_v30  ;;  %v727_v29 = vsel %vm3919_vm4, %v670_v23, %v726_v19  ;;  %v730_v31 = vsel %vm3924_vm5, %v671_v24, %v729_v20 }
 0x113   : > { %v675_v32 = vrot.slane %v673_v25, 7  ;;  %728 = vst [vmem:[#allocation3 + $0x10] sm:$0xf] %v727_v29  ;;  %731 = vst [vmem:[#allocation3 + $0x14] sm:$0x1] %v730_v31 }
 0x114   : > { %v681_v36 = vshrl.u32 %v3210_v26, 16  ;;  %v617_v37 = vmax.f32 %v609_v27, 0.0  ;;  %v684_v41 = vshll.u32 %v3210_v26, 16 }
 0x115   : > { %v678_v38 = vor.u32 %v676_v33, %v675_v32  ;;  %v679_v39 = vrot.slane %v675_v32, 4 }
 0x116   : > { %v683_v40 = vrot.slane %v681_v36, 7  ;;  %v3211_v42 = vpack.c.bf16 %v617_v37, %v617_v37 }
 0x117   : > { %v733_v30 = vsel %vm3919_vm4, %v678_v38, %v732_v34  ;;  %v736_v43 = vsel %vm3924_vm5, %v679_v39, %v735_v35 }
 0x118   : > { %734 = vst [vmem:[#allocation3 + $0x18] sm:$0xf] %v733_v30  ;;  %737 = vst [vmem:[#allocation3 + $0x1c] sm:$0x1] %v736_v43  ;;  %v686_v46 = vor.u32 %v684_v41, %v683_v40  ;;  %v687_v47 = vrot.slane %v683_v40, 4  ;;  %v689_v49 = vshrl.u32 %v3211_v42, 16 }
 0x119   : > { %v692_v54 = vshll.u32 %v3211_v42, 16 }
 0x11a   : > { %v739_v50 = vsel %vm3919_vm4, %v686_v46, %v738_v44  ;;  %v742_v51 = vsel %vm3924_vm5, %v687_v47, %v741_v45  ;;  %v691_v53 = vrot.slane %v689_v49, 7 }
 0x11b   : > { %740 = vst [vmem:[#allocation3 + $0x20] sm:$0xf] %v739_v50  ;;  %743 = vst [vmem:[#allocation3 + $0x24] sm:$0x1] %v742_v51  ;;  %753 = sbr.rel (%p2974_p7) target bundleno = 290 (0x122), region = 90 }
 0x11c   : > { %v694_v57 = vor.u32 %v692_v54, %v691_v53  ;;  %v695_v58 = vrot.slane %v691_v53, 4 }
 0x11e   : > { %v745_v59 = vsel %vm3919_vm4, %v694_v57, %v744_v55  ;;  %v748_v60 = vsel %vm3924_vm5, %v695_v58, %v747_v56 }
 0x11f   : > { %746 = vst [vmem:[#allocation3 + $0x28] sm:$0xf] %v745_v59  ;;  %749 = vst [vmem:[#allocation3 + $0x2c] sm:$0x1] %v748_v60 }
 0x120   : > { %v3759_v61 = vmov 0  }
 0x121   : > { %754 = vst [vmem:[#allocation3] sm:$0xf] %v3759_v61  ;;  %755 = vst [vmem:[#allocation3 + $0x4] sm:$0x1] %v3759_v61 }
 0x122 PF: > { %p2975_p8 = scmp.ne.s32.totalorder %s3740_s30, 1 }
 0x124   : > { %759 = sbr.rel (%p2975_p8) target bundleno = 299 (0x12b), region = 94 }
 0x129   : > { %v3760_v62 = vmov 0  }
 0x12a   : > { %761 = vst [vmem:[#allocation3 + $0x28] sm:$0xf] %v3760_v62  ;;  %762 = vst [vmem:[#allocation3 + $0x2c] sm:$0x1] %v3760_v62 }
 0x12b PF: > { %v3464_v48 = vld [vmem:[%s4556_s5 + $0x78] sm:$0xff]   ;;  %v3468_v1 = vld [vmem:[%s4556_s5 + $0x70] sm:$0xff]   ;;  %v3472_v5 = vld [vmem:[%s4556_s5 + $0x68] sm:$0xff]  }
 0x12c   : > { %v3465_v52 = vld [vmem:[%s4556_s5 + $0x38] sm:$0xff]   ;;  %3254 = vmatprep.subr.bf16.mxu1 %v3464_v48  ;;  %v3469_v2 = vld [vmem:[%s4556_s5 + $0x30] sm:$0xff]   ;;  %v3473_v6 = vld [vmem:[%s4556_s5 + $0x28] sm:$0xff]  }
 0x12d   : > { %v3466_v63 = vld [vmem:[%s4556_s5 + $0xf8] sm:$0xff]   ;;  %3255 = vmatpush3.bf16.msra.mxu1 %v3465_v52  ;;  %v3470_v3 = vld [vmem:[%s4556_s5 + $0xf0] sm:$0xff]   ;;  %v3474_v7 = vld [vmem:[%s4556_s5 + $0xe8] sm:$0xff]  }
 0x12e   : > { %v3467_v0 = vld [vmem:[%s4556_s5 + $0xb8] sm:$0xff]   ;;  %3282 = vmatprep.subr.bf16.mxu0 %v3466_v63  ;;  %3256 = vmatprep.subr.bf16.mxu1 %v3468_v1  ;;  %v3471_v4 = vld [vmem:[%s4556_s5 + $0xb0] sm:$0xff]   ;;  %v3475_v8 = vld [vmem:[%s4556_s5 + $0xa8] sm:$0xff]  }
 0x12f   : > { %3283 = vmatpush3.bf16.msra.mxu0 %v3467_v0  ;;  %v3476_v9 = vld [vmem:[%s4556_s5 + $0x60] sm:$0xff]   ;;  %v3480_v13 = vld [vmem:[%s4556_s5 + $0x58] sm:$0xff]   ;;  %v3484_v17 = vld [vmem:[%s4556_s5 + $0x50] sm:$0xff]  }
 0x130   : > { %3284 = vmatprep.subr.bf16.mxu0 %v3470_v3  ;;  %v3477_v10 = vld [vmem:[%s4556_s5 + $0x20] sm:$0xff]   ;;  %v3481_v14 = vld [vmem:[%s4556_s5 + $0x18] sm:$0xff]   ;;  %v3485_v18 = vld [vmem:[%s4556_s5 + $0x10] sm:$0xff]  }
 0x131   : > { %3257 = vmatpush3.bf16.msra.mxu1 %v3469_v2  ;;  %v3478_v11 = vld [vmem:[%s4556_s5 + $0xe0] sm:$0xff]   ;;  %v3482_v15 = vld [vmem:[%s4556_s5 + $0xd8] sm:$0xff]   ;;  %v3486_v19 = vld [vmem:[%s4556_s5 + $0xd0] sm:$0xff]  }
 0x132   : > { %3258 = vmatprep.subr.bf16.mxu1 %v3472_v5  ;;  %v3479_v12 = vld [vmem:[%s4556_s5 + $0xa0] sm:$0xff]   ;;  %v3483_v16 = vld [vmem:[%s4556_s5 + $0x98] sm:$0xff]   ;;  %v3487_v20 = vld [vmem:[%s4556_s5 + $0x90] sm:$0xff]  }
 0x133   : > { %3285 = vmatpush3.bf16.msra.mxu0 %v3471_v4  ;;  %v3488_v21 = vld [vmem:[%s4556_s5 + $0x48] sm:$0xff]   ;;  %v3492_v25 = vld [vmem:[%s4556_s5 + $0x40] sm:$0xff]   ;;  %v763_v29 = vld [vmem:[#allocation3] sm:$0xf] }
 0x134   : > { %3286 = vmatprep.subr.bf16.mxu0 %v3474_v7  ;;  %v3489_v22 = vld [vmem:[%s4556_s5 + $0x8] sm:$0xff]   ;;  %v3493_v26 = vld [vmem:[%s4556_s5] sm:$0xff]   ;;  %v764_v31 = vld [vmem:[#allocation3 + $0x8] sm:$0xf] }
 0x135   : > { %3259 = vmatpush3.bf16.msra.mxu1 %v3473_v6  ;;  %v3490_v23 = vld [vmem:[%s4556_s5 + $0xc8] sm:$0xff]   ;;  %v3494_v27 = vld [vmem:[%s4556_s5 + $0xc0] sm:$0xff]   ;;  %v767_v32 = vld [vmem:[#allocation3 + $0x4] sm:$0x1]  ;;  %v3001_v53 = vcombine.low %v763_v29, %v764_v31 }
 0x136   : > { %3260 = vmatprep.subr.bf16.mxu1 %v3476_v9  ;;  %v3491_v24 = vld [vmem:[%s4556_s5 + $0x88] sm:$0xff]   ;;  %v768_v33 = vld [vmem:[#allocation3 + $0xc] sm:$0x1]  ;;  %v2976_v34 = vcombine.low %v763_v29, %v767_v32  ;;  %v3497_v36 = vld [vmem:[%s4556_s5 + $0x80] sm:$0xff]  }
 0x137   : > { %3287 = vmatpush3.bf16.msra.mxu0 %v3475_v8  ;;  %v2977_v35 = vcombine.low %v764_v31, %v768_v33  ;;  %v3499_v39 = vld [vmem:[%s4556_s5 + $0x178] sm:$0xff]   ;;  %v777_v30 = vld [vmem:[#allocation3 + $0x10] sm:$0xf]  ;;  %v771_v49 = vld [vmem:[#allocation3] sm:$0xe] }
 0x138   : > { %3288 = vmatprep.subr.bf16.mxu0 %v3478_v11  ;;  %v822_v37 = vshrl.u32 %v2976_v34, 16  ;;  %v824_v38 = vshll.u32 %v2976_v34, 16  ;;  %v776_v40 = vld [vmem:[#allocation3 + $0x8] sm:$0xf]  ;;  %v2980_v55 = vcombine.low %v771_v49, %v767_v32  ;;  %v3510_v59 = vld [vmem:[%s4556_s5 + $0x170] sm:$0xff]   ;;  %v3514_v0 = vld [vmem:[%s4556_s5 + $0x168] sm:$0xff]  }
 0x139   : > { %3261 = vmatpush3.bf16.msra.mxu1 %v3477_v10  ;;  %v829_v41 = vshrl.u32 %v2977_v35, 16  ;;  %v831_v42 = vshll.u32 %v2977_v35, 16  ;;  %v3004_v44 = vcombine.low %v776_v40, %v777_v30  ;;  %v3508_v45 = vld [vmem:[%s4556_s5 + $0x1f8] sm:$0xff]   ;;  %v3511_v62 = vld [vmem:[%s4556_s5 + $0x130] sm:$0xff]   ;;  %v3515_v1 = vld [vmem:[%s4556_s5 + $0x128] sm:$0xff]  }
 0x13a   : > { %3262 = vmatprep.subr.bf16.mxu1 %v3480_v13  ;;  %v826_v43 = vrot.slane %v824_v38, 1  ;;  %v772_v51 = vld [vmem:[#allocation3 + $0x8] sm:$0xe]  ;;  %v861_v60 = vrot.slane %v2980_v55, 1  ;;  %v3512_v52 = vld [vmem:[%s4556_s5 + $0x1f0] sm:$0xff]   ;;  %v3516_v3 = vld [vmem:[%s4556_s5 + $0x1e8] sm:$0xff]  }
 0x13b   : > { %3289 = vmatpush3.bf16.msra.mxu0 %v3479_v12  ;;  %v833_v46 = vrot.slane %v831_v42, 1  ;;  %1717 = vmatprep.mubr.bf16.mxu0 %v3004_v44  ;;  %v3505_v54 = vld [vmem:[%s4556_s5 + $0x138] sm:$0xff]   ;;  %v2981_v56 = vcombine.low %v772_v51, %v768_v33  ;;  %v3513_v63 = vld [vmem:[%s4556_s5 + $0x1b0] sm:$0xff]   ;;  %v781_v4 = vld [vmem:[#allocation3 + $0x14] sm:$0x1] }
 0x13c   : > { %3290 = vmatprep.subr.bf16.mxu0 %v3482_v15  ;;  %v827_v47 = vor.u32 %v826_v43, %v822_v37  ;;  %v3509_v58 = vld [vmem:[%s4556_s5 + $0x1b8] sm:$0xff]   ;;  %v3517_v5 = vld [vmem:[%s4556_s5 + $0x1a8] sm:$0xff]   ;;  %v3518_v6 = vld [vmem:[%s4556_s5 + $0x160] sm:$0xff]   ;;  %v4103_v13 = vcombine.low %v777_v30, %v781_v4 }
 0x13d   : > { %3263 = vmatpush3.bf16.msra.mxu1 %v3481_v14  ;;  %v834_v50 = vor.u32 %v833_v46, %v829_v41  ;;  %v862_v61 = vrot.slane %v2981_v56, 1  ;;  %v780_v2 = vld [vmem:[#allocation3 + $0xc] sm:$0x1]  ;;  %v784_v7 = vld [vmem:[#allocation3 + $0x8] sm:$0xe]  ;;  %v3519_v9 = vld [vmem:[%s4556_s5 + $0x120] sm:$0xff]  }
 0x13e   : > { %3264 = vmatprep.subr.bf16.mxu1 %v3484_v17  ;;  %v785_v8 = vld [vmem:[#allocation3 + $0x10] sm:$0xe]  ;;  %v4098_v11 = vcombine.low %v776_v40, %v780_v2  ;;  %v3522_v14 = vld [vmem:[%s4556_s5 + $0x158] sm:$0xff]   ;;  %v778_v35 = vld [vmem:[#allocation3 + $0x18] sm:$0xf]  ;;  %v893_v42 = vshrl.u32 %v4103_v13, 16 }
 0x13f   : > { %3291 = vmatpush3.bf16.msra.mxu0 %v3483_v16  ;;  %v3002_v57 = vcombine.low %v827_v47, %v834_v50  ;;  %v3003_v48 = vcombine.low %v861_v60, %v862_v61  ;;  %v3520_v10 = vld [vmem:[%s4556_s5 + $0x1e0] sm:$0xff]   ;;  %v3523_v16 = vld [vmem:[%s4556_s5 + $0x118] sm:$0xff]   ;;  %v779_v38 = vld [vmem:[#allocation3 + $0x20] sm:$0xf] }
 0x140   : > { %3292 = vmatprep.subr.bf16.mxu0 %v3486_v19  ;;  %v3521_v12 = vld [vmem:[%s4556_s5 + $0x1a0] sm:$0xff]   ;;  %v886_v15 = vshrl.u32 %v4098_v11, 16  ;;  %v2989_v19 = vcombine.low %v785_v8, %v781_v4  ;;  %v3528_v29 = vld [vmem:[%s4556_s5 + $0x198] sm:$0xff]   ;;  %v3013_v30 = vcombine.low %v778_v35, %v779_v38  ;;  %v3532_v43 = vld [vmem:[%s4556_s5 + $0x150] sm:$0xff]  }
 0x141   : > { %3265 = vmatpush3.bf16.msra.mxu1 %v3485_v18  ;;  %1668 = vmatprep.mubr.bf16.mxu1 %v3002_v57  ;;  %v765_v17 = vld [vmem:[#allocation3 + $0x10] sm:$0xf]  ;;  %v2988_v18 = vcombine.low %v784_v7, %v780_v2  ;;  %v4126_v50 = vld [vmem:[#allocation3 + $0x24] sm:$0x1]  ;;  %v3539_v2 = vld [vmem:[%s4556_s5 + $0x108] sm:$0xff]  }
 0x142   : > { %3266 = vmatprep.subr.bf16.mxu1 %v3488_v21  ;;  %v769_v21 = vld [vmem:[#allocation3 + $0x14] sm:$0x1]  ;;  %v926_v37 = vrot.slane %v2989_v19, 1  ;;  %v773_v44 = vld [vmem:[#allocation3 + $0x10] sm:$0xe]  ;;  %v3535_v56 = vld [vmem:[%s4556_s5 + $0x110] sm:$0xff]   ;;  %v2987_v61 = vcombine.low %v779_v38, %v4126_v50 }
 0x143   : > { %3293 = vmatpush3.bf16.msra.mxu0 %v3487_v20  ;;  %v766_v20 = vld [vmem:[#allocation3 + $0x18] sm:$0xf]  ;;  %v3542_v8 = vld [vmem:[%s4556_s5 + $0x140] sm:$0xff]  }
 0x144   : > { %3294 = vmatprep.subr.bf16.mxu0 %v3490_v23  ;;  %v888_v23 = vshll.u32 %v4098_v11, 16  ;;  %v3010_v49 = vcombine.low %v765_v17, %v766_v20  ;;  %v3541_v7 = vld [vmem:[%s4556_s5 + $0x188] sm:$0xff]  }
 0x145   : > { %3267 = vmatpush3.bf16.msra.mxu1 %v3489_v22  ;;  %v770_v22 = vld [vmem:[#allocation3 + $0x1c] sm:$0x1]  ;;  %v790_v19 = vld [vmem:[#allocation3 + $0x18] sm:$0xf] }
 0x146   : > { %3268 = vmatprep.subr.bf16.mxu1 %v3492_v25  ;;  %v2979_v25 = vcombine.low %v766_v20, %v770_v22  ;;  %v890_v51 = vrot.slane %v888_v23, 1  ;;  %v793_v20 = vld [vmem:[#allocation3 + $0x14] sm:$0x1] }
 0x147   : > { %3295 = vmatpush3.bf16.msra.mxu0 %v3491_v24  ;;  %v2978_v24 = vcombine.low %v765_v17, %v769_v21  ;;  %v3546_v17 = vld [vmem:[%s4556_s5 + $0x238] sm:$0xff]  }
 0x148   : > { %3296 = vmatprep.subr.bf16.mxu0 %v3494_v27  ;;  %v895_v27 = vshll.u32 %v4103_v13, 16  ;;  %v843_v33 = vshrl.u32 %v2979_v25, 16  ;;  %v845_v34 = vshll.u32 %v2979_v25, 16  ;;  %v3544_v13 = vld [vmem:[%s4556_s5 + $0x1c0] sm:$0xff]   ;;  %v786_v25 = vld [vmem:[#allocation3 + $0x18] sm:$0xe] }
 0x149   : > { %3269 = vmatpush3.bf16.msra.mxu1 %v3493_v26  ;;  %v3526_v26 = vld [vmem:[%s4556_s5 + $0x1d8] sm:$0xff]   ;;  %v836_v31 = vshrl.u32 %v2978_v24, 16  ;;  %v838_v32 = vshll.u32 %v2978_v24, 16  ;;  %v3550_v24 = vld [vmem:[%s4556_s5 + $0x230] sm:$0xff]  }
 0x14a   : > { %3310 = vmatprep.subr.bf16.mxu1 %v3499_v39  ;;  %v4120_v39 = vld [vmem:[#allocation3 + $0x1c] sm:$0x1]  ;;  %v847_v41 = vrot.slane %v845_v34, 1  ;;  %v897_v57 = vrot.slane %v895_v27, 1 }
 0x14b   : > { %3297 = vmatpush3.bf16.msra.mxu0 %v3497_v36  ;;  %v925_v36 = vrot.slane %v2988_v18, 1  ;;  %v840_v40 = vrot.slane %v838_v32, 1  ;;  %v789_v18 = vld [vmem:[#allocation3 + $0x10] sm:$0xf]  ;;  %v2990_v27 = vcombine.low %v786_v25, %v4120_v39  ;;  %v3575_v25 = vld [vmem:[%s4558_s7 + $0xc8] ss:$16 sps:$4 sm:$0xff]  }
 0x14c   : > { %3338 = vmatprep.subr.bf16.mxu0 %v3508_v45  ;;  %1669 = vmatmul.mubr.bf16.vlgmr.msra.gmra.mxu1 %v3001_v53  ;;  %v774_v45 = vld [vmem:[#allocation3 + $0x18] sm:$0xe]  ;;  %v848_v47 = vor.u32 %v847_v41, %v843_v33  ;;  %v2986_v53 = vcombine.low %v778_v35, %v4120_v39  ;;  %v898_v4 = vor.u32 %v897_v57, %v893_v42  ;;  %v792_v41 = vld [vmem:[#allocation3 + $0x28] sm:$0xf]  ;;  %v796_v39 = vld [vmem:[#allocation3 + $0x2c] sm:$0x1] }
 0x14d   : > { %3311 = vmatpush3.bf16.msra.mxu1 %v3505_v54  ;;  %v841_v46 = vor.u32 %v840_v40, %v836_v31  ;;  %v2982_v54 = vcombine.low %v773_v44, %v769_v21  ;;  %v2983_v55 = vcombine.low %v774_v45, %v770_v22  ;;  %v3006_v60 = vcombine.low %v925_v36, %v926_v37  ;;  %v794_v21 = vld [vmem:[#allocation3 + $0x1c] sm:$0x1]  ;;  %v791_v40 = vld [vmem:[#allocation3 + $0x20] sm:$0xf] }
 0x14e   : > { %1718 = vmatmul.mubr.bf16.vlgmr.msra.gmra.mxu0 %v3003_v48  ;;  %3312 = vmatprep.subr.bf16.mxu1 %v3510_v59  ;;  %v3536_v59 = vld [vmem:[%s4556_s5 + $0x1d0] sm:$0xff]   ;;  %v2992_v22 = vcombine.low %v789_v18, %v793_v20  ;;  %v2993_v23 = vcombine.low %v790_v19, %v794_v21  ;;  %v3553_v36 = vld [vmem:[%s4556_s5 + $0x228] sm:$0xff]   ;;  %v927_v38 = vrot.slane %v2990_v27, 1 }
 0x14f   : > { %3339 = vmatpush3.bf16.msra.mxu0 %v3509_v58  ;;  %1725 = vmatprep.mubr.bf16.mxu0 %v3013_v30  ;;  %v3011_v58 = vcombine.low %v841_v46, %v848_v47  ;;  %v864_v48 = vrot.slane %v2983_v55, 1  ;;  %v2995_v46 = vcombine.low %v792_v41, %v796_v39  ;;  %v3580_v27 = vld [vmem:[%s4558_s7 + $0xa4] ss:$16 sps:$4 sm:$0xff]  }
 0x150   : > { %3340 = vmatprep.subr.bf16.mxu0 %v3512_v52  ;;  %v3537_v52 = vld [vmem:[%s4556_s5 + $0x190] sm:$0xff]   ;;  %v950_v32 = vshrl.u32 %v2992_v22, 16  ;;  %v952_v33 = vshll.u32 %v2992_v22, 16  ;;  %v957_v34 = vshrl.u32 %v2993_v23, 16  ;;  %v959_v35 = vshll.u32 %v2993_v23, 16 }
 0x151   : > { %3313 = vmatpush3.bf16.msra.mxu1 %v3511_v62  ;;  %v863_v62 = vrot.slane %v2982_v54, 1  ;;  %1676 = vmatprep.mubr.bf16.mxu1 %v3011_v58  ;;  %v971_v58 = vshrl.u32 %v2995_v46, 16  ;;  %v3574_v22 = vld [vmem:[%s4558_s7 + $0xc4] ss:$16 sps:$4 sm:$0xff]   ;;  %v3577_v23 = vld [vmem:[%s4558_s7 + $0xcc] ss:$16 sps:$4 sm:$0xff]  }
 0x152   : > { %3314 = vmatprep.subr.bf16.mxu1 %v3514_v0  ;;  %v902_v0 = vshll.u32 %v2986_v53, 16  ;;  %v954_v42 = vrot.slane %v952_v33, 1  ;;  %v961_v30 = vrot.slane %v959_v35, 1  ;;  %v3589_v33 = vld [vmem:[%s4558_s7 + $0x8c] ss:$16 sps:$4 sm:$0xff]  }
 0x153   : > { %3341 = vmatpush3.bf16.msra.mxu0 %v3513_v63  ;;  %v3538_v63 = vld [vmem:[%s4556_s5 + $0x148] sm:$0xff]  }
 0x154   : > { %3342 = vmatprep.subr.bf16.mxu0 %v3516_v3  ;;  %1677 = vmatmul.mubr.bf16.gmra.mxu1 %v3010_v49  ;;  %v891_v3 = vor.u32 %v890_v51, %v886_v15  ;;  %v904_v11 = vrot.slane %v902_v0, 1  ;;  %v3545_v15 = vld [vmem:[%s4556_s5 + $0x180] sm:$0xff]   ;;  %v955_v47 = vor.u32 %v954_v42, %v950_v32  ;;  %v962_v49 = vor.u32 %v961_v30, %v957_v34  ;;  %v3587_v35 = vld [vmem:[%s4558_s7 + $0x88] ss:$16 sps:$4 sm:$0xff]   ;;  %v3601_v42 = vld [vmem:[%s4558_s7 + $0x4c] ss:$16 sps:$4 sm:$0xff]  }
 0x155   : > { %3315 = vmatpush3.bf16.msra.mxu1 %v3515_v1  ;;  %v3012_v1 = vcombine.low %v863_v62, %v864_v48  ;;  %1766 = vmatprep.mubr.bf16.mxu1 %v3006_v60  ;;  %v3560_v60 = vld [vmem:[%s4556_s5 + $0x218] sm:$0xff]   ;;  %v3586_v32 = vld [vmem:[%s4558_s7 + $0x84] ss:$16 sps:$4 sm:$0xff]   ;;  %v3584_v34 = vld [vmem:[%s4558_s7 + $0x80] ss:$16 sps:$4 sm:$0xff]  }
 0x156   : > { %3316 = vmatprep.subr.bf16.mxu1 %v3518_v6  ;;  %v909_v6 = vshll.u32 %v2987_v61, 16  ;;  %v3008_v57 = vcombine.low %v955_v47, %v962_v49  ;;  %v3596_v30 = vld [vmem:[%s4558_s7 + $0x40] ss:$16 sps:$4 sm:$0xff]   ;;  %v3610_v47 = vld [vmem:[%s4558_s7 + $0x4] ss:$16 sps:$4 sm:$0xff]  }
 0x157   : > { %3343 = vmatpush3.bf16.msra.mxu0 %v3517_v5  ;;  %v3540_v5 = vld [vmem:[%s4556_s5 + $0x1c8] sm:$0xff]  }
 0x158   : > { %3344 = vmatprep.subr.bf16.mxu0 %v3520_v10  ;;  %1726 = vmatmul.mubr.bf16.gmra.mxu0 %v3012_v1  ;;  %v3543_v10 = vld [vmem:[%s4556_s5 + $0x100] sm:$0xff]   ;;  %v3561_v1 = vld [vmem:[%s4556_s5 + $0x210] sm:$0xff]   ;;  %v3613_v49 = vld [vmem:[%s4558_s7 + $0xc] ss:$16 sps:$4 sm:$0xff]  }
 0x159   : > { %3317 = vmatpush3.bf16.msra.mxu1 %v3519_v9  ;;  %v900_v9 = vshrl.u32 %v2986_v53, 16  ;;  %v3007_v53 = vcombine.low %v789_v18, %v790_v19  ;;  %1815 = vmatprep.mubr.bf16.mxu0 %v3008_v57  ;;  %v3568_v18 = vld [vmem:[%s4558_s7 + $0xe4] ss:$16 sps:$4 sm:$0xff]   ;;  %v3571_v19 = vld [vmem:[%s4558_s7 + $0xec] ss:$16 sps:$4 sm:$0xff]  }
 0x15a   : > { %3318 = vmatprep.subr.bf16.mxu1 %v3522_v14  ;;  %v907_v14 = vshrl.u32 %v2987_v61, 16 }
 0x15b   : > { %3345 = vmatpush3.bf16.msra.mxu0 %v3521_v12  ;;  %v3005_v12 = vcombine.low %v891_v3, %v898_v4 }
 0x15c   : > { %3346 = vmatprep.subr.bf16.mxu0 %v3526_v26  ;;  %v787_v26 = vld [vmem:[#allocation3 + $0x20] sm:$0xe] }
 0x15d   : > { %3319 = vmatpush3.bf16.msra.mxu1 %v3523_v16  ;;  %v911_v16 = vrot.slane %v909_v6, 1  ;;  %v2991_v37 = vcombine.low %v787_v26, %v4126_v50  ;;  %v3559_v50 = vld [vmem:[%s4556_s5 + $0x220] sm:$0xff]  }
 0x15e   : > { %3320 = vmatprep.subr.bf16.mxu1 %v3532_v43  ;;  %v795_v43 = vld [vmem:[#allocation3 + $0x24] sm:$0x1]  ;;  %v3578_v26 = vld [vmem:[%s4558_s7 + $0xa0] ss:$16 sps:$4 sm:$0xff]  }
 0x15f   : > { %3347 = vmatpush3.bf16.msra.mxu0 %v3528_v29  ;;  %v905_v29 = vor.u32 %v904_v11, %v900_v9  ;;  %v912_v31 = vor.u32 %v911_v16, %v907_v14  ;;  %v928_v44 = vrot.slane %v2991_v37, 1  ;;  %v2994_v45 = vcombine.low %v791_v40, %v795_v43  ;;  %v3563_v14 = vld [vmem:[%s4556_s5 + $0x200] sm:$0xff]   ;;  %v3595_v37 = vld [vmem:[%s4558_s7 + $0x6c] ss:$16 sps:$4 sm:$0xff]  }
 0x160   : > { %3348 = vmatprep.subr.bf16.mxu0 %v3536_v59  ;;  %v973_v59 = vshll.u32 %v2995_v46, 16  ;;  %v3016_v9 = vcombine.low %v791_v40, %v792_v41  ;;  %v3593_v40 = vld [vmem:[%s4558_s7 + $0x68] ss:$16 sps:$4 sm:$0xff]   ;;  %v3598_v41 = vld [vmem:[%s4558_s7 + $0x44] ss:$16 sps:$4 sm:$0xff]  }
 0x161   : > { %3321 = vmatpush3.bf16.msra.mxu1 %v3535_v56  ;;  %v3014_v51 = vcombine.low %v905_v29, %v912_v31  ;;  %v3015_v54 = vcombine.low %v927_v38, %v928_v44  ;;  %v964_v55 = vshrl.u32 %v2994_v45, 16  ;;  %v966_v56 = vshll.u32 %v2994_v45, 16  ;;  %v3581_v29 = vld [vmem:[%s4558_s7 + $0xa8] ss:$16 sps:$4 sm:$0xff]   ;;  %v3583_v31 = vld [vmem:[%s4558_s7 + $0xac] ss:$16 sps:$4 sm:$0xff]  }
 0x162   : > { %3322 = vmatprep.subr.bf16.mxu1 %v3538_v63  ;;  %v975_v62 = vrot.slane %v973_v59, 1  ;;  %v798_v63 = vld [vmem:[#allocation3 + $0x18] sm:$0xe]  ;;  %v3590_v38 = vld [vmem:[%s4558_s7 + $0x60] ss:$16 sps:$4 sm:$0xff]  }
 0x163   : > { %3349 = vmatpush3.bf16.msra.mxu0 %v3537_v52  ;;  %v968_v61 = vrot.slane %v966_v56, 1  ;;  %v797_v52 = vld [vmem:[#allocation3 + $0x10] sm:$0xe]  ;;  %v2997_v3 = vcombine.low %v798_v63, %v794_v21  ;;  %v3569_v21 = vld [vmem:[%s4558_s7 + $0xe8] ss:$16 sps:$4 sm:$0xff]  }
 0x164   : > { %3350 = vmatprep.subr.bf16.mxu0 %v3540_v5  ;;  %v976_v0 = vor.u32 %v975_v62, %v971_v58  ;;  %v3602_v44 = vld [vmem:[%s4558_s7 + $0x20] ss:$16 sps:$4 sm:$0xff]   ;;  %v3605_v45 = vld [vmem:[%s4558_s7 + $0x28] ss:$16 sps:$4 sm:$0xff]   ;;  %v3607_v46 = vld [vmem:[%s4558_s7 + $0x2c] ss:$16 sps:$4 sm:$0xff]  }
 0x165   : > { %3323 = vmatpush3.bf16.msra.mxu1 %v3539_v2  ;;  %v969_v48 = vor.u32 %v968_v61, %v964_v55  ;;  %v2996_v2 = vcombine.low %v797_v52, %v793_v20  ;;  %v990_v6 = vrot.slane %v2997_v3, 1  ;;  %v3566_v20 = vld [vmem:[%s4558_s7 + $0xe0] ss:$16 sps:$4 sm:$0xff]   ;;  %v3619_v55 = vld [vmem:[%s4552_s1 + $0xec] ss:$16 sps:$4 sm:$0xff]  }
 0x166   : > { %3324 = vmatprep.subr.bf16.mxu1 %v3542_v8  ;;  %v800_v8 = vld [vmem:[#allocation3 + $0x28] sm:$0xe] }
 0x167   : > { %3351 = vmatpush3.bf16.msra.mxu0 %v3541_v7  ;;  %v3017_v4 = vcombine.low %v969_v48, %v976_v0  ;;  %v989_v5 = vrot.slane %v2996_v2, 1  ;;  %v799_v7 = vld [vmem:[#allocation3 + $0x20] sm:$0xe] }
 0x168   : > { %3352 = vmatprep.subr.bf16.mxu0 %v3544_v13  ;;  %v2999_v13 = vcombine.low %v800_v8, %v796_v39  ;;  %v3604_v39 = vld [vmem:[%s4558_s7 + $0x24] ss:$16 sps:$4 sm:$0xff]  }
 0x169   : > { %3325 = vmatpush3.bf16.msra.mxu1 %v3543_v10  ;;  %v3562_v10 = vld [vmem:[%s4556_s5 + $0x208] sm:$0xff]   ;;  %v3009_v11 = vcombine.low %v989_v5, %v990_v6 }
 0x16a   : > { %3376 = vmatprep.subr.bf16.mxu1 %v3546_v17  ;;  %v992_v16 = vrot.slane %v2999_v13, 1 }
 0x16b   : > { %3353 = vmatpush3.bf16.msra.mxu0 %v3545_v15 }
 0x16c   : > { %1767 = vmatmul.mubr.bf16.vlgmr.msra.gmra.mxu1 %v3005_v12  ;;  %v2998_v12 = vcombine.low %v799_v7, %v795_v43  ;;  %2101 = vmatprep.subr.bf16.mxu0 %v3568_v18  ;;  %v3599_v43 = vld [vmem:[%s4558_s7 + $0x48] ss:$16 sps:$4 sm:$0xff]  }
 0x16d   : > { %3377 = vmatpush3.bf16.msra.mxu1 %v3546_v17  ;;  %1774 = vmatprep.mubr.bf16.mxu1 %v3015_v54  ;;  %v3616_v54 = vld [vmem:[%s4552_s1 + $0xe4] ss:$16 sps:$4 sm:$0xff]  }
 0x16e   : > { %3378 = vmatprep.subr.bf16.mxu1 %v3550_v24  ;;  %1816 = vmatmul.mubr.bf16.vlgmr.msra.gmra.mxu0 %v3007_v53  ;;  %v991_v15 = vrot.slane %v2998_v12, 1  ;;  %v3611_v53 = vld [vmem:[%s4558_s7 + $0x8] ss:$16 sps:$4 sm:$0xff]  }
 0x16f   : > { %1823 = vmatprep.mubr.bf16.mxu0 %v3017_v4  ;;  %2102 = vmatpush1.bf16.msra.mxu0 %v3566_v20 }
 0x170   : > { %v3018_v17 = vcombine.low %v991_v15, %v992_v16  ;;  %2103 = vmatprep.subr.bf16.mxu0 %v3574_v22  ;;  %v3000_v15 = vld [vmem:[%s4557_s6] ss:$0 sm:$0xff] }
 0x171   : > { %3379 = vmatpush3.bf16.msra.mxu1 %v3550_v24  ;;  %v3572_v24 = vld [vmem:[%s4558_s7 + $0xc0] ss:$16 sps:$4 sm:$0xff]  }
 0x172   : > { %3380 = vmatprep.subr.bf16.mxu1 %v3553_v36 }
 0x173   : > { %2104 = vmatpush1.bf16.msra.mxu0 %v3572_v24 }
 0x174   : > { %1775 = vmatmul.mubr.bf16.gmra.mxu1 %v3014_v51  ;;  %2105 = vmatprep.subr.bf16.mxu0 %v3580_v27  ;;  %v3608_v51 = vld [vmem:[%s4558_s7] ss:$16 sps:$4 sm:$0xff]  }
 0x175   : > { %3381 = vmatpush3.bf16.msra.mxu1 %v3553_v36  ;;  %3392 = vmatprep.mubr.bf16.mxu1 %v3009_v11  ;;  %v3592_v36 = vld [vmem:[%s4558_s7 + $0x64] ss:$16 sps:$4 sm:$0xff]  }
 0x176   : > { %3382 = vmatprep.subr.bf16.mxu1 %v3559_v50  ;;  %1824 = vmatmul.mubr.bf16.gmra.mxu0 %v3016_v9 }
 0x177   : > { %2133 = vmatprep.mubr.bf16.mxu0 %v3758_v28  ;;  %2106 = vmatpush1.bf16.msra.mxu0 %v3578_v26 }
 0x178   : > { %2107 = vmatprep.subr.bf16.mxu0 %v3586_v32 }
 0x179   : > { %3383 = vmatpush3.bf16.msra.mxu1 %v3559_v50 }
 0x17a   : > { %3384 = vmatprep.subr.bf16.mxu1 %v3560_v60 }
 0x17b   : > { %2108 = vmatpush1.bf16.msra.mxu0 %v3584_v34 }
 0x17c   : > { %2109 = vmatprep.subr.bf16.mxu0 %v3592_v36 }
 0x17d   : > { %3385 = vmatpush3.bf16.msra.mxu1 %v3560_v60 }
 0x17e   : > { %3386 = vmatprep.subr.bf16.mxu1 %v3561_v1 }
 0x17f   : > { %2110 = vmatpush1.bf16.msra.mxu0 %v3590_v38 }
 0x180   : > { %2111 = vmatprep.subr.bf16.mxu0 %v3598_v41 }
 0x181   : > { %3387 = vmatpush3.bf16.msra.mxu1 %v3561_v1 }
 0x182   : > { %3388 = vmatprep.subr.bf16.mxu1 %v3562_v10 }
 0x183   : > { %2112 = vmatpush1.bf16.msra.mxu0 %v3596_v30 }
 0x184   : > { %2113 = vmatprep.subr.bf16.mxu0 %v3604_v39 }
 0x185   : > { %3389 = vmatpush3.bf16.msra.mxu1 %v3562_v10 }
 0x186   : > { %3390 = vmatprep.subr.bf16.mxu1 %v3563_v14 }
 0x187   : > { %2114 = vmatpush1.bf16.msra.mxu0 %v3602_v44 }
 0x188   : > { %2115 = vmatprep.subr.bf16.mxu0 %v3610_v47 }
 0x189   : > { %3391 = vmatpush3.bf16.msra.mxu1 %v3563_v14 }
 0x18a   : > { %2154 = vmatprep.subr.bf16.mxu1 %v3571_v19 }
 0x18b   : > { %2116 = vmatpush1.bf16.msra.mxu0 %v3608_v51 }
 0x18c   : > { %3393 = vmatmul.mubr.bf16.vlgmr.msra.gmra.mxu1 %v3018_v17  ;;  %2638 = vmatprep.subr.bf16.mxu0 %v3616_v54 }
 0x18d   : > { %2186 = vmatprep.mubr.bf16.mxu1 %v3758_v28  ;;  %2155 = vmatpush1.bf16.msra.mxu1 %v3569_v21 }
 0x18e   : > { %2156 = vmatprep.subr.bf16.mxu1 %v3577_v23 }
 0x191   : > { %2157 = vmatpush1.bf16.msra.mxu1 %v3575_v25 }
 0x192   : > { %2158 = vmatprep.subr.bf16.mxu1 %v3583_v31 }
 0x195   : > { %2159 = vmatpush1.bf16.msra.mxu1 %v3581_v29 }
 0x196   : > { %2160 = vmatprep.subr.bf16.mxu1 %v3589_v33 }
 0x199   : > { %2161 = vmatpush1.bf16.msra.mxu1 %v3587_v35 }
 0x19a   : > { %2162 = vmatprep.subr.bf16.mxu1 %v3595_v37 }
 0x19d   : > { %2163 = vmatpush1.bf16.msra.mxu1 %v3593_v40 }
 0x19e   : > { %2164 = vmatprep.subr.bf16.mxu1 %v3601_v42 }
 0x1a1   : > { %2165 = vmatpush1.bf16.msra.mxu1 %v3599_v43 }
 0x1a2   : > { %2166 = vmatprep.subr.bf16.mxu1 %v3607_v46 }
 0x1a5   : > { %2167 = vmatpush1.bf16.msra.mxu1 %v3605_v45 }
 0x1a6   : > { %2168 = vmatprep.subr.bf16.mxu1 %v3613_v49 }
 0x1a9   : > { %2169 = vmatpush1.bf16.msra.mxu1 %v3611_v53 }
 0x1aa   : > { %2691 = vmatprep.subr.bf16.mxu1 %v3619_v55 }
 0x20c   : > { %v3270_v56 = vpop.f32.mrf.mxu1 }
 0x20e   : > { %v3271_v50 = vpop.f32.mrf.mxu1  ;;  %v3298_v57 = vpop.f32.mrf.mxu0 }
 0x20f   : > { %v3272_v14 = vadd.f32 %v3271_v50, %v3270_v56 }
 0x210   : > { %v3273_v58 = vpop.f32.mrf.mxu1  ;;  %v3299_v59 = vpop.f32.mrf.mxu0 }
 0x211   : > { %v1671_v19 = vadd.f32 %v3272_v14, %v3000_v15  ;;  %v3300_v20 = vadd.f32 %v3299_v59, %v3298_v57 }
 0x212   : > { %v3274_v60 = vpop.f32.mrf.mxu1  ;;  %v3301_v61 = vpop.f32.mrf.mxu0 }
 0x213   : > { %v3275_v16 = vadd.f32 %v3274_v60, %v3273_v58  ;;  %v1720_v29 = vadd.f32 %v3300_v20, %v1671_v19  ;;  %v3640_v19 = vld [vmem:[%s4552_s1 + $0x64] ss:$16 sps:$4 sm:$0xff]   ;;  %v3643_v20 = vld [vmem:[%s4552_s1 + $0x6c] ss:$16 sps:$4 sm:$0xff]  }
 0x214   : > { %v3276_v62 = vpop.f32.mrf.mxu1  ;;  %v3302_v52 = vpop.f32.mrf.mxu0 }
 0x215   : > { %v1674_v21 = vadd.f32 %v3275_v16, %v3000_v15  ;;  %v3303_v22 = vadd.f32 %v3302_v52, %v3301_v61  ;;  %v3614_v52 = vld [vmem:[%s4552_s1 + $0xe0] ss:$16 sps:$4 sm:$0xff]   ;;  %v3712_v16 = vld [vmem:[#allocation2 + $0x14] ss:$-8 sps:$4 sm:$0xff]  }
 0x216   : > { %v3277_v48 = vpop.f32.mrf.mxu1 }
 0x217   : > { %v3278_v27 = vadd.f32 %v3277_v48, %v3276_v62  ;;  %v1723_v32 = vadd.f32 %v3303_v22, %v1674_v21  ;;  %v3638_v21 = vld [vmem:[%s4552_s1 + $0x60] ss:$16 sps:$4 sm:$0xff]   ;;  %v3641_v22 = vld [vmem:[%s4552_s1 + $0x68] ss:$16 sps:$4 sm:$0xff]  }
 0x218   : > { %v3279_v63 = vpop.f32.mrf.mxu1  ;;  %v3304_v0 = vpop.f32.mrf.mxu0 }
 0x219   : > { %v1679_v40 = vadd.f32 %v3278_v27, %v3000_v15  ;;  %v3652_v27 = vld [vmem:[%s4552_s1 + $0x24] ss:$16 sps:$4 sm:$0xff]  }
 0x21a   : > { %v3280_v1 = vpop.f32.mrf.mxu1  ;;  %v3305_v2 = vpop.f32.mrf.mxu0 }
 0x21b   : > { %v3281_v25 = vadd.f32 %v3280_v1, %v3279_v63  ;;  %v3306_v41 = vadd.f32 %v3305_v2, %v3304_v0  ;;  %v3617_v63 = vld [vmem:[%s4552_s1 + $0xe8] ss:$16 sps:$4 sm:$0xff]  }
 0x21c   : > { %v3307_v4 = vpop.f32.mrf.mxu0 }
 0x21d   : > { %v1682_v35 = vadd.f32 %v3281_v25, %v3000_v15  ;;  %v1728_v51 = vadd.f32 %v3306_v41, %v1679_v40  ;;  %v3634_v15 = vld [vmem:[%s4552_s1 + $0x84] ss:$16 sps:$4 sm:$0xff]   ;;  %v3644_v25 = vld [vmem:[%s4552_s1 + $0x40] ss:$16 sps:$4 sm:$0xff]   ;;  %v3665_v41 = vld [vmem:[%s4552_s1 + $0x1e8] ss:$16 sps:$4 sm:$0xff]  }
 0x21e   : > { %v3308_v6 = vpop.f32.mrf.mxu0  ;;  %v3662_v40 = vld [vmem:[%s4552_s1 + $0x1e0] ss:$16 sps:$4 sm:$0xff]  }
 0x21f   : > { %v3309_v36 = vadd.f32 %v3308_v6, %v3307_v4  ;;  %v3625_v4 = vld [vmem:[%s4552_s1 + $0xcc] ss:$16 sps:$4 sm:$0xff]   ;;  %v3620_v6 = vld [vmem:[%s4552_s1 + $0xc0] ss:$16 sps:$4 sm:$0xff]  }
 0x221   : > { %v1731_v46 = vadd.f32 %v3309_v36, %v1682_v35  ;;  %v3656_v35 = vld [vmem:[%s4552_s1] ss:$16 sps:$4 sm:$0xff]   ;;  %v3659_v36 = vld [vmem:[%s4552_s1 + $0x8] ss:$16 sps:$4 sm:$0xff]  }
 0x22c   : > { %v3326_v3 = vpop.f32.mrf.mxu1 }
 0x22e   : > { %v3327_v5 = vpop.f32.mrf.mxu1  ;;  %v3354_v8 = vpop.f32.mrf.mxu0 }
 0x22f   : > { %v3328_v26 = vadd.f32 %v3327_v5, %v3326_v3  ;;  %v3622_v3 = vld [vmem:[%s4552_s1 + $0xc4] ss:$16 sps:$4 sm:$0xff]  }
 0x230   : > { %v3329_v7 = vpop.f32.mrf.mxu1  ;;  %v3355_v9 = vpop.f32.mrf.mxu0 }
 0x231   : > { %v1769_v37 = vadd.f32 %v3328_v26, %v1720_v29  ;;  %v3356_v38 = vadd.f32 %v3355_v9, %v3354_v8  ;;  %v3628_v9 = vld [vmem:[%s4552_s1 + $0xa4] ss:$16 sps:$4 sm:$0xff]   ;;  %v3647_v26 = vld [vmem:[%s4552_s1 + $0x48] ss:$16 sps:$4 sm:$0xff]   ;;  %v3655_v29 = vld [vmem:[%s4552_s1 + $0x2c] ss:$16 sps:$4 sm:$0xff]  }
 0x232   : > { %v3330_v10 = vpop.f32.mrf.mxu1  ;;  %v3357_v11 = vpop.f32.mrf.mxu0 }
 0x233   : > { %v3331_v31 = vadd.f32 %v3330_v10, %v3329_v7  ;;  %v1818_v49 = vadd.f32 %v3356_v38, %v1769_v37  ;;  %v3623_v7 = vld [vmem:[%s4552_s1 + $0xc8] ss:$16 sps:$4 sm:$0xff]   ;;  %v3631_v10 = vld [vmem:[%s4552_s1 + $0xac] ss:$16 sps:$4 sm:$0xff]   ;;  %v3664_v37 = vld [vmem:[%s4552_s1 + $0x1e4] ss:$16 sps:$4 sm:$0xff]  }
 0x234   : > { %v3332_v12 = vpop.f32.mrf.mxu1  ;;  %v3358_v13 = vpop.f32.mrf.mxu0  ;;  %v3667_v38 = vld [vmem:[%s4552_s1 + $0x1ec] ss:$16 sps:$4 sm:$0xff]  }
 0x235   : > { %v1772_v30 = vadd.f32 %v3331_v31, %v1723_v32  ;;  %v3359_v43 = vadd.f32 %v3358_v13, %v3357_v11  ;;  %v3629_v13 = vld [vmem:[%s4552_s1 + $0xa8] ss:$16 sps:$4 sm:$0xff]   ;;  %v3650_v31 = vld [vmem:[%s4552_s1 + $0x20] ss:$16 sps:$4 sm:$0xff]  }
 0x236   : > { %v3333_v17 = vpop.f32.mrf.mxu1  ;;  %v3360_v18 = vpop.f32.mrf.mxu0  ;;  %v3653_v32 = vld [vmem:[%s4552_s1 + $0x28] ss:$16 sps:$4 sm:$0xff]  }
 0x237   : > { %v3334_v47 = vadd.f32 %v3333_v17, %v3332_v12  ;;  %v1821_v50 = vadd.f32 %v3359_v43, %v1772_v30  ;;  %v3626_v12 = vld [vmem:[%s4552_s1 + $0xa0] ss:$16 sps:$4 sm:$0xff]   ;;  %v3673_v30 = vld [vmem:[%s4552_s1 + $0x1cc] ss:$16 sps:$4 sm:$0xff]  }
 0x238   : > { %v3335_v23 = vpop.f32.mrf.mxu1  ;;  %v3361_v24 = vpop.f32.mrf.mxu0  ;;  %v3632_v17 = vld [vmem:[%s4552_s1 + $0x80] ss:$16 sps:$4 sm:$0xff]  }
 0x239   : > { %v1777_v58 = vadd.f32 %v3334_v47, %v1728_v51  ;;  %v3362_v59 = vadd.f32 %v3361_v24, %v3360_v18  ;;  %v3635_v18 = vld [vmem:[%s4552_s1 + $0x88] ss:$16 sps:$4 sm:$0xff]   ;;  %v3649_v24 = vld [vmem:[%s4552_s1 + $0x4c] ss:$16 sps:$4 sm:$0xff]   ;;  %v3668_v43 = vld [vmem:[%s4552_s1 + $0x1c0] ss:$16 sps:$4 sm:$0xff]  }
 0x23a   : > { %v3336_v33 = vpop.f32.mrf.mxu1  ;;  %v3363_v34 = vpop.f32.mrf.mxu0  ;;  %v3677_v47 = vld [vmem:[%s4552_s1 + $0x1a8] ss:$16 sps:$4 sm:$0xff]   ;;  %v3685_v51 = vld [vmem:[%s4552_s1 + $0x18c] ss:$16 sps:$4 sm:$0xff]  }
 0x23b   : > { %v3337_v39 = vadd.f32 %v3336_v33, %v3335_v23  ;;  %v1826_v0 = vadd.f32 %v3362_v59, %v1777_v58  ;;  %v3646_v23 = vld [vmem:[%s4552_s1 + $0x44] ss:$16 sps:$4 sm:$0xff]   ;;  %v3697_v59 = vld [vmem:[%s4552_s1 + $0x14c] ss:$16 sps:$4 sm:$0xff]  }
 0x23c   : > { %v3364_v44 = vpop.f32.mrf.mxu0  ;;  %v3658_v33 = vld [vmem:[%s4552_s1 + $0x4] ss:$16 sps:$4 sm:$0xff]  }
 0x23d   : > { %v1780_v54 = vadd.f32 %v3337_v39, %v1731_v46  ;;  %v3365_v55 = vadd.f32 %v3364_v44, %v3363_v34  ;;  %v3661_v34 = vld [vmem:[%s4552_s1 + $0xc] ss:$16 sps:$4 sm:$0xff]   ;;  %v3671_v39 = vld [vmem:[%s4552_s1 + $0x1c8] ss:$16 sps:$4 sm:$0xff]   ;;  %v3676_v44 = vld [vmem:[%s4552_s1 + $0x1a4] ss:$16 sps:$4 sm:$0xff]  }
 0x23e   : > { %v3674_v46 = vld [vmem:[%s4552_s1 + $0x1a0] ss:$16 sps:$4 sm:$0xff]   ;;  %v3694_v58 = vld [vmem:[%s4552_s1 + $0x144] ss:$16 sps:$4 sm:$0xff]  }
 0x23f   : > { %v1829_v62 = vadd.f32 %v3365_v55, %v1780_v54  ;;  %v3683_v54 = vld [vmem:[%s4552_s1 + $0x188] ss:$16 sps:$4 sm:$0xff]   ;;  %v3688_v55 = vld [vmem:[%s4552_s1 + $0x164] ss:$16 sps:$4 sm:$0xff]  }
 0x24c   : > { %v3394_v42 = vpop.f32.mrf.mxu1 }
 0x24d   : > { %v1875_v5 = vadd.f32 %v3394_v42, %v1826_v0  ;;  %v3670_v42 = vld [vmem:[%s4552_s1 + $0x1c4] ss:$16 sps:$4 sm:$0xff]  }
 0x24e   : > { %v1866_v45 = vpop.f32.mrf.mxu1  ;;  %v3706_v0 = vld [vmem:[%s4552_s1 + $0x104] ss:$16 sps:$4 sm:$0xff]  }
 0x24f   : > { %v1867_v56 = vadd.f32 %v1866_v45, %v1818_v49  ;;  %v1883_v11 = vmax.f32 %v1875_v5, 0.0  ;;  %v3679_v45 = vld [vmem:[%s4552_s1 + $0x1ac] ss:$16 sps:$4 sm:$0xff]   ;;  %v3682_v49 = vld [vmem:[%s4552_s1 + $0x184] ss:$16 sps:$4 sm:$0xff]  }
 0x250   : > { %v3395_v53 = vpop.f32.mrf.mxu1  ;;  %v3713_v5 = vld [vmem:[#allocation2 + $0x4] ss:$24 sps:$4 sm:$0xff]  }
 0x251   : > { %v1881_v61 = vmax.f32 %v1867_v56, 0.0  ;;  %v1878_v1 = vadd.f32 %v3395_v53, %v1829_v62  ;;  %v3680_v53 = vld [vmem:[%s4552_s1 + $0x180] ss:$16 sps:$4 sm:$0xff]   ;;  %v3691_v56 = vld [vmem:[%s4552_s1 + $0x16c] ss:$16 sps:$4 sm:$0xff]  }
 0x252   : > { %v1869_v57 = vpop.f32.mrf.mxu1  ;;  %v3700_v62 = vld [vmem:[%s4552_s1 + $0x124] ss:$16 sps:$4 sm:$0xff]  }
 0x253   : > { %v1870_v60 = vadd.f32 %v1869_v57, %v1821_v50  ;;  %v1884_v8 = vmax.f32 %v1878_v1, 0.0  ;;  %v3686_v50 = vld [vmem:[%s4552_s1 + $0x160] ss:$16 sps:$4 sm:$0xff]   ;;  %v3689_v57 = vld [vmem:[%s4552_s1 + $0x168] ss:$16 sps:$4 sm:$0xff]  }
 0x254   : > { %v3709_v1 = vld [vmem:[%s4552_s1 + $0x10c] ss:$16 sps:$4 sm:$0xff]  }
 0x255   : > { %v1882_v48 = vmax.f32 %v1870_v60, 0.0  ;;  %v1886_v14 = vpack.c.bf16 %v1884_v8, %v1883_v11  ;;  %v3692_v60 = vld [vmem:[%s4552_s1 + $0x140] ss:$16 sps:$4 sm:$0xff]  }
 0x257   : > { %v1885_v2 = vpack.c.bf16 %v1882_v48, %v1881_v61  ;;  %v3695_v61 = vld [vmem:[%s4552_s1 + $0x148] ss:$16 sps:$4 sm:$0xff]   ;;  %v3703_v48 = vld [vmem:[%s4552_s1 + $0x12c] ss:$16 sps:$4 sm:$0xff]  }
 0x259   : > { %2134 = vmatmul.mubr.bf16.vlgmr.msra.gmra.mxu0 %v1885_v2  ;;  %2187 = vmatmul.mubr.bf16.vlgmr.msra.gmra.mxu1 %v1885_v2  ;;  %v3704_v2 = vld [vmem:[%s4552_s1 + $0x100] ss:$16 sps:$4 sm:$0xff]  }
 0x25a   : > { %2639 = vmatpush1.bf16.msra.mxu0 %v3614_v52  ;;  %2692 = vmatpush1.bf16.msra.mxu1 %v3617_v63  ;;  %v3698_v52 = vld [vmem:[%s4552_s1 + $0x120] ss:$16 sps:$4 sm:$0xff]   ;;  %v3701_v63 = vld [vmem:[%s4552_s1 + $0x128] ss:$16 sps:$4 sm:$0xff]  }
 0x25b   : > { %2640 = vmatprep.subr.bf16.mxu0 %v3622_v3  ;;  %2693 = vmatprep.subr.bf16.mxu1 %v3625_v4  ;;  %v3707_v3 = vld [vmem:[%s4552_s1 + $0x108] ss:$16 sps:$4 sm:$0xff]  }
 0x25c   : > { %2143 = vmatprep.mubr.bf16.mxu0 %v3758_v28  ;;  %2196 = vmatprep.mubr.bf16.mxu1 %v3758_v28  ;;  %v3637_v28 = vld [vmem:[%s4552_s1 + $0x8c] ss:$16 sps:$4 sm:$0xff]   ;;  %v3710_v4 = vld [vmem:[#allocation2 + $0x10] ss:$-8 sps:$4 sm:$0xff]  }
 0x25e   : > { %2641 = vmatpush1.bf16.msra.mxu0 %v3620_v6  ;;  %2694 = vmatpush1.bf16.msra.mxu1 %v3623_v7  ;;  %v3715_v6 = vld [vmem:[#allocation2] ss:$24 sps:$4 sm:$0xff]  }
 0x25f   : > { %2642 = vmatprep.subr.bf16.mxu0 %v3628_v9  ;;  %2695 = vmatprep.subr.bf16.mxu1 %v3631_v10 }
 0x261   : > { %2144 = vmatmul.mubr.bf16.gmra.mxu0 %v1886_v14  ;;  %2197 = vmatmul.mubr.bf16.gmra.mxu1 %v1886_v14 }
 0x262   : > { %2643 = vmatpush1.bf16.msra.mxu0 %v3626_v12  ;;  %2696 = vmatpush1.bf16.msra.mxu1 %v3629_v13 }
 0x263   : > { %2644 = vmatprep.subr.bf16.mxu0 %v3634_v15  ;;  %2697 = vmatprep.subr.bf16.mxu1 %v3637_v28  ;;  %v1921_v15 = vlaneseq }
 0x264   : > { %2670 = vmatprep.mubr.bf16.mxu0 %v3712_v16  ;;  %2723 = vmatprep.mubr.bf16.mxu1 %v3712_v16 }
 0x266   : > { %2645 = vmatpush1.bf16.msra.mxu0 %v3632_v17  ;;  %2698 = vmatpush1.bf16.msra.mxu1 %v3635_v18  ;;  %v1922_v17 = vshrl.u32 %v1921_v15, 7 }
 0x267   : > { %2646 = vmatprep.subr.bf16.mxu0 %v3640_v19  ;;  %2699 = vmatprep.subr.bf16.mxu1 %v3643_v20 }
 0x268   : > { %v1923_v20 = vsub.s32 0, %v1922_v17 }
 0x26a   : > { %2647 = vmatpush1.bf16.msra.mxu0 %v3638_v21  ;;  %2700 = vmatpush1.bf16.msra.mxu1 %v3641_v22  ;;  %v1931_v21 = vsub.s32 2, %v1922_v17  ;;  %v1919_v22 = vld [vmem:[%s4559_s8] sm:$0xf] }
 0x26b   : > { %2648 = vmatprep.subr.bf16.mxu0 %v3646_v23  ;;  %2701 = vmatprep.subr.bf16.mxu1 %v3649_v24  ;;  %v1927_v23 = vsub.s32 1, %v1922_v17  ;;  %v1935_v24 = vsub.s32 3, %v1922_v17 }
 0x26e   : > { %2649 = vmatpush1.bf16.msra.mxu0 %v3644_v25  ;;  %2702 = vmatpush1.bf16.msra.mxu1 %v3647_v26 }
 0x26f   : > { %2650 = vmatprep.subr.bf16.mxu0 %v3652_v27  ;;  %2703 = vmatprep.subr.bf16.mxu1 %v3655_v29  ;;  %v2276_v27 = vld [vmem:[%s4553_s2] sm:$0xf]  ;;  %v1924_v29 = vrot.slane %v1919_v22, %v1923_v20 }
 0x272   : > { %2651 = vmatpush1.bf16.msra.mxu0 %v3650_v31  ;;  %2704 = vmatpush1.bf16.msra.mxu1 %v3653_v32  ;;  %v1932_v31 = vrot.slane %v1919_v22, %v1931_v21  ;;  %v4492_v32 = vrot.slane %v2276_v27, %v1923_v20 }
 0x273   : > { %2652 = vmatprep.subr.bf16.mxu0 %v3658_v33  ;;  %2705 = vmatprep.subr.bf16.mxu1 %v3661_v34  ;;  %v4494_v33 = vrot.slane %v2276_v27, %v1931_v21  ;;  %v4496_v34 = vrot.slane %v1919_v22, %v1927_v23 }
 0x276   : > { %2653 = vmatpush1.bf16.msra.mxu0 %v3656_v35  ;;  %2706 = vmatpush1.bf16.msra.mxu1 %v3659_v36  ;;  %v4498_v35 = vrot.slane %v1919_v22, %v1935_v24 }
 0x277   : > { %2654 = vmatprep.subr.bf16.mxu0 %v3664_v37  ;;  %2707 = vmatprep.subr.bf16.mxu1 %v3667_v38  ;;  %v4500_v38 = vrot.slane %v2276_v27, %v1927_v23 }
 0x27a   : > { %2655 = vmatpush2.bf16.msra.mxu0 %v3662_v40  ;;  %2708 = vmatpush2.bf16.msra.mxu1 %v3665_v41  ;;  %v4502_v40 = vrot.slane %v2276_v27, %v1935_v24 }
 0x27b   : > { %2656 = vmatprep.subr.bf16.mxu0 %v3670_v42  ;;  %2709 = vmatprep.subr.bf16.mxu1 %v3673_v30 }
 0x27e   : > { %2657 = vmatpush2.bf16.msra.mxu0 %v3668_v43  ;;  %2710 = vmatpush2.bf16.msra.mxu1 %v3671_v39 }
 0x27f   : > { %2658 = vmatprep.subr.bf16.mxu0 %v3676_v44  ;;  %2711 = vmatprep.subr.bf16.mxu1 %v3679_v45 }
 0x282   : > { %2659 = vmatpush2.bf16.msra.mxu0 %v3674_v46  ;;  %2712 = vmatpush2.bf16.msra.mxu1 %v3677_v47 }
 0x283   : > { %2660 = vmatprep.subr.bf16.mxu0 %v3682_v49  ;;  %2713 = vmatprep.subr.bf16.mxu1 %v3685_v51 }
 0x286   : > { %2661 = vmatpush2.bf16.msra.mxu0 %v3680_v53  ;;  %2714 = vmatpush2.bf16.msra.mxu1 %v3683_v54 }
 0x287   : > { %2662 = vmatprep.subr.bf16.mxu0 %v3688_v55  ;;  %2715 = vmatprep.subr.bf16.mxu1 %v3691_v56 }
 0x28a   : > { %2663 = vmatpush2.bf16.msra.mxu0 %v3686_v50  ;;  %2716 = vmatpush2.bf16.msra.mxu1 %v3689_v57 }
 0x28b   : > { %2664 = vmatprep.subr.bf16.mxu0 %v3694_v58  ;;  %2717 = vmatprep.subr.bf16.mxu1 %v3697_v59 }
 0x28e   : > { %2665 = vmatpush2.bf16.msra.mxu0 %v3692_v60  ;;  %2718 = vmatpush2.bf16.msra.mxu1 %v3695_v61 }
 0x28f   : > { %2666 = vmatprep.subr.bf16.mxu0 %v3700_v62  ;;  %2719 = vmatprep.subr.bf16.mxu1 %v3703_v48 }
 0x292   : > { %2667 = vmatpush2.bf16.msra.mxu0 %v3698_v52  ;;  %2720 = vmatpush2.bf16.msra.mxu1 %v3701_v63 }
 0x293   : > { %2668 = vmatprep.subr.bf16.mxu0 %v3706_v0  ;;  %2721 = vmatprep.subr.bf16.mxu1 %v3709_v1 }
 0x296   : > { %2669 = vmatpush2.bf16.msra.mxu0 %v3704_v2  ;;  %2722 = vmatpush2.bf16.msra.mxu1 %v3707_v3 }
 0x299   : > { %2671 = vmatmul.mubr.bf16.vlgmr.msra.gmra.mxu0 %v3710_v4  ;;  %2724 = vmatmul.mubr.bf16.vlgmr.msra.gmra.mxu1 %v3710_v4 }
 0x29a   : > { %2680 = vmatprep.mubr.bf16.mxu0 %v3713_v5  ;;  %2733 = vmatprep.mubr.bf16.mxu1 %v3713_v5 }
 0x2a1   : > { %2681 = vmatmul.mubr.bf16.gmra.mxu0 %v3715_v6  ;;  %2734 = vmatmul.mubr.bf16.gmra.mxu1 %v3715_v6 }
 0x319   : > { %v2135_v7 = vpop.f32.mrf.mxu0  ;;  %v2188_v8 = vpop.f32.mrf.mxu1 }
 0x31a   : > { %v2136_v30 = vadd.f32 %v2135_v7, %v1924_v29  ;;  %v2189_v43 = vadd.f32 %v2188_v8, %v1932_v31 }
 0x31b   : > { %v2137_v9 = vpop.f32.mrf.mxu0  ;;  %v2190_v10 = vpop.f32.mrf.mxu1 }
 0x31c   : > { %v2138_v45 = vadd.f32 %v2137_v9, %v4496_v34  ;;  %v2191_v46 = vadd.f32 %v2190_v10, %v4498_v35 }
 0x31d   : > { %v2139_v11 = vpop.f32.mrf.mxu0  ;;  %v2192_v12 = vpop.f32.mrf.mxu1 }
 0x31e   : > { %v2140_v47 = vadd.f32 %v2139_v11, %v1924_v29  ;;  %v2193_v49 = vadd.f32 %v2192_v12, %v1932_v31 }
 0x31f   : > { %v2141_v13 = vpop.f32.mrf.mxu0  ;;  %v2194_v14 = vpop.f32.mrf.mxu1 }
 0x320   : > { %v2142_v57 = vadd.f32 %v2141_v13, %v4496_v34  ;;  %v2195_v58 = vadd.f32 %v2194_v14, %v4498_v35 }
 0x321   : > { %v2145_v28 = vpop.f32.mrf.mxu0  ;;  %v2198_v16 = vpop.f32.mrf.mxu1 }
 0x322   : > { %v2146_v59 = vadd.f32 %v2145_v28, %v1924_v29  ;;  %v2199_v60 = vadd.f32 %v2198_v16, %v1932_v31 }
 0x323   : > { %v2147_v18 = vpop.f32.mrf.mxu0  ;;  %v2200_v19 = vpop.f32.mrf.mxu1 }
 0x324   : > { %v2148_v48 = vadd.f32 %v2147_v18, %v4496_v34  ;;  %v2201_v52 = vadd.f32 %v2200_v19, %v4498_v35 }
 0x325   : > { %v2149_v25 = vpop.f32.mrf.mxu0  ;;  %v2202_v26 = vpop.f32.mrf.mxu1 }
 0x326   : > { %v2150_v11 = vadd.f32 %v2149_v25, %v1924_v29  ;;  %v2203_v12 = vadd.f32 %v2202_v26, %v1932_v31 }
 0x327   : > { %v2151_v36 = vpop.f32.mrf.mxu0  ;;  %v2204_v37 = vpop.f32.mrf.mxu1 }
 0x359   : > { %v2672_v41 = vpop.f32.mrf.mxu0  ;;  %v2725_v42 = vpop.f32.mrf.mxu1 }
 0x35a   : > { %v2673_v39 = vadd.f32 %v2672_v41, %v4492_v32  ;;  %v2726_v44 = vadd.f32 %v2725_v42, %v4494_v33  ;;  %v2152_v41 = vadd.f32 %v2151_v36, %v4496_v34  ;;  %v2205_v42 = vadd.f32 %v2204_v37, %v4498_v35 }
 0x35b   : > { %v2674_v51 = vpop.f32.mrf.mxu0  ;;  %v2727_v53 = vpop.f32.mrf.mxu1 }
 0x35c   : > { %v2744_v54 = vadd.f32 %v2673_v39, %v2136_v30  ;;  %v2746_v55 = vadd.f32 %v2726_v44, %v2189_v43  ;;  %v2675_v56 = vadd.f32 %v2674_v51, %v4500_v38  ;;  %v2728_v50 = vadd.f32 %v2727_v53, %v4502_v40 }
 0x35d   : > { %v2676_v61 = vpop.f32.mrf.mxu0  ;;  %v2729_v62 = vpop.f32.mrf.mxu1 }
 0x35e   : > { %v2745_v63 = vadd.f32 %v2675_v56, %v2138_v45  ;;  %v2747_v0 = vadd.f32 %v2728_v50, %v2191_v46  ;;  %v2760_v1 = vmax.f32 %v2744_v54, 0.0  ;;  %v2762_v2 = vmax.f32 %v2746_v55, 0.0 }
 0x35f   : > { %v2677_v3 = vadd.f32 %v2676_v61, %v4492_v32  ;;  %v2730_v4 = vadd.f32 %v2729_v62, %v4494_v33  ;;  %v2678_v5 = vpop.f32.mrf.mxu0  ;;  %v2731_v6 = vpop.f32.mrf.mxu1 }
 0x360   : > { %v2761_v7 = vmax.f32 %v2745_v63, 0.0  ;;  %v2763_v8 = vmax.f32 %v2747_v0, 0.0  ;;  %v2679_v9 = vadd.f32 %v2678_v5, %v4500_v38  ;;  %v2732_v10 = vadd.f32 %v2731_v6, %v4502_v40 }
 0x361   : > { %v2748_v13 = vadd.f32 %v2677_v3, %v2140_v47  ;;  %v2750_v14 = vadd.f32 %v2730_v4, %v2193_v49  ;;  %v2682_v15 = vpop.f32.mrf.mxu0  ;;  %v2735_v28 = vpop.f32.mrf.mxu1 }
 0x362   : > { %v3212_v16 = vpack.c.bf16 %v2761_v7, %v2760_v1  ;;  %v3213_v17 = vpack.c.bf16 %v2763_v8, %v2762_v2  ;;  %v2749_v18 = vadd.f32 %v2679_v9, %v2142_v57  ;;  %v2751_v19 = vadd.f32 %v2732_v10, %v2195_v58 }
 0x363   : > { %v2764_v20 = vmax.f32 %v2748_v13, 0.0  ;;  %v2766_v21 = vmax.f32 %v2750_v14, 0.0  ;;  %v2683_v22 = vadd.f32 %v2682_v15, %v4492_v32  ;;  %v2736_v23 = vadd.f32 %v2735_v28, %v4494_v33  ;;  %v2684_v24 = vpop.f32.mrf.mxu0  ;;  %v2737_v27 = vpop.f32.mrf.mxu1 }
 0x364   : > { %2824 = vst [vmem:[%s3850_s14] sm:$0xff] %v3212_v16  ;;  %2825 = vst [vmem:[%s3850_s14 + $0x8] sm:$0xff] %v3213_v17  ;;  %v2765_v25 = vmax.f32 %v2749_v18, 0.0  ;;  %v2767_v26 = vmax.f32 %v2751_v19, 0.0  ;;  %v2685_v29 = vadd.f32 %v2684_v24, %v4500_v38  ;;  %v2738_v31 = vadd.f32 %v2737_v27, %v4502_v40 }
 0x365   : > { %v2752_v30 = vadd.f32 %v2683_v22, %v2146_v59  ;;  %v2754_v43 = vadd.f32 %v2736_v23, %v2199_v60  ;;  %v2686_v39 = vpop.f32.mrf.mxu0  ;;  %v2739_v44 = vpop.f32.mrf.mxu1 }
 0x366   : > { %v3214_v45 = vpack.c.bf16 %v2765_v25, %v2764_v20  ;;  %v3215_v46 = vpack.c.bf16 %v2767_v26, %v2766_v21  ;;  %v2753_v47 = vadd.f32 %v2685_v29, %v2148_v48  ;;  %v2755_v49 = vadd.f32 %v2738_v31, %v2201_v52 }
 0x367   : > { %v2768_v51 = vmax.f32 %v2752_v30, 0.0  ;;  %v2770_v53 = vmax.f32 %v2754_v43, 0.0  ;;  %v2687_v54 = vadd.f32 %v2686_v39, %v4492_v32  ;;  %v2740_v55 = vadd.f32 %v2739_v44, %v4494_v33  ;;  %v2688_v34 = vpop.f32.mrf.mxu0  ;;  %v2741_v36 = vpop.f32.mrf.mxu1 }
 0x368   : > { %2826 = vst [vmem:[%s3850_s14 + $0x10] sm:$0xff] %v3214_v45  ;;  %2827 = vst [vmem:[%s3850_s14 + $0x18] sm:$0xff] %v3215_v46  ;;  %v2769_v35 = vmax.f32 %v2753_v47, 0.0  ;;  %v2771_v37 = vmax.f32 %v2755_v49, 0.0  ;;  %v2689_v56 = vadd.f32 %v2688_v34, %v4500_v38  ;;  %v2742_v50 = vadd.f32 %v2741_v36, %v4502_v40 }
 0x369   : > { %v2756_v57 = vadd.f32 %v2687_v54, %v2150_v11  ;;  %v2758_v58 = vadd.f32 %v2740_v55, %v2203_v12 }
 0x36a   : > { %v3216_v59 = vpack.c.bf16 %v2769_v35, %v2768_v51  ;;  %v3217_v32 = vpack.c.bf16 %v2771_v37, %v2770_v53  ;;  %v2757_v60 = vadd.f32 %v2689_v56, %v2152_v41  ;;  %v2759_v61 = vadd.f32 %v2742_v50, %v2205_v42 }
 0x36b   : > { %v2772_v33 = vmax.f32 %v2756_v57, 0.0  ;;  %v2774_v62 = vmax.f32 %v2758_v58, 0.0 }
 0x36c   : > { %2828 = vst [vmem:[%s3850_s14 + $0x20] sm:$0xff] %v3216_v59  ;;  %2829 = vst [vmem:[%s3850_s14 + $0x28] sm:$0xff] %v3217_v32  ;;  %v2773_v48 = vmax.f32 %v2757_v60, 0.0  ;;  %v2775_v52 = vmax.f32 %v2759_v61, 0.0 }
 0x36e   : > { %v3218_v63 = vpack.c.bf16 %v2773_v48, %v2772_v33  ;;  %v3219_v0 = vpack.c.bf16 %v2775_v52, %v2774_v62 }
 0x370   : > { %2830 = vst [vmem:[%s3850_s14 + $0x30] sm:$0xff] %v3218_v63  ;;  %2831 = vst [vmem:[%s3850_s14 + $0x38] sm:$0xff] %v3219_v0 }
 0x371 PF: > { %s19_s13 = sadd.s32 1, %s3756_s13   ;;  %s4567_s19 = sld [smem:[#allocation7_spill]] }
 0x372   : > { %p16_p9 = scmp.ge.s32.totalorder %s19_s13, 6   ;;  %s4568_s20 = sld [smem:[#allocation8_spill]] }
 0x373   : > { %s4569_s30 = smov %s3748_s11  ;;  %s4570_s10 = smov %s3752_s12 }
 0x374   :  { %18 = sbr.rel (!%p16_p9) target bundleno = 3 (0x3), region = 134 }
 0x377   : > { %s4571_s11 = smov %s4567_s19 }
 0x378   : > { %s4572_s12 = smov %s4568_s20 }
 0x379   :  { %2867 = vsyncmov [#allocation4] }
 0x37c   :  { %s2868_s14 = vpop.sfrf %2867 }
 0x37d   :  { %p3201_p10 = scmp.ne.s32.totalorder %s2868_s14, 0 }
 0x37f   :  { %2872 = shalt.err (%p3201_p10)  }

</bundles_post_ra>
